<compile_context>
chip_gen: v7x
topology: tpu7x:2x2x1
jax: 0.10.0
libtpu: 0.0.40
codegen_flags: <defaults>
</compile_context>

<pallas_src>
import functools
import math

import numpy as np

import jax
import jax.numpy as jnp
from jax.experimental import pallas as pl
from jax.experimental.pallas import tpu as pltpu


# ----------------------------- in-kernel helpers -----------------------------

def _layer_norm(x, gamma, beta, eps=1e-12):
    mu = jnp.mean(x, axis=-1, keepdims=True)
    var = jnp.mean((x - mu) ** 2, axis=-1, keepdims=True)
    return (x - mu) * jax.lax.rsqrt(var + eps) * gamma + beta


def _gelu(x):
    # TODO(synk): HF "gelu" is the exact-erf GELU; lax.erf has no Mosaic lowering, so we use
    # the Abramowitz & Stegun 7.1.26 rational erf approximation (max abs err ~1.5e-7).
    a1, a2, a3, a4, a5 = 0.254829592, -0.284496736, 1.421413741, -1.453152027, 1.061405429
    p = 0.3275911
    u = x * 0.7071067811865476
    s = jnp.where(u >= 0.0, 1.0, -1.0)
    z = jnp.abs(u)
    t = 1.0 / (1.0 + p * z)
    poly = ((((a5 * t + a4) * t + a3) * t + a2) * t + a1) * t
    erf = s * (1.0 - poly * jnp.exp(-z * z))
    return 0.5 * x * (1.0 + erf)


# --------------------------- fused per-sample kernel ---------------------------

def _encoder_kernel(we_ref, pe_ref, tt_ref, eg_ref, eb_ref, bias_ref,
                    wqkvco_ref, bqkvco_ref, dw_ref, wpw_ref, bsep_ref,
                    wck_ref, bck_ref, wso_ref, bso_ref, g1_ref, b1_ref,
                    wi_ref, bi_ref, wo_ref, bo_ref, g2_ref, b2_ref,
                    o_ref, *, num_layers, heads, head_size, conv_k, inv_scale):
    f32 = jnp.float32
    bf16 = jnp.bfloat16
    S, H = o_ref.shape[1], o_ref.shape[2]
    A = heads * head_size
    pad = (conv_k - 1) // 2

    def mm(a, w):
        # bf16 operands, f32 accumulation on the MXU.
        return jnp.dot(a.astype(bf16), w.astype(bf16), preferred_element_type=f32)

    # Embeddings: word + position + token-type, then LayerNorm (gathers happen host-side).
    h = _layer_norm(we_ref[0] + pe_ref[...] + tt_ref[...], eg_ref[...], eb_ref[...])

    bias = bias_ref[0]  # [1, S] additive key mask (0 valid / -1e9 masked)

    # Per-tap conv boundary masks (layer-independent); sequence index lives on sublanes.
    pos = jax.lax.broadcasted_iota(jnp.int32, (S, 1), 0)
    tap_mask = []
    for kk in range(conv_k):
        d = kk - pad
        valid = jnp.logical_and(pos + d >= 0, pos + d < S)
        tap_mask.append(valid.astype(f32))  # [S, 1]

    def shift_seq(x, kk):
        # out[s] = x[s + (kk - pad)] with zero padding, via XLU roll + VPU mask.
        d = kk - pad
        if d == 0:
            return x
        return pltpu.roll(x, shift=(-d) % S, axis=0) * tap_mask[kk]

    for l in range(num_layers):
        # ---- fused Q | K | V | conv-out projection: one [H, 4A] matmul + static lane slices ----
        proj = mm(h, wqkvco_ref[l]) + bqkvco_ref[l]          # [S, 4A] f32
        q = proj[:, 0 * A:1 * A]
        k = proj[:, 1 * A:2 * A]
        v = proj[:, 2 * A:3 * A]
        co = proj[:, 3 * A:4 * A]

        # ---- SeparableConv1D: depthwise (roll + mask + per-channel scale) then 1x1 pointwise ----
        dw_l = dw_ref[l]                                      # [K, H] f32
        dwise = jnp.zeros_like(h)
        for kk in range(conv_k):
            dwise = dwise + shift_seq(h, kk) * dw_l[kk:kk + 1, :]
        ks = mm(dwise, wpw_ref[l]) + bsep_ref[l]              # [S, A]

        # ---- span-dynamic-conv kernel logits (per-(pos, head) softmax over K taps) ----
        ck = mm(ks * q, wck_ref[l]) + bck_ref[l]              # [S, heads*K]

        # Rolled + masked conv_out operands, shared across heads (XLU only).
        co_shift = [shift_seq(co, kk) for kk in range(conv_k)]

        # ---- per-head attention + per-head span-dynamic conv ----
        ctx_heads = []
        conv_heads = []
        for e in range(heads):
            q_e = q[:, e * head_size:(e + 1) * head_size]     # [S, hd]
            k_e = k[:, e * head_size:(e + 1) * head_size]
            v_e = v[:, e * head_size:(e + 1) * head_size]

            s_e = jax.lax.dot_general(q_e, k_e, (((1,), (1,)), ((), ())),
                                      preferred_element_type=f32) * inv_scale
            s_e = s_e + bias                                  # [S, S]
            p_e = jnp.exp(s_e - jnp.max(s_e, axis=-1, keepdims=True))
            p_e = p_e / jnp.sum(p_e, axis=-1, keepdims=True)  # exact softmax
            ctx_heads.append(jnp.dot(p_e, v_e, preferred_element_type=f32))

            ck_e = ck[:, e * conv_k:(e + 1) * conv_k]         # [S, K]
            ck_e = jnp.exp(ck_e - jnp.max(ck_e, axis=-1, keepdims=True))
            ck_e = ck_e / jnp.sum(ck_e, axis=-1, keepdims=True)
            acc = jnp.zeros((S, head_size), f32)
            for kk in range(conv_k):
                acc = acc + co_shift[kk][:, e * head_size:(e + 1) * head_size] * ck_e[:, kk:kk + 1]
            conv_heads.append(acc)

        # HF concatenates [attn heads..., conv heads...] along the feature axis.
        ctx = jnp.concatenate(ctx_heads + conv_heads, axis=1)  # [S, 2A]
        so = mm(ctx, wso_ref[l]) + bso_ref[l]                  # [S, H]
        x1 = _layer_norm(so + h, g1_ref[l], b1_ref[l])

        # ---- feed-forward ----
        inter = _gelu(mm(x1, wi_ref[l]) + bi_ref[l])
        out = mm(inter, wo_ref[l]) + bo_ref[l]
        h = _layer_norm(out + x1, g2_ref[l], b2_ref[l])

    o_ref[0] = h


# ------------------------------ model wrapper ------------------------------

def convbert_encoder_forward(params, input_ids, attn_mask, *, num_layers, heads,
                             head_size, conv_k):
    B, S = input_ids.shape
    H = params['word_emb'].shape[1]
    A = heads * head_size
    HK = heads * conv_k
    I = params['wi'].shape[-1]

    # Embedding gathers are glue (plain JAX); sum + LayerNorm happen inside the kernel.
    we = jnp.take(params['word_emb'], input_ids.reshape(-1), axis=0).reshape(B, S, H)
    pe = params['pos_emb'][:S]                                 # [S, H]
    tt = params['tok_type_emb'][0:1]                           # [1, H] (token_type_ids == 0)

    if attn_mask is None:
        attn_mask = jnp.ones((B, S), jnp.float32)
    # Tiny per-sample additive key mask (-1e9 keeps masked rows finite, same softmax result).
    bias = ((1.0 - attn_mask.astype(jnp.float32)) * -1e9).reshape(B, 1, S)

    def rep(a):
        n = a.ndim
        return pl.BlockSpec(a.shape, lambda b, n=n: (0,) * n)

    weight_keys = ['w_qkvco', 'b_qkvco', 'dw', 'wpw', 'bsep', 'wck', 'bck',
                   'wso', 'bso', 'ln1_g', 'ln1_b', 'wi', 'bi', 'wo', 'bo',
                   'ln2_g', 'ln2_b']

    specs_args = [
        (pl.BlockSpec((1, S, H), lambda b: (b, 0, 0)), we),
        (pl.BlockSpec((S, H), lambda b: (0, 0)), pe),
        (pl.BlockSpec((1, H), lambda b: (0, 0)), tt),
        (rep(params['emb_ln_g']), params['emb_ln_g']),
        (rep(params['emb_ln_b']), params['emb_ln_b']),
        (pl.BlockSpec((1, 1, S), lambda b: (b, 0, 0)), bias),
    ] + [(rep(params[k]), params[k]) for k in weight_keys]
    in_specs = [s for s, _ in specs_args]
    args = tuple(a for _, a in specs_args)

    # Advisory cost estimate so XLA schedules the gather / mask build around the call.
    matmul_flops = 2 * S * (H * 4 * A + H * A + A * HK + 2 * A * H + H * I + I * H)
    attn_flops = heads * 2 * (2 * S * S * head_size)
    flops = B * num_layers * (matmul_flops + attn_flops)
    trans = B * (num_layers * (heads * S * S + S * HK + S * I) + S * H)
    bytes_accessed = sum(int(a.size) * a.dtype.itemsize for a in args) + B * S * H * 4
    cost = pl.CostEstimate(flops=int(flops), transcendentals=int(trans),
                           bytes_accessed=int(bytes_accessed))

    kernel = functools.partial(_encoder_kernel, num_layers=num_layers, heads=heads,
                               head_size=head_size, conv_k=conv_k,
                               inv_scale=1.0 / math.sqrt(head_size))

    hs = pl.pallas_call(
        kernel,
        out_shape=jax.ShapeDtypeStruct((B, S, H), jnp.float32),
        grid=(B,),
        in_specs=in_specs,
        out_specs=pl.BlockSpec((1, S, H), lambda b: (b, 0, 0)),
        compiler_params=pltpu.CompilerParams(
            dimension_semantics=("parallel",),
            vmem_limit_bytes=32 * 1024 * 1024),
        cost_estimate=cost,
    )(*args)

    # The reference module returns last_hidden_state[:, 0, :]
    return hs[:, 0, :]


# --------------------------- deterministic params ---------------------------

def init_params(key, *, vocab_size, max_pos, type_vocab, hidden, num_layers,
                num_heads_cfg, head_ratio, conv_k, intermediate):
    heads = max(num_heads_cfg // head_ratio, 1)
    head_size = hidden // num_heads_cfg          # HF: hidden // num_attention_heads
    A = heads * head_size
    HK = heads * conv_k
    L = num_layers
    std = 0.02
    bf16 = jnp.bfloat16
    keys = iter(jax.random.split(key, 24))

    def nrm(shape, dtype=jnp.float32):
        return (std * jax.random.normal(next(keys), shape, jnp.float32)).astype(dtype)

    params = dict(
        word_emb=nrm((vocab_size, hidden)),
        pos_emb=nrm((max_pos, hidden)),
        tok_type_emb=nrm((type_vocab, hidden)),
        emb_ln_g=jnp.ones((1, hidden), jnp.float32),
        emb_ln_b=jnp.zeros((1, hidden), jnp.float32),
        # fused Q | K | V | conv-out projection (shared input h): bf16 for the MXU
        w_qkvco=nrm((L, hidden, 4 * A), bf16),
        b_qkvco=jnp.zeros((L, 1, 4 * A), jnp.float32),
        dw=nrm((L, conv_k, hidden)),                                   # depthwise taps (VPU, f32)
        wpw=nrm((L, hidden, A), bf16), bsep=jnp.zeros((L, 1, A), jnp.float32),
        wck=nrm((L, A, HK), bf16), bck=jnp.zeros((L, 1, HK), jnp.float32),
        wso=nrm((L, 2 * A, hidden), bf16),                             # dense over [attn | conv]
        bso=jnp.zeros((L, 1, hidden), jnp.float32),
        ln1_g=jnp.ones((L, 1, hidden), jnp.float32),
        ln1_b=jnp.zeros((L, 1, hidden), jnp.float32),
        wi=nrm((L, hidden, intermediate), bf16),
        bi=jnp.zeros((L, 1, intermediate), jnp.float32),
        wo=nrm((L, intermediate, hidden), bf16),
        bo=jnp.zeros((L, 1, hidden), jnp.float32),
        ln2_g=jnp.ones((L, 1, hidden), jnp.float32),
        ln2_b=jnp.zeros((L, 1, hidden), jnp.float32),
    )
    return params, heads, head_size


# ----------------------------------- main -----------------------------------

if __name__ == "__main__":
    key = jax.random.PRNGKey(0)
    B, S = 2, 16
    cfg = dict(vocab_size=100, max_pos=64, type_vocab=2, hidden=32,
               num_layers=2, num_heads_cfg=4, head_ratio=2, conv_k=9, intermediate=64)

    pkey, ikey = jax.random.split(key)
    params, heads, head_size = init_params(pkey, **cfg)

    input_ids = jax.random.randint(ikey, (B, S), 0, cfg['vocab_size'], dtype=jnp.int32)
    attn_mask = jnp.ones((B, S), jnp.float32).at[1, -3:].set(0.0)

    fwd = jax.jit(functools.partial(convbert_encoder_forward,
                                    num_layers=cfg['num_layers'], heads=heads,
                                    head_size=head_size, conv_k=cfg['conv_k']))
    out = fwd(params, input_ids, attn_mask)
    jax.block_until_ready(out)
    assert out.shape == (B, cfg['hidden']) and out.dtype == jnp.float32
    assert bool(jnp.all(jnp.isfinite(out)))
    print("KERNEL_OK")
</pallas_src>

<mosaic_0001>
module attributes {stable_mosaic.version = 11 : i64} {
  func.func @_encoder_kernel(%arg0: i32, %arg1: memref<1x16x32xf32, #tpu.memory_space<vmem>>, %arg2: memref<16x32xf32, #tpu.memory_space<vmem>>, %arg3: memref<1x32xf32, #tpu.memory_space<vmem>>, %arg4: memref<1x32xf32, #tpu.memory_space<vmem>>, %arg5: memref<1x32xf32, #tpu.memory_space<vmem>>, %arg6: memref<1x1x16xf32, #tpu.memory_space<vmem>>, %arg7: memref<2x32x64xbf16, #tpu.memory_space<vmem>>, %arg8: memref<2x1x64xf32, #tpu.memory_space<vmem>>, %arg9: memref<2x9x32xf32, #tpu.memory_space<vmem>>, %arg10: memref<2x32x16xbf16, #tpu.memory_space<vmem>>, %arg11: memref<2x1x16xf32, #tpu.memory_space<vmem>>, %arg12: memref<2x16x18xbf16, #tpu.memory_space<vmem>>, %arg13: memref<2x1x18xf32, #tpu.memory_space<vmem>>, %arg14: memref<2x32x32xbf16, #tpu.memory_space<vmem>>, %arg15: memref<2x1x32xf32, #tpu.memory_space<vmem>>, %arg16: memref<2x1x32xf32, #tpu.memory_space<vmem>>, %arg17: memref<2x1x32xf32, #tpu.memory_space<vmem>>, %arg18: memref<2x32x64xbf16, #tpu.memory_space<vmem>>, %arg19: memref<2x1x64xf32, #tpu.memory_space<vmem>>, %arg20: memref<2x64x32xbf16, #tpu.memory_space<vmem>>, %arg21: memref<2x1x32xf32, #tpu.memory_space<vmem>>, %arg22: memref<2x1x32xf32, #tpu.memory_space<vmem>>, %arg23: memref<2x1x32xf32, #tpu.memory_space<vmem>>, %arg24: memref<1x16x32xf32, #tpu.memory_space<vmem>>) attributes {dimension_semantics = [#tpu.dimension_semantics<parallel>], iteration_bounds = array<i64: 2>, scalar_prefetch = 0 : i64, scratch_operands = 0 : i64, tpu.core_type = #tpu.core_type<tc>, window_params = [{transform_indices = @transform_0, window_bounds = array<i64: 1, 16, 32>}, {pipeline_mode = #tpu.pipeline_mode<synchronous>, transform_indices = @transform_1, window_bounds = array<i64: 16, 32>}, {pipeline_mode = #tpu.pipeline_mode<synchronous>, transform_indices = @transform_2, window_bounds = array<i64: 1, 32>}, {pipeline_mode = #tpu.pipeline_mode<synchronous>, transform_indices = @transform_3, window_bounds = array<i64: 1, 32>}, {pipeline_mode = #tpu.pipeline_mode<synchronous>, transform_indices = @transform_4, window_bounds = array<i64: 1, 32>}, {transform_indices = @transform_5, window_bounds = array<i64: 1, 1, 16>}, {pipeline_mode = #tpu.pipeline_mode<synchronous>, transform_indices = @transform_6, window_bounds = array<i64: 2, 32, 64>}, {pipeline_mode = #tpu.pipeline_mode<synchronous>, transform_indices = @transform_7, window_bounds = array<i64: 2, 1, 64>}, {pipeline_mode = #tpu.pipeline_mode<synchronous>, transform_indices = @transform_8, window_bounds = array<i64: 2, 9, 32>}, {pipeline_mode = #tpu.pipeline_mode<synchronous>, transform_indices = @transform_9, window_bounds = array<i64: 2, 32, 16>}, {pipeline_mode = #tpu.pipeline_mode<synchronous>, transform_indices = @transform_10, window_bounds = array<i64: 2, 1, 16>}, {pipeline_mode = #tpu.pipeline_mode<synchronous>, transform_indices = @transform_11, window_bounds = array<i64: 2, 16, 18>}, {pipeline_mode = #tpu.pipeline_mode<synchronous>, transform_indices = @transform_12, window_bounds = array<i64: 2, 1, 18>}, {pipeline_mode = #tpu.pipeline_mode<synchronous>, transform_indices = @transform_13, window_bounds = array<i64: 2, 32, 32>}, {pipeline_mode = #tpu.pipeline_mode<synchronous>, transform_indices = @transform_14, window_bounds = array<i64: 2, 1, 32>}, {pipeline_mode = #tpu.pipeline_mode<synchronous>, transform_indices = @transform_15, window_bounds = array<i64: 2, 1, 32>}, {pipeline_mode = #tpu.pipeline_mode<synchronous>, transform_indices = @transform_16, window_bounds = array<i64: 2, 1, 32>}, {pipeline_mode = #tpu.pipeline_mode<synchronous>, transform_indices = @transform_17, window_bounds = array<i64: 2, 32, 64>}, {pipeline_mode = #tpu.pipeline_mode<synchronous>, transform_indices = @transform_18, window_bounds = array<i64: 2, 1, 64>}, {pipeline_mode = #tpu.pipeline_mode<synchronous>, transform_indices = @transform_19, window_bounds = array<i64: 2, 64, 32>}, {pipeline_mode = #tpu.pipeline_mode<synchronous>, transform_indices = @transform_20, window_bounds = array<i64: 2, 1, 32>}, {pipeline_mode = #tpu.pipeline_mode<synchronous>, transform_indices = @transform_21, window_bounds = array<i64: 2, 1, 32>}, {pipeline_mode = #tpu.pipeline_mode<synchronous>, transform_indices = @transform_22, window_bounds = array<i64: 2, 1, 32>}, {transform_indices = @transform_23, window_bounds = array<i64: 1, 16, 32>}]} {
    %c0 = arith.constant 0 : index
    %c0_0 = arith.constant 0 : index
    %c0_1 = arith.constant 0 : index
    %0 = vector.load %arg1[%c0, %c0_0, %c0_1] : memref<1x16x32xf32, #tpu.memory_space<vmem>>, vector<1x16x32xf32>
    %1 = vector.shape_cast %0 : vector<1x16x32xf32> to vector<16x32xf32>
    %c0_2 = arith.constant 0 : index
    %c0_3 = arith.constant 0 : index
    %2 = vector.load %arg2[%c0_2, %c0_3] : memref<16x32xf32, #tpu.memory_space<vmem>>, vector<16x32xf32>
    %3 = arith.addf %1, %2 : vector<16x32xf32>
    %c0_4 = arith.constant 0 : index
    %c0_5 = arith.constant 0 : index
    %4 = vector.load %arg3[%c0_4, %c0_5] : memref<1x32xf32, #tpu.memory_space<vmem>>, vector<1x32xf32>
    %5 = vector.broadcast %4 : vector<1x32xf32> to vector<16x32xf32>
    %6 = arith.addf %3, %5 : vector<16x32xf32>
    %c0_6 = arith.constant 0 : index
    %c0_7 = arith.constant 0 : index
    %7 = vector.load %arg4[%c0_6, %c0_7] : memref<1x32xf32, #tpu.memory_space<vmem>>, vector<1x32xf32>
    %c0_8 = arith.constant 0 : index
    %c0_9 = arith.constant 0 : index
    %8 = vector.load %arg5[%c0_8, %c0_9] : memref<1x32xf32, #tpu.memory_space<vmem>>, vector<1x32xf32>
    %cst = arith.constant dense<0.000000e+00> : vector<16xf32>
    %9 = vector.multi_reduction <add>, %6, %cst [1] : vector<16x32xf32> to vector<16xf32>
    %10 = vector.shape_cast %9 : vector<16xf32> to vector<16x1xf32>
    %cst_10 = arith.constant 3.200000e+01 : f32
    %11 = vector.broadcast %cst_10 : f32 to vector<16x1xf32>
    %12 = arith.divf %10, %11 : vector<16x1xf32>
    %13 = vector.broadcast %12 : vector<16x1xf32> to vector<16x32xf32>
    %14 = arith.subf %6, %13 : vector<16x32xf32>
    %15 = arith.mulf %14, %14 : vector<16x32xf32>
    %cst_11 = arith.constant dense<0.000000e+00> : vector<16xf32>
    %16 = vector.multi_reduction <add>, %15, %cst_11 [1] : vector<16x32xf32> to vector<16xf32>
    %17 = vector.shape_cast %16 : vector<16xf32> to vector<16x1xf32>
    %cst_12 = arith.constant 3.200000e+01 : f32
    %18 = vector.broadcast %cst_12 : f32 to vector<16x1xf32>
    %19 = arith.divf %17, %18 : vector<16x1xf32>
    %20 = vector.broadcast %12 : vector<16x1xf32> to vector<16x32xf32>
    %21 = arith.subf %6, %20 : vector<16x32xf32>
    %cst_13 = arith.constant 9.99999996E-13 : f32
    %22 = vector.broadcast %cst_13 : f32 to vector<16x1xf32>
    %23 = arith.addf %19, %22 : vector<16x1xf32>
    %24 = math.rsqrt %23 : vector<16x1xf32>
    %25 = vector.broadcast %24 : vector<16x1xf32> to vector<16x32xf32>
    %26 = arith.mulf %21, %25 : vector<16x32xf32>
    %27 = vector.broadcast %7 : vector<1x32xf32> to vector<16x32xf32>
    %28 = arith.mulf %26, %27 : vector<16x32xf32>
    %29 = vector.broadcast %8 : vector<1x32xf32> to vector<16x32xf32>
    %30 = arith.addf %28, %29 : vector<16x32xf32>
    %c0_14 = arith.constant 0 : index
    %c0_15 = arith.constant 0 : index
    %c0_16 = arith.constant 0 : index
    %31 = vector.load %arg6[%c0_14, %c0_15, %c0_16] : memref<1x1x16xf32, #tpu.memory_space<vmem>>, vector<1x1x16xf32>
    %32 = vector.shape_cast %31 : vector<1x1x16xf32> to vector<1x16xf32>
    %33 = tpu.iota {dimensions = array<i32: 0>} : vector<16x1xi32>
    %c-4_i32 = arith.constant -4 : i32
    %34 = vector.broadcast %c-4_i32 : i32 to vector<16x1xi32>
    %35 = arith.addi %33, %34 : vector<16x1xi32>
    %c0_i32 = arith.constant 0 : i32
    %36 = vector.broadcast %c0_i32 : i32 to vector<16x1xi32>
    %37 = arith.cmpi sge, %35, %36 : vector<16x1xi32>
    %c-4_i32_17 = arith.constant -4 : i32
    %38 = vector.broadcast %c-4_i32_17 : i32 to vector<16x1xi32>
    %39 = arith.addi %33, %38 : vector<16x1xi32>
    %c16_i32 = arith.constant 16 : i32
    %40 = vector.broadcast %c16_i32 : i32 to vector<16x1xi32>
    %41 = arith.cmpi slt, %39, %40 : vector<16x1xi32>
    %42 = arith.andi %37, %41 : vector<16x1xi1>
    %43 = arith.extui %42 : vector<16x1xi1> to vector<16x1xi32>
    %44 = arith.sitofp %43 : vector<16x1xi32> to vector<16x1xf32>
    %c-3_i32 = arith.constant -3 : i32
    %45 = vector.broadcast %c-3_i32 : i32 to vector<16x1xi32>
    %46 = arith.addi %33, %45 : vector<16x1xi32>
    %c0_i32_18 = arith.constant 0 : i32
    %47 = vector.broadcast %c0_i32_18 : i32 to vector<16x1xi32>
    %48 = arith.cmpi sge, %46, %47 : vector<16x1xi32>
    %c-3_i32_19 = arith.constant -3 : i32
    %49 = vector.broadcast %c-3_i32_19 : i32 to vector<16x1xi32>
    %50 = arith.addi %33, %49 : vector<16x1xi32>
    %c16_i32_20 = arith.constant 16 : i32
    %51 = vector.broadcast %c16_i32_20 : i32 to vector<16x1xi32>
    %52 = arith.cmpi slt, %50, %51 : vector<16x1xi32>
    %53 = arith.andi %48, %52 : vector<16x1xi1>
    %54 = arith.extui %53 : vector<16x1xi1> to vector<16x1xi32>
    %55 = arith.sitofp %54 : vector<16x1xi32> to vector<16x1xf32>
    %c-2_i32 = arith.constant -2 : i32
    %56 = vector.broadcast %c-2_i32 : i32 to vector<16x1xi32>
    %57 = arith.addi %33, %56 : vector<16x1xi32>
    %c0_i32_21 = arith.constant 0 : i32
    %58 = vector.broadcast %c0_i32_21 : i32 to vector<16x1xi32>
    %59 = arith.cmpi sge, %57, %58 : vector<16x1xi32>
    %c-2_i32_22 = arith.constant -2 : i32
    %60 = vector.broadcast %c-2_i32_22 : i32 to vector<16x1xi32>
    %61 = arith.addi %33, %60 : vector<16x1xi32>
    %c16_i32_23 = arith.constant 16 : i32
    %62 = vector.broadcast %c16_i32_23 : i32 to vector<16x1xi32>
    %63 = arith.cmpi slt, %61, %62 : vector<16x1xi32>
    %64 = arith.andi %59, %63 : vector<16x1xi1>
    %65 = arith.extui %64 : vector<16x1xi1> to vector<16x1xi32>
    %66 = arith.sitofp %65 : vector<16x1xi32> to vector<16x1xf32>
    %c-1_i32 = arith.constant -1 : i32
    %67 = vector.broadcast %c-1_i32 : i32 to vector<16x1xi32>
    %68 = arith.addi %33, %67 : vector<16x1xi32>
    %c0_i32_24 = arith.constant 0 : i32
    %69 = vector.broadcast %c0_i32_24 : i32 to vector<16x1xi32>
    %70 = arith.cmpi sge, %68, %69 : vector<16x1xi32>
    %c-1_i32_25 = arith.constant -1 : i32
    %71 = vector.broadcast %c-1_i32_25 : i32 to vector<16x1xi32>
    %72 = arith.addi %33, %71 : vector<16x1xi32>
    %c16_i32_26 = arith.constant 16 : i32
    %73 = vector.broadcast %c16_i32_26 : i32 to vector<16x1xi32>
    %74 = arith.cmpi slt, %72, %73 : vector<16x1xi32>
    %75 = arith.andi %70, %74 : vector<16x1xi1>
    %76 = arith.extui %75 : vector<16x1xi1> to vector<16x1xi32>
    %77 = arith.sitofp %76 : vector<16x1xi32> to vector<16x1xf32>
    %c1_i32 = arith.constant 1 : i32
    %78 = vector.broadcast %c1_i32 : i32 to vector<16x1xi32>
    %79 = arith.addi %33, %78 : vector<16x1xi32>
    %c0_i32_27 = arith.constant 0 : i32
    %80 = vector.broadcast %c0_i32_27 : i32 to vector<16x1xi32>
    %81 = arith.cmpi sge, %79, %80 : vector<16x1xi32>
    %c1_i32_28 = arith.constant 1 : i32
    %82 = vector.broadcast %c1_i32_28 : i32 to vector<16x1xi32>
    %83 = arith.addi %33, %82 : vector<16x1xi32>
    %c16_i32_29 = arith.constant 16 : i32
    %84 = vector.broadcast %c16_i32_29 : i32 to vector<16x1xi32>
    %85 = arith.cmpi slt, %83, %84 : vector<16x1xi32>
    %86 = arith.andi %81, %85 : vector<16x1xi1>
    %87 = arith.extui %86 : vector<16x1xi1> to vector<16x1xi32>
    %88 = arith.sitofp %87 : vector<16x1xi32> to vector<16x1xf32>
    %c2_i32 = arith.constant 2 : i32
    %89 = vector.broadcast %c2_i32 : i32 to vector<16x1xi32>
    %90 = arith.addi %33, %89 : vector<16x1xi32>
    %c0_i32_30 = arith.constant 0 : i32
    %91 = vector.broadcast %c0_i32_30 : i32 to vector<16x1xi32>
    %92 = arith.cmpi sge, %90, %91 : vector<16x1xi32>
    %c2_i32_31 = arith.constant 2 : i32
    %93 = vector.broadcast %c2_i32_31 : i32 to vector<16x1xi32>
    %94 = arith.addi %33, %93 : vector<16x1xi32>
    %c16_i32_32 = arith.constant 16 : i32
    %95 = vector.broadcast %c16_i32_32 : i32 to vector<16x1xi32>
    %96 = arith.cmpi slt, %94, %95 : vector<16x1xi32>
    %97 = arith.andi %92, %96 : vector<16x1xi1>
    %98 = arith.extui %97 : vector<16x1xi1> to vector<16x1xi32>
    %99 = arith.sitofp %98 : vector<16x1xi32> to vector<16x1xf32>
    %c3_i32 = arith.constant 3 : i32
    %100 = vector.broadcast %c3_i32 : i32 to vector<16x1xi32>
    %101 = arith.addi %33, %100 : vector<16x1xi32>
    %c0_i32_33 = arith.constant 0 : i32
    %102 = vector.broadcast %c0_i32_33 : i32 to vector<16x1xi32>
    %103 = arith.cmpi sge, %101, %102 : vector<16x1xi32>
    %c3_i32_34 = arith.constant 3 : i32
    %104 = vector.broadcast %c3_i32_34 : i32 to vector<16x1xi32>
    %105 = arith.addi %33, %104 : vector<16x1xi32>
    %c16_i32_35 = arith.constant 16 : i32
    %106 = vector.broadcast %c16_i32_35 : i32 to vector<16x1xi32>
    %107 = arith.cmpi slt, %105, %106 : vector<16x1xi32>
    %108 = arith.andi %103, %107 : vector<16x1xi1>
    %109 = arith.extui %108 : vector<16x1xi1> to vector<16x1xi32>
    %110 = arith.sitofp %109 : vector<16x1xi32> to vector<16x1xf32>
    %c4_i32 = arith.constant 4 : i32
    %111 = vector.broadcast %c4_i32 : i32 to vector<16x1xi32>
    %112 = arith.addi %33, %111 : vector<16x1xi32>
    %c0_i32_36 = arith.constant 0 : i32
    %113 = vector.broadcast %c0_i32_36 : i32 to vector<16x1xi32>
    %114 = arith.cmpi sge, %112, %113 : vector<16x1xi32>
    %c4_i32_37 = arith.constant 4 : i32
    %115 = vector.broadcast %c4_i32_37 : i32 to vector<16x1xi32>
    %116 = arith.addi %33, %115 : vector<16x1xi32>
    %c16_i32_38 = arith.constant 16 : i32
    %117 = vector.broadcast %c16_i32_38 : i32 to vector<16x1xi32>
    %118 = arith.cmpi slt, %116, %117 : vector<16x1xi32>
    %119 = arith.andi %114, %118 : vector<16x1xi1>
    %120 = arith.extui %119 : vector<16x1xi1> to vector<16x1xi32>
    %121 = arith.sitofp %120 : vector<16x1xi32> to vector<16x1xf32>
    %c0_39 = arith.constant 0 : index
    %c0_40 = arith.constant 0 : index
    %c0_41 = arith.constant 0 : index
    %122 = vector.load %arg7[%c0_39, %c0_40, %c0_41] : memref<2x32x64xbf16, #tpu.memory_space<vmem>>, vector<1x32x64xbf16>
    %123 = vector.shape_cast %122 : vector<1x32x64xbf16> to vector<32x64xbf16>
    %124 = arith.truncf %30 : vector<16x32xf32> to vector<16x32xbf16>
    %cst_42 = arith.constant dense<0.000000e+00> : vector<16x64xf32>
    %125 = tpu.matmul %124, %123, %cst_42 {dimension_numbers = #tpu.dot_dimension_numbers<[1], [0], [0], [1], [0, 0, 1, 1], [], []>} : vector<16x32xbf16>, vector<32x64xbf16>, vector<16x64xf32> -> vector<16x64xf32>
    %c0_43 = arith.constant 0 : index
    %c0_44 = arith.constant 0 : index
    %c0_45 = arith.constant 0 : index
    %126 = vector.load %arg8[%c0_43, %c0_44, %c0_45] : memref<2x1x64xf32, #tpu.memory_space<vmem>>, vector<1x1x64xf32>
    %127 = vector.shape_cast %126 : vector<1x1x64xf32> to vector<1x64xf32>
    %128 = vector.broadcast %127 : vector<1x64xf32> to vector<16x64xf32>
    %129 = arith.addf %125, %128 : vector<16x64xf32>
    %130 = vector.extract_strided_slice %129 {offsets = [0, 0], sizes = [16, 16], strides = [1, 1]} : vector<16x64xf32> to vector<16x16xf32>
    %131 = vector.extract_strided_slice %129 {offsets = [0, 16], sizes = [16, 16], strides = [1, 1]} : vector<16x64xf32> to vector<16x16xf32>
    %132 = vector.extract_strided_slice %129 {offsets = [0, 32], sizes = [16, 16], strides = [1, 1]} : vector<16x64xf32> to vector<16x16xf32>
    %133 = vector.extract_strided_slice %129 {offsets = [0, 48], sizes = [16, 16], strides = [1, 1]} : vector<16x64xf32> to vector<16x16xf32>
    %c0_46 = arith.constant 0 : index
    %c0_47 = arith.constant 0 : index
    %c0_48 = arith.constant 0 : index
    %134 = vector.load %arg9[%c0_46, %c0_47, %c0_48] : memref<2x9x32xf32, #tpu.memory_space<vmem>>, vector<1x9x32xf32>
    %135 = vector.shape_cast %134 : vector<1x9x32xf32> to vector<9x32xf32>
    %cst_49 = arith.constant 0.000000e+00 : f32
    %136 = vector.broadcast %cst_49 : f32 to vector<16x32xf32>
    %c4_i32_50 = arith.constant 4 : i32
    %137 = tpu.dynamic_rotate %30 by %c4_i32_50 dim 0 : vector<16x32xf32>, i32 -> vector<16x32xf32>
    %138 = vector.broadcast %44 : vector<16x1xf32> to vector<16x32xf32>
    %139 = arith.mulf %137, %138 : vector<16x32xf32>
    %140 = vector.extract_strided_slice %135 {offsets = [0, 0], sizes = [1, 32], strides = [1, 1]} : vector<9x32xf32> to vector<1x32xf32>
    %141 = vector.broadcast %140 : vector<1x32xf32> to vector<16x32xf32>
    %142 = arith.mulf %139, %141 : vector<16x32xf32>
    %143 = arith.addf %136, %142 : vector<16x32xf32>
    %c3_i32_51 = arith.constant 3 : i32
    %144 = tpu.dynamic_rotate %30 by %c3_i32_51 dim 0 : vector<16x32xf32>, i32 -> vector<16x32xf32>
    %145 = vector.broadcast %55 : vector<16x1xf32> to vector<16x32xf32>
    %146 = arith.mulf %144, %145 : vector<16x32xf32>
    %147 = vector.extract_strided_slice %135 {offsets = [1, 0], sizes = [1, 32], strides = [1, 1]} : vector<9x32xf32> to vector<1x32xf32>
    %148 = vector.broadcast %147 : vector<1x32xf32> to vector<16x32xf32>
    %149 = arith.mulf %146, %148 : vector<16x32xf32>
    %150 = arith.addf %143, %149 : vector<16x32xf32>
    %c2_i32_52 = arith.constant 2 : i32
    %151 = tpu.dynamic_rotate %30 by %c2_i32_52 dim 0 : vector<16x32xf32>, i32 -> vector<16x32xf32>
    %152 = vector.broadcast %66 : vector<16x1xf32> to vector<16x32xf32>
    %153 = arith.mulf %151, %152 : vector<16x32xf32>
    %154 = vector.extract_strided_slice %135 {offsets = [2, 0], sizes = [1, 32], strides = [1, 1]} : vector<9x32xf32> to vector<1x32xf32>
    %155 = vector.broadcast %154 : vector<1x32xf32> to vector<16x32xf32>
    %156 = arith.mulf %153, %155 : vector<16x32xf32>
    %157 = arith.addf %150, %156 : vector<16x32xf32>
    %c1_i32_53 = arith.constant 1 : i32
    %158 = tpu.dynamic_rotate %30 by %c1_i32_53 dim 0 : vector<16x32xf32>, i32 -> vector<16x32xf32>
    %159 = vector.broadcast %77 : vector<16x1xf32> to vector<16x32xf32>
    %160 = arith.mulf %158, %159 : vector<16x32xf32>
    %161 = vector.extract_strided_slice %135 {offsets = [3, 0], sizes = [1, 32], strides = [1, 1]} : vector<9x32xf32> to vector<1x32xf32>
    %162 = vector.broadcast %161 : vector<1x32xf32> to vector<16x32xf32>
    %163 = arith.mulf %160, %162 : vector<16x32xf32>
    %164 = arith.addf %157, %163 : vector<16x32xf32>
    %165 = vector.extract_strided_slice %135 {offsets = [4, 0], sizes = [1, 32], strides = [1, 1]} : vector<9x32xf32> to vector<1x32xf32>
    %166 = vector.broadcast %165 : vector<1x32xf32> to vector<16x32xf32>
    %167 = arith.mulf %30, %166 : vector<16x32xf32>
    %168 = arith.addf %164, %167 : vector<16x32xf32>
    %c15_i32 = arith.constant 15 : i32
    %169 = tpu.dynamic_rotate %30 by %c15_i32 dim 0 : vector<16x32xf32>, i32 -> vector<16x32xf32>
    %170 = vector.broadcast %88 : vector<16x1xf32> to vector<16x32xf32>
    %171 = arith.mulf %169, %170 : vector<16x32xf32>
    %172 = vector.extract_strided_slice %135 {offsets = [5, 0], sizes = [1, 32], strides = [1, 1]} : vector<9x32xf32> to vector<1x32xf32>
    %173 = vector.broadcast %172 : vector<1x32xf32> to vector<16x32xf32>
    %174 = arith.mulf %171, %173 : vector<16x32xf32>
    %175 = arith.addf %168, %174 : vector<16x32xf32>
    %c14_i32 = arith.constant 14 : i32
    %176 = tpu.dynamic_rotate %30 by %c14_i32 dim 0 : vector<16x32xf32>, i32 -> vector<16x32xf32>
    %177 = vector.broadcast %99 : vector<16x1xf32> to vector<16x32xf32>
    %178 = arith.mulf %176, %177 : vector<16x32xf32>
    %179 = vector.extract_strided_slice %135 {offsets = [6, 0], sizes = [1, 32], strides = [1, 1]} : vector<9x32xf32> to vector<1x32xf32>
    %180 = vector.broadcast %179 : vector<1x32xf32> to vector<16x32xf32>
    %181 = arith.mulf %178, %180 : vector<16x32xf32>
    %182 = arith.addf %175, %181 : vector<16x32xf32>
    %c13_i32 = arith.constant 13 : i32
    %183 = tpu.dynamic_rotate %30 by %c13_i32 dim 0 : vector<16x32xf32>, i32 -> vector<16x32xf32>
    %184 = vector.broadcast %110 : vector<16x1xf32> to vector<16x32xf32>
    %185 = arith.mulf %183, %184 : vector<16x32xf32>
    %186 = vector.extract_strided_slice %135 {offsets = [7, 0], sizes = [1, 32], strides = [1, 1]} : vector<9x32xf32> to vector<1x32xf32>
    %187 = vector.broadcast %186 : vector<1x32xf32> to vector<16x32xf32>
    %188 = arith.mulf %185, %187 : vector<16x32xf32>
    %189 = arith.addf %182, %188 : vector<16x32xf32>
    %c12_i32 = arith.constant 12 : i32
    %190 = tpu.dynamic_rotate %30 by %c12_i32 dim 0 : vector<16x32xf32>, i32 -> vector<16x32xf32>
    %191 = vector.broadcast %121 : vector<16x1xf32> to vector<16x32xf32>
    %192 = arith.mulf %190, %191 : vector<16x32xf32>
    %193 = vector.extract_strided_slice %135 {offsets = [8, 0], sizes = [1, 32], strides = [1, 1]} : vector<9x32xf32> to vector<1x32xf32>
    %194 = vector.broadcast %193 : vector<1x32xf32> to vector<16x32xf32>
    %195 = arith.mulf %192, %194 : vector<16x32xf32>
    %196 = arith.addf %189, %195 : vector<16x32xf32>
    %c0_54 = arith.constant 0 : index
    %c0_55 = arith.constant 0 : index
    %c0_56 = arith.constant 0 : index
    %197 = vector.load %arg10[%c0_54, %c0_55, %c0_56] : memref<2x32x16xbf16, #tpu.memory_space<vmem>>, vector<1x32x16xbf16>
    %198 = vector.shape_cast %197 : vector<1x32x16xbf16> to vector<32x16xbf16>
    %199 = arith.truncf %196 : vector<16x32xf32> to vector<16x32xbf16>
    %cst_57 = arith.constant dense<0.000000e+00> : vector<16x16xf32>
    %200 = tpu.matmul %199, %198, %cst_57 {dimension_numbers = #tpu.dot_dimension_numbers<[1], [0], [0], [1], [0, 0, 1, 1], [], []>} : vector<16x32xbf16>, vector<32x16xbf16>, vector<16x16xf32> -> vector<16x16xf32>
    %c0_58 = arith.constant 0 : index
    %c0_59 = arith.constant 0 : index
    %c0_60 = arith.constant 0 : index
    %201 = vector.load %arg11[%c0_58, %c0_59, %c0_60] : memref<2x1x16xf32, #tpu.memory_space<vmem>>, vector<1x1x16xf32>
    %202 = vector.shape_cast %201 : vector<1x1x16xf32> to vector<1x16xf32>
    %203 = vector.broadcast %202 : vector<1x16xf32> to vector<16x16xf32>
    %204 = arith.addf %200, %203 : vector<16x16xf32>
    %205 = arith.mulf %204, %130 : vector<16x16xf32>
    %c0_61 = arith.constant 0 : index
    %c0_62 = arith.constant 0 : index
    %c0_63 = arith.constant 0 : index
    %206 = vector.load %arg12[%c0_61, %c0_62, %c0_63] : memref<2x16x18xbf16, #tpu.memory_space<vmem>>, vector<1x16x18xbf16>
    %207 = vector.shape_cast %206 : vector<1x16x18xbf16> to vector<16x18xbf16>
    %208 = arith.truncf %205 : vector<16x16xf32> to vector<16x16xbf16>
    %cst_64 = arith.constant dense<0.000000e+00> : vector<16x18xf32>
    %209 = tpu.matmul %208, %207, %cst_64 {dimension_numbers = #tpu.dot_dimension_numbers<[1], [0], [0], [1], [0, 0, 1, 1], [], []>} : vector<16x16xbf16>, vector<16x18xbf16>, vector<16x18xf32> -> vector<16x18xf32>
    %c0_65 = arith.constant 0 : index
    %c0_66 = arith.constant 0 : index
    %c0_67 = arith.constant 0 : index
    %210 = vector.load %arg13[%c0_65, %c0_66, %c0_67] : memref<2x1x18xf32, #tpu.memory_space<vmem>>, vector<1x1x18xf32>
    %211 = vector.shape_cast %210 : vector<1x1x18xf32> to vector<1x18xf32>
    %212 = vector.broadcast %211 : vector<1x18xf32> to vector<16x18xf32>
    %213 = arith.addf %209, %212 : vector<16x18xf32>
    %c4_i32_68 = arith.constant 4 : i32
    %214 = tpu.dynamic_rotate %133 by %c4_i32_68 dim 0 : vector<16x16xf32>, i32 -> vector<16x16xf32>
    %215 = vector.broadcast %44 : vector<16x1xf32> to vector<16x16xf32>
    %216 = arith.mulf %214, %215 : vector<16x16xf32>
    %c3_i32_69 = arith.constant 3 : i32
    %217 = tpu.dynamic_rotate %133 by %c3_i32_69 dim 0 : vector<16x16xf32>, i32 -> vector<16x16xf32>
    %218 = vector.broadcast %55 : vector<16x1xf32> to vector<16x16xf32>
    %219 = arith.mulf %217, %218 : vector<16x16xf32>
    %c2_i32_70 = arith.constant 2 : i32
    %220 = tpu.dynamic_rotate %133 by %c2_i32_70 dim 0 : vector<16x16xf32>, i32 -> vector<16x16xf32>
    %221 = vector.broadcast %66 : vector<16x1xf32> to vector<16x16xf32>
    %222 = arith.mulf %220, %221 : vector<16x16xf32>
    %c1_i32_71 = arith.constant 1 : i32
    %223 = tpu.dynamic_rotate %133 by %c1_i32_71 dim 0 : vector<16x16xf32>, i32 -> vector<16x16xf32>
    %224 = vector.broadcast %77 : vector<16x1xf32> to vector<16x16xf32>
    %225 = arith.mulf %223, %224 : vector<16x16xf32>
    %c15_i32_72 = arith.constant 15 : i32
    %226 = tpu.dynamic_rotate %133 by %c15_i32_72 dim 0 : vector<16x16xf32>, i32 -> vector<16x16xf32>
    %227 = vector.broadcast %88 : vector<16x1xf32> to vector<16x16xf32>
    %228 = arith.mulf %226, %227 : vector<16x16xf32>
    %c14_i32_73 = arith.constant 14 : i32
    %229 = tpu.dynamic_rotate %133 by %c14_i32_73 dim 0 : vector<16x16xf32>, i32 -> vector<16x16xf32>
    %230 = vector.broadcast %99 : vector<16x1xf32> to vector<16x16xf32>
    %231 = arith.mulf %229, %230 : vector<16x16xf32>
    %c13_i32_74 = arith.constant 13 : i32
    %232 = tpu.dynamic_rotate %133 by %c13_i32_74 dim 0 : vector<16x16xf32>, i32 -> vector<16x16xf32>
    %233 = vector.broadcast %110 : vector<16x1xf32> to vector<16x16xf32>
    %234 = arith.mulf %232, %233 : vector<16x16xf32>
    %c12_i32_75 = arith.constant 12 : i32
    %235 = tpu.dynamic_rotate %133 by %c12_i32_75 dim 0 : vector<16x16xf32>, i32 -> vector<16x16xf32>
    %236 = vector.broadcast %121 : vector<16x1xf32> to vector<16x16xf32>
    %237 = arith.mulf %235, %236 : vector<16x16xf32>
    %238 = vector.extract_strided_slice %130 {offsets = [0, 0], sizes = [16, 8], strides = [1, 1]} : vector<16x16xf32> to vector<16x8xf32>
    %239 = vector.extract_strided_slice %131 {offsets = [0, 0], sizes = [16, 8], strides = [1, 1]} : vector<16x16xf32> to vector<16x8xf32>
    %240 = vector.extract_strided_slice %132 {offsets = [0, 0], sizes = [16, 8], strides = [1, 1]} : vector<16x16xf32> to vector<16x8xf32>
    %cst_76 = arith.constant dense<0.000000e+00> : vector<16x16xf32>
    %241 = tpu.matmul %238, %239, %cst_76 {dimension_numbers = #tpu.dot_dimension_numbers<[1], [1], [0], [0], [0, 0, 1, 0], [], []>} : vector<16x8xf32>, vector<16x8xf32>, vector<16x16xf32> -> vector<16x16xf32>
    %cst_77 = arith.constant 0.353553385 : f32
    %242 = vector.broadcast %cst_77 : f32 to vector<16x16xf32>
    %243 = arith.mulf %241, %242 : vector<16x16xf32>
    %244 = vector.broadcast %32 : vector<1x16xf32> to vector<16x16xf32>
    %245 = arith.addf %243, %244 : vector<16x16xf32>
    %cst_78 = arith.constant dense<0xFF800000> : vector<16xf32>
    %246 = vector.multi_reduction <maximumf>, %245, %cst_78 [1] : vector<16x16xf32> to vector<16xf32>
    %247 = vector.shape_cast %246 : vector<16xf32> to vector<16x1xf32>
    %248 = vector.broadcast %247 : vector<16x1xf32> to vector<16x16xf32>
    %249 = arith.subf %245, %248 : vector<16x16xf32>
    %250 = math.exp %249 : vector<16x16xf32>
    %cst_79 = arith.constant dense<0.000000e+00> : vector<16xf32>
    %251 = vector.multi_reduction <add>, %250, %cst_79 [1] : vector<16x16xf32> to vector<16xf32>
    %252 = vector.shape_cast %251 : vector<16xf32> to vector<16x1xf32>
    %253 = vector.broadcast %252 : vector<16x1xf32> to vector<16x16xf32>
    %254 = arith.divf %250, %253 : vector<16x16xf32>
    %cst_80 = arith.constant dense<0.000000e+00> : vector<16x8xf32>
    %255 = tpu.matmul %254, %240, %cst_80 {dimension_numbers = #tpu.dot_dimension_numbers<[1], [0], [0], [1], [0, 0, 1, 1], [], []>} : vector<16x16xf32>, vector<16x8xf32>, vector<16x8xf32> -> vector<16x8xf32>
    %256 = vector.extract_strided_slice %213 {offsets = [0, 0], sizes = [16, 9], strides = [1, 1]} : vector<16x18xf32> to vector<16x9xf32>
    %cst_81 = arith.constant dense<0xFF800000> : vector<16xf32>
    %257 = vector.multi_reduction <maximumf>, %256, %cst_81 [1] : vector<16x9xf32> to vector<16xf32>
    %258 = vector.shape_cast %257 : vector<16xf32> to vector<16x1xf32>
    %259 = vector.broadcast %258 : vector<16x1xf32> to vector<16x9xf32>
    %260 = arith.subf %256, %259 : vector<16x9xf32>
    %261 = math.exp %260 : vector<16x9xf32>
    %cst_82 = arith.constant dense<0.000000e+00> : vector<16xf32>
    %262 = vector.multi_reduction <add>, %261, %cst_82 [1] : vector<16x9xf32> to vector<16xf32>
    %263 = vector.shape_cast %262 : vector<16xf32> to vector<16x1xf32>
    %264 = vector.broadcast %263 : vector<16x1xf32> to vector<16x9xf32>
    %265 = arith.divf %261, %264 : vector<16x9xf32>
    %cst_83 = arith.constant 0.000000e+00 : f32
    %266 = vector.broadcast %cst_83 : f32 to vector<16x8xf32>
    %267 = vector.extract_strided_slice %216 {offsets = [0, 0], sizes = [16, 8], strides = [1, 1]} : vector<16x16xf32> to vector<16x8xf32>
    %268 = vector.extract_strided_slice %265 {offsets = [0, 0], sizes = [16, 1], strides = [1, 1]} : vector<16x9xf32> to vector<16x1xf32>
    %269 = vector.broadcast %268 : vector<16x1xf32> to vector<16x8xf32>
    %270 = arith.mulf %267, %269 : vector<16x8xf32>
    %271 = arith.addf %266, %270 : vector<16x8xf32>
    %272 = vector.extract_strided_slice %219 {offsets = [0, 0], sizes = [16, 8], strides = [1, 1]} : vector<16x16xf32> to vector<16x8xf32>
    %273 = vector.extract_strided_slice %265 {offsets = [0, 1], sizes = [16, 1], strides = [1, 1]} : vector<16x9xf32> to vector<16x1xf32>
    %274 = vector.broadcast %273 : vector<16x1xf32> to vector<16x8xf32>
    %275 = arith.mulf %272, %274 : vector<16x8xf32>
    %276 = arith.addf %271, %275 : vector<16x8xf32>
    %277 = vector.extract_strided_slice %222 {offsets = [0, 0], sizes = [16, 8], strides = [1, 1]} : vector<16x16xf32> to vector<16x8xf32>
    %278 = vector.extract_strided_slice %265 {offsets = [0, 2], sizes = [16, 1], strides = [1, 1]} : vector<16x9xf32> to vector<16x1xf32>
    %279 = vector.broadcast %278 : vector<16x1xf32> to vector<16x8xf32>
    %280 = arith.mulf %277, %279 : vector<16x8xf32>
    %281 = arith.addf %276, %280 : vector<16x8xf32>
    %282 = vector.extract_strided_slice %225 {offsets = [0, 0], sizes = [16, 8], strides = [1, 1]} : vector<16x16xf32> to vector<16x8xf32>
    %283 = vector.extract_strided_slice %265 {offsets = [0, 3], sizes = [16, 1], strides = [1, 1]} : vector<16x9xf32> to vector<16x1xf32>
    %284 = vector.broadcast %283 : vector<16x1xf32> to vector<16x8xf32>
    %285 = arith.mulf %282, %284 : vector<16x8xf32>
    %286 = arith.addf %281, %285 : vector<16x8xf32>
    %287 = vector.extract_strided_slice %133 {offsets = [0, 0], sizes = [16, 8], strides = [1, 1]} : vector<16x16xf32> to vector<16x8xf32>
    %288 = vector.extract_strided_slice %265 {offsets = [0, 4], sizes = [16, 1], strides = [1, 1]} : vector<16x9xf32> to vector<16x1xf32>
    %289 = vector.broadcast %288 : vector<16x1xf32> to vector<16x8xf32>
    %290 = arith.mulf %287, %289 : vector<16x8xf32>
    %291 = arith.addf %286, %290 : vector<16x8xf32>
    %292 = vector.extract_strided_slice %228 {offsets = [0, 0], sizes = [16, 8], strides = [1, 1]} : vector<16x16xf32> to vector<16x8xf32>
    %293 = vector.extract_strided_slice %265 {offsets = [0, 5], sizes = [16, 1], strides = [1, 1]} : vector<16x9xf32> to vector<16x1xf32>
    %294 = vector.broadcast %293 : vector<16x1xf32> to vector<16x8xf32>
    %295 = arith.mulf %292, %294 : vector<16x8xf32>
    %296 = arith.addf %291, %295 : vector<16x8xf32>
    %297 = vector.extract_strided_slice %231 {offsets = [0, 0], sizes = [16, 8], strides = [1, 1]} : vector<16x16xf32> to vector<16x8xf32>
    %298 = vector.extract_strided_slice %265 {offsets = [0, 6], sizes = [16, 1], strides = [1, 1]} : vector<16x9xf32> to vector<16x1xf32>
    %299 = vector.broadcast %298 : vector<16x1xf32> to vector<16x8xf32>
    %300 = arith.mulf %297, %299 : vector<16x8xf32>
    %301 = arith.addf %296, %300 : vector<16x8xf32>
    %302 = vector.extract_strided_slice %234 {offsets = [0, 0], sizes = [16, 8], strides = [1, 1]} : vector<16x16xf32> to vector<16x8xf32>
    %303 = vector.extract_strided_slice %265 {offsets = [0, 7], sizes = [16, 1], strides = [1, 1]} : vector<16x9xf32> to vector<16x1xf32>
    %304 = vector.broadcast %303 : vector<16x1xf32> to vector<16x8xf32>
    %305 = arith.mulf %302, %304 : vector<16x8xf32>
    %306 = arith.addf %301, %305 : vector<16x8xf32>
    %307 = vector.extract_strided_slice %237 {offsets = [0, 0], sizes = [16, 8], strides = [1, 1]} : vector<16x16xf32> to vector<16x8xf32>
    %308 = vector.extract_strided_slice %265 {offsets = [0, 8], sizes = [16, 1], strides = [1, 1]} : vector<16x9xf32> to vector<16x1xf32>
    %309 = vector.broadcast %308 : vector<16x1xf32> to vector<16x8xf32>
    %310 = arith.mulf %307, %309 : vector<16x8xf32>
    %311 = arith.addf %306, %310 : vector<16x8xf32>
    %312 = vector.extract_strided_slice %130 {offsets = [0, 8], sizes = [16, 8], strides = [1, 1]} : vector<16x16xf32> to vector<16x8xf32>
    %313 = vector.extract_strided_slice %131 {offsets = [0, 8], sizes = [16, 8], strides = [1, 1]} : vector<16x16xf32> to vector<16x8xf32>
    %314 = vector.extract_strided_slice %132 {offsets = [0, 8], sizes = [16, 8], strides = [1, 1]} : vector<16x16xf32> to vector<16x8xf32>
    %cst_84 = arith.constant dense<0.000000e+00> : vector<16x16xf32>
    %315 = tpu.matmul %312, %313, %cst_84 {dimension_numbers = #tpu.dot_dimension_numbers<[1], [1], [0], [0], [0, 0, 1, 0], [], []>} : vector<16x8xf32>, vector<16x8xf32>, vector<16x16xf32> -> vector<16x16xf32>
    %cst_85 = arith.constant 0.353553385 : f32
    %316 = vector.broadcast %cst_85 : f32 to vector<16x16xf32>
    %317 = arith.mulf %315, %316 : vector<16x16xf32>
    %318 = vector.broadcast %32 : vector<1x16xf32> to vector<16x16xf32>
    %319 = arith.addf %317, %318 : vector<16x16xf32>
    %cst_86 = arith.constant dense<0xFF800000> : vector<16xf32>
    %320 = vector.multi_reduction <maximumf>, %319, %cst_86 [1] : vector<16x16xf32> to vector<16xf32>
    %321 = vector.shape_cast %320 : vector<16xf32> to vector<16x1xf32>
    %322 = vector.broadcast %321 : vector<16x1xf32> to vector<16x16xf32>
    %323 = arith.subf %319, %322 : vector<16x16xf32>
    %324 = math.exp %323 : vector<16x16xf32>
    %cst_87 = arith.constant dense<0.000000e+00> : vector<16xf32>
    %325 = vector.multi_reduction <add>, %324, %cst_87 [1] : vector<16x16xf32> to vector<16xf32>
    %326 = vector.shape_cast %325 : vector<16xf32> to vector<16x1xf32>
    %327 = vector.broadcast %326 : vector<16x1xf32> to vector<16x16xf32>
    %328 = arith.divf %324, %327 : vector<16x16xf32>
    %cst_88 = arith.constant dense<0.000000e+00> : vector<16x8xf32>
    %329 = tpu.matmul %328, %314, %cst_88 {dimension_numbers = #tpu.dot_dimension_numbers<[1], [0], [0], [1], [0, 0, 1, 1], [], []>} : vector<16x16xf32>, vector<16x8xf32>, vector<16x8xf32> -> vector<16x8xf32>
    %330 = vector.extract_strided_slice %213 {offsets = [0, 9], sizes = [16, 9], strides = [1, 1]} : vector<16x18xf32> to vector<16x9xf32>
    %cst_89 = arith.constant dense<0xFF800000> : vector<16xf32>
    %331 = vector.multi_reduction <maximumf>, %330, %cst_89 [1] : vector<16x9xf32> to vector<16xf32>
    %332 = vector.shape_cast %331 : vector<16xf32> to vector<16x1xf32>
    %333 = vector.broadcast %332 : vector<16x1xf32> to vector<16x9xf32>
    %334 = arith.subf %330, %333 : vector<16x9xf32>
    %335 = math.exp %334 : vector<16x9xf32>
    %cst_90 = arith.constant dense<0.000000e+00> : vector<16xf32>
    %336 = vector.multi_reduction <add>, %335, %cst_90 [1] : vector<16x9xf32> to vector<16xf32>
    %337 = vector.shape_cast %336 : vector<16xf32> to vector<16x1xf32>
    %338 = vector.broadcast %337 : vector<16x1xf32> to vector<16x9xf32>
    %339 = arith.divf %335, %338 : vector<16x9xf32>
    %cst_91 = arith.constant 0.000000e+00 : f32
    %340 = vector.broadcast %cst_91 : f32 to vector<16x8xf32>
    %341 = vector.extract_strided_slice %216 {offsets = [0, 8], sizes = [16, 8], strides = [1, 1]} : vector<16x16xf32> to vector<16x8xf32>
    %342 = vector.extract_strided_slice %339 {offsets = [0, 0], sizes = [16, 1], strides = [1, 1]} : vector<16x9xf32> to vector<16x1xf32>
    %343 = vector.broadcast %342 : vector<16x1xf32> to vector<16x8xf32>
    %344 = arith.mulf %341, %343 : vector<16x8xf32>
    %345 = arith.addf %340, %344 : vector<16x8xf32>
    %346 = vector.extract_strided_slice %219 {offsets = [0, 8], sizes = [16, 8], strides = [1, 1]} : vector<16x16xf32> to vector<16x8xf32>
    %347 = vector.extract_strided_slice %339 {offsets = [0, 1], sizes = [16, 1], strides = [1, 1]} : vector<16x9xf32> to vector<16x1xf32>
    %348 = vector.broadcast %347 : vector<16x1xf32> to vector<16x8xf32>
    %349 = arith.mulf %346, %348 : vector<16x8xf32>
    %350 = arith.addf %345, %349 : vector<16x8xf32>
    %351 = vector.extract_strided_slice %222 {offsets = [0, 8], sizes = [16, 8], strides = [1, 1]} : vector<16x16xf32> to vector<16x8xf32>
    %352 = vector.extract_strided_slice %339 {offsets = [0, 2], sizes = [16, 1], strides = [1, 1]} : vector<16x9xf32> to vector<16x1xf32>
    %353 = vector.broadcast %352 : vector<16x1xf32> to vector<16x8xf32>
    %354 = arith.mulf %351, %353 : vector<16x8xf32>
    %355 = arith.addf %350, %354 : vector<16x8xf32>
    %356 = vector.extract_strided_slice %225 {offsets = [0, 8], sizes = [16, 8], strides = [1, 1]} : vector<16x16xf32> to vector<16x8xf32>
    %357 = vector.extract_strided_slice %339 {offsets = [0, 3], sizes = [16, 1], strides = [1, 1]} : vector<16x9xf32> to vector<16x1xf32>
    %358 = vector.broadcast %357 : vector<16x1xf32> to vector<16x8xf32>
    %359 = arith.mulf %356, %358 : vector<16x8xf32>
    %360 = arith.addf %355, %359 : vector<16x8xf32>
    %361 = vector.extract_strided_slice %133 {offsets = [0, 8], sizes = [16, 8], strides = [1, 1]} : vector<16x16xf32> to vector<16x8xf32>
    %362 = vector.extract_strided_slice %339 {offsets = [0, 4], sizes = [16, 1], strides = [1, 1]} : vector<16x9xf32> to vector<16x1xf32>
    %363 = vector.broadcast %362 : vector<16x1xf32> to vector<16x8xf32>
    %364 = arith.mulf %361, %363 : vector<16x8xf32>
    %365 = arith.addf %360, %364 : vector<16x8xf32>
    %366 = vector.extract_strided_slice %228 {offsets = [0, 8], sizes = [16, 8], strides = [1, 1]} : vector<16x16xf32> to vector<16x8xf32>
    %367 = vector.extract_strided_slice %339 {offsets = [0, 5], sizes = [16, 1], strides = [1, 1]} : vector<16x9xf32> to vector<16x1xf32>
    %368 = vector.broadcast %367 : vector<16x1xf32> to vector<16x8xf32>
    %369 = arith.mulf %366, %368 : vector<16x8xf32>
    %370 = arith.addf %365, %369 : vector<16x8xf32>
    %371 = vector.extract_strided_slice %231 {offsets = [0, 8], sizes = [16, 8], strides = [1, 1]} : vector<16x16xf32> to vector<16x8xf32>
    %372 = vector.extract_strided_slice %339 {offsets = [0, 6], sizes = [16, 1], strides = [1, 1]} : vector<16x9xf32> to vector<16x1xf32>
    %373 = vector.broadcast %372 : vector<16x1xf32> to vector<16x8xf32>
    %374 = arith.mulf %371, %373 : vector<16x8xf32>
    %375 = arith.addf %370, %374 : vector<16x8xf32>
    %376 = vector.extract_strided_slice %234 {offsets = [0, 8], sizes = [16, 8], strides = [1, 1]} : vector<16x16xf32> to vector<16x8xf32>
    %377 = vector.extract_strided_slice %339 {offsets = [0, 7], sizes = [16, 1], strides = [1, 1]} : vector<16x9xf32> to vector<16x1xf32>
    %378 = vector.broadcast %377 : vector<16x1xf32> to vector<16x8xf32>
    %379 = arith.mulf %376, %378 : vector<16x8xf32>
    %380 = arith.addf %375, %379 : vector<16x8xf32>
    %381 = vector.extract_strided_slice %237 {offsets = [0, 8], sizes = [16, 8], strides = [1, 1]} : vector<16x16xf32> to vector<16x8xf32>
    %382 = vector.extract_strided_slice %339 {offsets = [0, 8], sizes = [16, 1], strides = [1, 1]} : vector<16x9xf32> to vector<16x1xf32>
    %383 = vector.broadcast %382 : vector<16x1xf32> to vector<16x8xf32>
    %384 = arith.mulf %381, %383 : vector<16x8xf32>
    %385 = arith.addf %380, %384 : vector<16x8xf32>
    %386 = tpu.concatenate %255, %329, %311, %385 in 1 : vector<16x8xf32>, vector<16x8xf32>, vector<16x8xf32>, vector<16x8xf32> -> vector<16x32xf32>
    %c0_92 = arith.constant 0 : index
    %c0_93 = arith.constant 0 : index
    %c0_94 = arith.constant 0 : index
    %387 = vector.load %arg14[%c0_92, %c0_93, %c0_94] : memref<2x32x32xbf16, #tpu.memory_space<vmem>>, vector<1x32x32xbf16>
    %388 = vector.shape_cast %387 : vector<1x32x32xbf16> to vector<32x32xbf16>
    %389 = arith.truncf %386 : vector<16x32xf32> to vector<16x32xbf16>
    %cst_95 = arith.constant dense<0.000000e+00> : vector<16x32xf32>
    %390 = tpu.matmul %389, %388, %cst_95 {dimension_numbers = #tpu.dot_dimension_numbers<[1], [0], [0], [1], [0, 0, 1, 1], [], []>} : vector<16x32xbf16>, vector<32x32xbf16>, vector<16x32xf32> -> vector<16x32xf32>
    %c0_96 = arith.constant 0 : index
    %c0_97 = arith.constant 0 : index
    %c0_98 = arith.constant 0 : index
    %391 = vector.load %arg15[%c0_96, %c0_97, %c0_98] : memref<2x1x32xf32, #tpu.memory_space<vmem>>, vector<1x1x32xf32>
    %392 = vector.shape_cast %391 : vector<1x1x32xf32> to vector<1x32xf32>
    %393 = vector.broadcast %392 : vector<1x32xf32> to vector<16x32xf32>
    %394 = arith.addf %390, %393 : vector<16x32xf32>
    %395 = arith.addf %394, %30 : vector<16x32xf32>
    %c0_99 = arith.constant 0 : index
    %c0_100 = arith.constant 0 : index
    %c0_101 = arith.constant 0 : index
    %396 = vector.load %arg16[%c0_99, %c0_100, %c0_101] : memref<2x1x32xf32, #tpu.memory_space<vmem>>, vector<1x1x32xf32>
    %397 = vector.shape_cast %396 : vector<1x1x32xf32> to vector<1x32xf32>
    %c0_102 = arith.constant 0 : index
    %c0_103 = arith.constant 0 : index
    %c0_104 = arith.constant 0 : index
    %398 = vector.load %arg17[%c0_102, %c0_103, %c0_104] : memref<2x1x32xf32, #tpu.memory_space<vmem>>, vector<1x1x32xf32>
    %399 = vector.shape_cast %398 : vector<1x1x32xf32> to vector<1x32xf32>
    %cst_105 = arith.constant dense<0.000000e+00> : vector<16xf32>
    %400 = vector.multi_reduction <add>, %395, %cst_105 [1] : vector<16x32xf32> to vector<16xf32>
    %401 = vector.shape_cast %400 : vector<16xf32> to vector<16x1xf32>
    %cst_106 = arith.constant 3.200000e+01 : f32
    %402 = vector.broadcast %cst_106 : f32 to vector<16x1xf32>
    %403 = arith.divf %401, %402 : vector<16x1xf32>
    %404 = vector.broadcast %403 : vector<16x1xf32> to vector<16x32xf32>
    %405 = arith.subf %395, %404 : vector<16x32xf32>
    %406 = arith.mulf %405, %405 : vector<16x32xf32>
    %cst_107 = arith.constant dense<0.000000e+00> : vector<16xf32>
    %407 = vector.multi_reduction <add>, %406, %cst_107 [1] : vector<16x32xf32> to vector<16xf32>
    %408 = vector.shape_cast %407 : vector<16xf32> to vector<16x1xf32>
    %cst_108 = arith.constant 3.200000e+01 : f32
    %409 = vector.broadcast %cst_108 : f32 to vector<16x1xf32>
    %410 = arith.divf %408, %409 : vector<16x1xf32>
    %411 = vector.broadcast %403 : vector<16x1xf32> to vector<16x32xf32>
    %412 = arith.subf %395, %411 : vector<16x32xf32>
    %cst_109 = arith.constant 9.99999996E-13 : f32
    %413 = vector.broadcast %cst_109 : f32 to vector<16x1xf32>
    %414 = arith.addf %410, %413 : vector<16x1xf32>
    %415 = math.rsqrt %414 : vector<16x1xf32>
    %416 = vector.broadcast %415 : vector<16x1xf32> to vector<16x32xf32>
    %417 = arith.mulf %412, %416 : vector<16x32xf32>
    %418 = vector.broadcast %397 : vector<1x32xf32> to vector<16x32xf32>
    %419 = arith.mulf %417, %418 : vector<16x32xf32>
    %420 = vector.broadcast %399 : vector<1x32xf32> to vector<16x32xf32>
    %421 = arith.addf %419, %420 : vector<16x32xf32>
    %c0_110 = arith.constant 0 : index
    %c0_111 = arith.constant 0 : index
    %c0_112 = arith.constant 0 : index
    %422 = vector.load %arg18[%c0_110, %c0_111, %c0_112] : memref<2x32x64xbf16, #tpu.memory_space<vmem>>, vector<1x32x64xbf16>
    %423 = vector.shape_cast %422 : vector<1x32x64xbf16> to vector<32x64xbf16>
    %424 = arith.truncf %421 : vector<16x32xf32> to vector<16x32xbf16>
    %cst_113 = arith.constant dense<0.000000e+00> : vector<16x64xf32>
    %425 = tpu.matmul %424, %423, %cst_113 {dimension_numbers = #tpu.dot_dimension_numbers<[1], [0], [0], [1], [0, 0, 1, 1], [], []>} : vector<16x32xbf16>, vector<32x64xbf16>, vector<16x64xf32> -> vector<16x64xf32>
    %c0_114 = arith.constant 0 : index
    %c0_115 = arith.constant 0 : index
    %c0_116 = arith.constant 0 : index
    %426 = vector.load %arg19[%c0_114, %c0_115, %c0_116] : memref<2x1x64xf32, #tpu.memory_space<vmem>>, vector<1x1x64xf32>
    %427 = vector.shape_cast %426 : vector<1x1x64xf32> to vector<1x64xf32>
    %428 = vector.broadcast %427 : vector<1x64xf32> to vector<16x64xf32>
    %429 = arith.addf %425, %428 : vector<16x64xf32>
    %cst_117 = arith.constant 0.707106769 : f32
    %430 = vector.broadcast %cst_117 : f32 to vector<16x64xf32>
    %431 = arith.mulf %429, %430 : vector<16x64xf32>
    %cst_118 = arith.constant 0.000000e+00 : f32
    %432 = vector.broadcast %cst_118 : f32 to vector<16x64xf32>
    %433 = arith.cmpf oge, %431, %432 : vector<16x64xf32>
    %cst_119 = arith.constant 1.000000e+00 : f32
    %cst_120 = arith.constant -1.000000e+00 : f32
    %434 = vector.broadcast %cst_119 : f32 to vector<16x64xf32>
    %435 = vector.broadcast %cst_120 : f32 to vector<16x64xf32>
    %436 = arith.select %433, %434, %435 : vector<16x64xi1>, vector<16x64xf32>
    %437 = math.absf %431 : vector<16x64xf32>
    %cst_121 = arith.constant 0.327591091 : f32
    %438 = vector.broadcast %cst_121 : f32 to vector<16x64xf32>
    %439 = arith.mulf %438, %437 : vector<16x64xf32>
    %cst_122 = arith.constant 1.000000e+00 : f32
    %440 = vector.broadcast %cst_122 : f32 to vector<16x64xf32>
    %441 = arith.addf %440, %439 : vector<16x64xf32>
    %cst_123 = arith.constant 1.000000e+00 : f32
    %442 = vector.broadcast %cst_123 : f32 to vector<16x64xf32>
    %443 = arith.divf %442, %441 : vector<16x64xf32>
    %cst_124 = arith.constant 1.06140542 : f32
    %444 = vector.broadcast %cst_124 : f32 to vector<16x64xf32>
    %445 = arith.mulf %444, %443 : vector<16x64xf32>
    %cst_125 = arith.constant -1.45315206 : f32
    %446 = vector.broadcast %cst_125 : f32 to vector<16x64xf32>
    %447 = arith.addf %445, %446 : vector<16x64xf32>
    %448 = arith.mulf %447, %443 : vector<16x64xf32>
    %cst_126 = arith.constant 1.42141378 : f32
    %449 = vector.broadcast %cst_126 : f32 to vector<16x64xf32>
    %450 = arith.addf %448, %449 : vector<16x64xf32>
    %451 = arith.mulf %450, %443 : vector<16x64xf32>
    %cst_127 = arith.constant -0.284496725 : f32
    %452 = vector.broadcast %cst_127 : f32 to vector<16x64xf32>
    %453 = arith.addf %451, %452 : vector<16x64xf32>
    %454 = arith.mulf %453, %443 : vector<16x64xf32>
    %cst_128 = arith.constant 0.254829586 : f32
    %455 = vector.broadcast %cst_128 : f32 to vector<16x64xf32>
    %456 = arith.addf %454, %455 : vector<16x64xf32>
    %457 = arith.mulf %456, %443 : vector<16x64xf32>
    %cst_129 = arith.constant 0.000000e+00 : f32
    %458 = vector.broadcast %cst_129 : f32 to vector<16x64xf32>
    %459 = arith.subf %458, %437 : vector<16x64xf32>
    %460 = arith.mulf %459, %437 : vector<16x64xf32>
    %461 = math.exp %460 : vector<16x64xf32>
    %462 = arith.mulf %457, %461 : vector<16x64xf32>
    %cst_130 = arith.constant 1.000000e+00 : f32
    %463 = vector.broadcast %cst_130 : f32 to vector<16x64xf32>
    %464 = arith.subf %463, %462 : vector<16x64xf32>
    %465 = arith.mulf %436, %464 : vector<16x64xf32>
    %cst_131 = arith.constant 5.000000e-01 : f32
    %466 = vector.broadcast %cst_131 : f32 to vector<16x64xf32>
    %467 = arith.mulf %466, %429 : vector<16x64xf32>
    %cst_132 = arith.constant 1.000000e+00 : f32
    %468 = vector.broadcast %cst_132 : f32 to vector<16x64xf32>
    %469 = arith.addf %468, %465 : vector<16x64xf32>
    %470 = arith.mulf %467, %469 : vector<16x64xf32>
    %c0_133 = arith.constant 0 : index
    %c0_134 = arith.constant 0 : index
    %c0_135 = arith.constant 0 : index
    %471 = vector.load %arg20[%c0_133, %c0_134, %c0_135] : memref<2x64x32xbf16, #tpu.memory_space<vmem>>, vector<1x64x32xbf16>
    %472 = vector.shape_cast %471 : vector<1x64x32xbf16> to vector<64x32xbf16>
    %473 = arith.truncf %470 : vector<16x64xf32> to vector<16x64xbf16>
    %cst_136 = arith.constant dense<0.000000e+00> : vector<16x32xf32>
    %474 = tpu.matmul %473, %472, %cst_136 {dimension_numbers = #tpu.dot_dimension_numbers<[1], [0], [0], [1], [0, 0, 1, 1], [], []>} : vector<16x64xbf16>, vector<64x32xbf16>, vector<16x32xf32> -> vector<16x32xf32>
    %c0_137 = arith.constant 0 : index
    %c0_138 = arith.constant 0 : index
    %c0_139 = arith.constant 0 : index
    %475 = vector.load %arg21[%c0_137, %c0_138, %c0_139] : memref<2x1x32xf32, #tpu.memory_space<vmem>>, vector<1x1x32xf32>
    %476 = vector.shape_cast %475 : vector<1x1x32xf32> to vector<1x32xf32>
    %477 = vector.broadcast %476 : vector<1x32xf32> to vector<16x32xf32>
    %478 = arith.addf %474, %477 : vector<16x32xf32>
    %479 = arith.addf %478, %421 : vector<16x32xf32>
    %c0_140 = arith.constant 0 : index
    %c0_141 = arith.constant 0 : index
    %c0_142 = arith.constant 0 : index
    %480 = vector.load %arg22[%c0_140, %c0_141, %c0_142] : memref<2x1x32xf32, #tpu.memory_space<vmem>>, vector<1x1x32xf32>
    %481 = vector.shape_cast %480 : vector<1x1x32xf32> to vector<1x32xf32>
    %c0_143 = arith.constant 0 : index
    %c0_144 = arith.constant 0 : index
    %c0_145 = arith.constant 0 : index
    %482 = vector.load %arg23[%c0_143, %c0_144, %c0_145] : memref<2x1x32xf32, #tpu.memory_space<vmem>>, vector<1x1x32xf32>
    %483 = vector.shape_cast %482 : vector<1x1x32xf32> to vector<1x32xf32>
    %cst_146 = arith.constant dense<0.000000e+00> : vector<16xf32>
    %484 = vector.multi_reduction <add>, %479, %cst_146 [1] : vector<16x32xf32> to vector<16xf32>
    %485 = vector.shape_cast %484 : vector<16xf32> to vector<16x1xf32>
    %cst_147 = arith.constant 3.200000e+01 : f32
    %486 = vector.broadcast %cst_147 : f32 to vector<16x1xf32>
    %487 = arith.divf %485, %486 : vector<16x1xf32>
    %488 = vector.broadcast %487 : vector<16x1xf32> to vector<16x32xf32>
    %489 = arith.subf %479, %488 : vector<16x32xf32>
    %490 = arith.mulf %489, %489 : vector<16x32xf32>
    %cst_148 = arith.constant dense<0.000000e+00> : vector<16xf32>
    %491 = vector.multi_reduction <add>, %490, %cst_148 [1] : vector<16x32xf32> to vector<16xf32>
    %492 = vector.shape_cast %491 : vector<16xf32> to vector<16x1xf32>
    %cst_149 = arith.constant 3.200000e+01 : f32
    %493 = vector.broadcast %cst_149 : f32 to vector<16x1xf32>
    %494 = arith.divf %492, %493 : vector<16x1xf32>
    %495 = vector.broadcast %487 : vector<16x1xf32> to vector<16x32xf32>
    %496 = arith.subf %479, %495 : vector<16x32xf32>
    %cst_150 = arith.constant 9.99999996E-13 : f32
    %497 = vector.broadcast %cst_150 : f32 to vector<16x1xf32>
    %498 = arith.addf %494, %497 : vector<16x1xf32>
    %499 = math.rsqrt %498 : vector<16x1xf32>
    %500 = vector.broadcast %499 : vector<16x1xf32> to vector<16x32xf32>
    %501 = arith.mulf %496, %500 : vector<16x32xf32>
    %502 = vector.broadcast %481 : vector<1x32xf32> to vector<16x32xf32>
    %503 = arith.mulf %501, %502 : vector<16x32xf32>
    %504 = vector.broadcast %483 : vector<1x32xf32> to vector<16x32xf32>
    %505 = arith.addf %503, %504 : vector<16x32xf32>
    %c1 = arith.constant 1 : index
    %c0_151 = arith.constant 0 : index
    %c0_152 = arith.constant 0 : index
    %506 = vector.load %arg7[%c1, %c0_151, %c0_152] : memref<2x32x64xbf16, #tpu.memory_space<vmem>>, vector<1x32x64xbf16>
    %507 = vector.shape_cast %506 : vector<1x32x64xbf16> to vector<32x64xbf16>
    %508 = arith.truncf %505 : vector<16x32xf32> to vector<16x32xbf16>
    %cst_153 = arith.constant dense<0.000000e+00> : vector<16x64xf32>
    %509 = tpu.matmul %508, %507, %cst_153 {dimension_numbers = #tpu.dot_dimension_numbers<[1], [0], [0], [1], [0, 0, 1, 1], [], []>} : vector<16x32xbf16>, vector<32x64xbf16>, vector<16x64xf32> -> vector<16x64xf32>
    %c1_154 = arith.constant 1 : index
    %c0_155 = arith.constant 0 : index
    %c0_156 = arith.constant 0 : index
    %510 = vector.load %arg8[%c1_154, %c0_155, %c0_156] : memref<2x1x64xf32, #tpu.memory_space<vmem>>, vector<1x1x64xf32>
    %511 = vector.shape_cast %510 : vector<1x1x64xf32> to vector<1x64xf32>
    %512 = vector.broadcast %511 : vector<1x64xf32> to vector<16x64xf32>
    %513 = arith.addf %509, %512 : vector<16x64xf32>
    %514 = vector.extract_strided_slice %513 {offsets = [0, 0], sizes = [16, 16], strides = [1, 1]} : vector<16x64xf32> to vector<16x16xf32>
    %515 = vector.extract_strided_slice %513 {offsets = [0, 16], sizes = [16, 16], strides = [1, 1]} : vector<16x64xf32> to vector<16x16xf32>
    %516 = vector.extract_strided_slice %513 {offsets = [0, 32], sizes = [16, 16], strides = [1, 1]} : vector<16x64xf32> to vector<16x16xf32>
    %517 = vector.extract_strided_slice %513 {offsets = [0, 48], sizes = [16, 16], strides = [1, 1]} : vector<16x64xf32> to vector<16x16xf32>
    %c1_157 = arith.constant 1 : index
    %c0_158 = arith.constant 0 : index
    %c0_159 = arith.constant 0 : index
    %518 = vector.load %arg9[%c1_157, %c0_158, %c0_159] : memref<2x9x32xf32, #tpu.memory_space<vmem>>, vector<1x9x32xf32>
    %519 = vector.shape_cast %518 : vector<1x9x32xf32> to vector<9x32xf32>
    %cst_160 = arith.constant 0.000000e+00 : f32
    %520 = vector.broadcast %cst_160 : f32 to vector<16x32xf32>
    %c4_i32_161 = arith.constant 4 : i32
    %521 = tpu.dynamic_rotate %505 by %c4_i32_161 dim 0 : vector<16x32xf32>, i32 -> vector<16x32xf32>
    %522 = vector.broadcast %44 : vector<16x1xf32> to vector<16x32xf32>
    %523 = arith.mulf %521, %522 : vector<16x32xf32>
    %524 = vector.extract_strided_slice %519 {offsets = [0, 0], sizes = [1, 32], strides = [1, 1]} : vector<9x32xf32> to vector<1x32xf32>
    %525 = vector.broadcast %524 : vector<1x32xf32> to vector<16x32xf32>
    %526 = arith.mulf %523, %525 : vector<16x32xf32>
    %527 = arith.addf %520, %526 : vector<16x32xf32>
    %c3_i32_162 = arith.constant 3 : i32
    %528 = tpu.dynamic_rotate %505 by %c3_i32_162 dim 0 : vector<16x32xf32>, i32 -> vector<16x32xf32>
    %529 = vector.broadcast %55 : vector<16x1xf32> to vector<16x32xf32>
    %530 = arith.mulf %528, %529 : vector<16x32xf32>
    %531 = vector.extract_strided_slice %519 {offsets = [1, 0], sizes = [1, 32], strides = [1, 1]} : vector<9x32xf32> to vector<1x32xf32>
    %532 = vector.broadcast %531 : vector<1x32xf32> to vector<16x32xf32>
    %533 = arith.mulf %530, %532 : vector<16x32xf32>
    %534 = arith.addf %527, %533 : vector<16x32xf32>
    %c2_i32_163 = arith.constant 2 : i32
    %535 = tpu.dynamic_rotate %505 by %c2_i32_163 dim 0 : vector<16x32xf32>, i32 -> vector<16x32xf32>
    %536 = vector.broadcast %66 : vector<16x1xf32> to vector<16x32xf32>
    %537 = arith.mulf %535, %536 : vector<16x32xf32>
    %538 = vector.extract_strided_slice %519 {offsets = [2, 0], sizes = [1, 32], strides = [1, 1]} : vector<9x32xf32> to vector<1x32xf32>
    %539 = vector.broadcast %538 : vector<1x32xf32> to vector<16x32xf32>
    %540 = arith.mulf %537, %539 : vector<16x32xf32>
    %541 = arith.addf %534, %540 : vector<16x32xf32>
    %c1_i32_164 = arith.constant 1 : i32
    %542 = tpu.dynamic_rotate %505 by %c1_i32_164 dim 0 : vector<16x32xf32>, i32 -> vector<16x32xf32>
    %543 = vector.broadcast %77 : vector<16x1xf32> to vector<16x32xf32>
    %544 = arith.mulf %542, %543 : vector<16x32xf32>
    %545 = vector.extract_strided_slice %519 {offsets = [3, 0], sizes = [1, 32], strides = [1, 1]} : vector<9x32xf32> to vector<1x32xf32>
    %546 = vector.broadcast %545 : vector<1x32xf32> to vector<16x32xf32>
    %547 = arith.mulf %544, %546 : vector<16x32xf32>
    %548 = arith.addf %541, %547 : vector<16x32xf32>
    %549 = vector.extract_strided_slice %519 {offsets = [4, 0], sizes = [1, 32], strides = [1, 1]} : vector<9x32xf32> to vector<1x32xf32>
    %550 = vector.broadcast %549 : vector<1x32xf32> to vector<16x32xf32>
    %551 = arith.mulf %505, %550 : vector<16x32xf32>
    %552 = arith.addf %548, %551 : vector<16x32xf32>
    %c15_i32_165 = arith.constant 15 : i32
    %553 = tpu.dynamic_rotate %505 by %c15_i32_165 dim 0 : vector<16x32xf32>, i32 -> vector<16x32xf32>
    %554 = vector.broadcast %88 : vector<16x1xf32> to vector<16x32xf32>
    %555 = arith.mulf %553, %554 : vector<16x32xf32>
    %556 = vector.extract_strided_slice %519 {offsets = [5, 0], sizes = [1, 32], strides = [1, 1]} : vector<9x32xf32> to vector<1x32xf32>
    %557 = vector.broadcast %556 : vector<1x32xf32> to vector<16x32xf32>
    %558 = arith.mulf %555, %557 : vector<16x32xf32>
    %559 = arith.addf %552, %558 : vector<16x32xf32>
    %c14_i32_166 = arith.constant 14 : i32
    %560 = tpu.dynamic_rotate %505 by %c14_i32_166 dim 0 : vector<16x32xf32>, i32 -> vector<16x32xf32>
    %561 = vector.broadcast %99 : vector<16x1xf32> to vector<16x32xf32>
    %562 = arith.mulf %560, %561 : vector<16x32xf32>
    %563 = vector.extract_strided_slice %519 {offsets = [6, 0], sizes = [1, 32], strides = [1, 1]} : vector<9x32xf32> to vector<1x32xf32>
    %564 = vector.broadcast %563 : vector<1x32xf32> to vector<16x32xf32>
    %565 = arith.mulf %562, %564 : vector<16x32xf32>
    %566 = arith.addf %559, %565 : vector<16x32xf32>
    %c13_i32_167 = arith.constant 13 : i32
    %567 = tpu.dynamic_rotate %505 by %c13_i32_167 dim 0 : vector<16x32xf32>, i32 -> vector<16x32xf32>
    %568 = vector.broadcast %110 : vector<16x1xf32> to vector<16x32xf32>
    %569 = arith.mulf %567, %568 : vector<16x32xf32>
    %570 = vector.extract_strided_slice %519 {offsets = [7, 0], sizes = [1, 32], strides = [1, 1]} : vector<9x32xf32> to vector<1x32xf32>
    %571 = vector.broadcast %570 : vector<1x32xf32> to vector<16x32xf32>
    %572 = arith.mulf %569, %571 : vector<16x32xf32>
    %573 = arith.addf %566, %572 : vector<16x32xf32>
    %c12_i32_168 = arith.constant 12 : i32
    %574 = tpu.dynamic_rotate %505 by %c12_i32_168 dim 0 : vector<16x32xf32>, i32 -> vector<16x32xf32>
    %575 = vector.broadcast %121 : vector<16x1xf32> to vector<16x32xf32>
    %576 = arith.mulf %574, %575 : vector<16x32xf32>
    %577 = vector.extract_strided_slice %519 {offsets = [8, 0], sizes = [1, 32], strides = [1, 1]} : vector<9x32xf32> to vector<1x32xf32>
    %578 = vector.broadcast %577 : vector<1x32xf32> to vector<16x32xf32>
    %579 = arith.mulf %576, %578 : vector<16x32xf32>
    %580 = arith.addf %573, %579 : vector<16x32xf32>
    %c1_169 = arith.constant 1 : index
    %c0_170 = arith.constant 0 : index
    %c0_171 = arith.constant 0 : index
    %581 = vector.load %arg10[%c1_169, %c0_170, %c0_171] : memref<2x32x16xbf16, #tpu.memory_space<vmem>>, vector<1x32x16xbf16>
    %582 = vector.shape_cast %581 : vector<1x32x16xbf16> to vector<32x16xbf16>
    %583 = arith.truncf %580 : vector<16x32xf32> to vector<16x32xbf16>
    %cst_172 = arith.constant dense<0.000000e+00> : vector<16x16xf32>
    %584 = tpu.matmul %583, %582, %cst_172 {dimension_numbers = #tpu.dot_dimension_numbers<[1], [0], [0], [1], [0, 0, 1, 1], [], []>} : vector<16x32xbf16>, vector<32x16xbf16>, vector<16x16xf32> -> vector<16x16xf32>
    %c1_173 = arith.constant 1 : index
    %c0_174 = arith.constant 0 : index
    %c0_175 = arith.constant 0 : index
    %585 = vector.load %arg11[%c1_173, %c0_174, %c0_175] : memref<2x1x16xf32, #tpu.memory_space<vmem>>, vector<1x1x16xf32>
    %586 = vector.shape_cast %585 : vector<1x1x16xf32> to vector<1x16xf32>
    %587 = vector.broadcast %586 : vector<1x16xf32> to vector<16x16xf32>
    %588 = arith.addf %584, %587 : vector<16x16xf32>
    %589 = arith.mulf %588, %514 : vector<16x16xf32>
    %c1_176 = arith.constant 1 : index
    %c0_177 = arith.constant 0 : index
    %c0_178 = arith.constant 0 : index
    %590 = vector.load %arg12[%c1_176, %c0_177, %c0_178] : memref<2x16x18xbf16, #tpu.memory_space<vmem>>, vector<1x16x18xbf16>
    %591 = vector.shape_cast %590 : vector<1x16x18xbf16> to vector<16x18xbf16>
    %592 = arith.truncf %589 : vector<16x16xf32> to vector<16x16xbf16>
    %cst_179 = arith.constant dense<0.000000e+00> : vector<16x18xf32>
    %593 = tpu.matmul %592, %591, %cst_179 {dimension_numbers = #tpu.dot_dimension_numbers<[1], [0], [0], [1], [0, 0, 1, 1], [], []>} : vector<16x16xbf16>, vector<16x18xbf16>, vector<16x18xf32> -> vector<16x18xf32>
    %c1_180 = arith.constant 1 : index
    %c0_181 = arith.constant 0 : index
    %c0_182 = arith.constant 0 : index
    %594 = vector.load %arg13[%c1_180, %c0_181, %c0_182] : memref<2x1x18xf32, #tpu.memory_space<vmem>>, vector<1x1x18xf32>
    %595 = vector.shape_cast %594 : vector<1x1x18xf32> to vector<1x18xf32>
    %596 = vector.broadcast %595 : vector<1x18xf32> to vector<16x18xf32>
    %597 = arith.addf %593, %596 : vector<16x18xf32>
    %c4_i32_183 = arith.constant 4 : i32
    %598 = tpu.dynamic_rotate %517 by %c4_i32_183 dim 0 : vector<16x16xf32>, i32 -> vector<16x16xf32>
    %599 = vector.broadcast %44 : vector<16x1xf32> to vector<16x16xf32>
    %600 = arith.mulf %598, %599 : vector<16x16xf32>
    %c3_i32_184 = arith.constant 3 : i32
    %601 = tpu.dynamic_rotate %517 by %c3_i32_184 dim 0 : vector<16x16xf32>, i32 -> vector<16x16xf32>
    %602 = vector.broadcast %55 : vector<16x1xf32> to vector<16x16xf32>
    %603 = arith.mulf %601, %602 : vector<16x16xf32>
    %c2_i32_185 = arith.constant 2 : i32
    %604 = tpu.dynamic_rotate %517 by %c2_i32_185 dim 0 : vector<16x16xf32>, i32 -> vector<16x16xf32>
    %605 = vector.broadcast %66 : vector<16x1xf32> to vector<16x16xf32>
    %606 = arith.mulf %604, %605 : vector<16x16xf32>
    %c1_i32_186 = arith.constant 1 : i32
    %607 = tpu.dynamic_rotate %517 by %c1_i32_186 dim 0 : vector<16x16xf32>, i32 -> vector<16x16xf32>
    %608 = vector.broadcast %77 : vector<16x1xf32> to vector<16x16xf32>
    %609 = arith.mulf %607, %608 : vector<16x16xf32>
    %c15_i32_187 = arith.constant 15 : i32
    %610 = tpu.dynamic_rotate %517 by %c15_i32_187 dim 0 : vector<16x16xf32>, i32 -> vector<16x16xf32>
    %611 = vector.broadcast %88 : vector<16x1xf32> to vector<16x16xf32>
    %612 = arith.mulf %610, %611 : vector<16x16xf32>
    %c14_i32_188 = arith.constant 14 : i32
    %613 = tpu.dynamic_rotate %517 by %c14_i32_188 dim 0 : vector<16x16xf32>, i32 -> vector<16x16xf32>
    %614 = vector.broadcast %99 : vector<16x1xf32> to vector<16x16xf32>
    %615 = arith.mulf %613, %614 : vector<16x16xf32>
    %c13_i32_189 = arith.constant 13 : i32
    %616 = tpu.dynamic_rotate %517 by %c13_i32_189 dim 0 : vector<16x16xf32>, i32 -> vector<16x16xf32>
    %617 = vector.broadcast %110 : vector<16x1xf32> to vector<16x16xf32>
    %618 = arith.mulf %616, %617 : vector<16x16xf32>
    %c12_i32_190 = arith.constant 12 : i32
    %619 = tpu.dynamic_rotate %517 by %c12_i32_190 dim 0 : vector<16x16xf32>, i32 -> vector<16x16xf32>
    %620 = vector.broadcast %121 : vector<16x1xf32> to vector<16x16xf32>
    %621 = arith.mulf %619, %620 : vector<16x16xf32>
    %622 = vector.extract_strided_slice %514 {offsets = [0, 0], sizes = [16, 8], strides = [1, 1]} : vector<16x16xf32> to vector<16x8xf32>
    %623 = vector.extract_strided_slice %515 {offsets = [0, 0], sizes = [16, 8], strides = [1, 1]} : vector<16x16xf32> to vector<16x8xf32>
    %624 = vector.extract_strided_slice %516 {offsets = [0, 0], sizes = [16, 8], strides = [1, 1]} : vector<16x16xf32> to vector<16x8xf32>
    %cst_191 = arith.constant dense<0.000000e+00> : vector<16x16xf32>
    %625 = tpu.matmul %622, %623, %cst_191 {dimension_numbers = #tpu.dot_dimension_numbers<[1], [1], [0], [0], [0, 0, 1, 0], [], []>} : vector<16x8xf32>, vector<16x8xf32>, vector<16x16xf32> -> vector<16x16xf32>
    %cst_192 = arith.constant 0.353553385 : f32
    %626 = vector.broadcast %cst_192 : f32 to vector<16x16xf32>
    %627 = arith.mulf %625, %626 : vector<16x16xf32>
    %628 = vector.broadcast %32 : vector<1x16xf32> to vector<16x16xf32>
    %629 = arith.addf %627, %628 : vector<16x16xf32>
    %cst_193 = arith.constant dense<0xFF800000> : vector<16xf32>
    %630 = vector.multi_reduction <maximumf>, %629, %cst_193 [1] : vector<16x16xf32> to vector<16xf32>
    %631 = vector.shape_cast %630 : vector<16xf32> to vector<16x1xf32>
    %632 = vector.broadcast %631 : vector<16x1xf32> to vector<16x16xf32>
    %633 = arith.subf %629, %632 : vector<16x16xf32>
    %634 = math.exp %633 : vector<16x16xf32>
    %cst_194 = arith.constant dense<0.000000e+00> : vector<16xf32>
    %635 = vector.multi_reduction <add>, %634, %cst_194 [1] : vector<16x16xf32> to vector<16xf32>
    %636 = vector.shape_cast %635 : vector<16xf32> to vector<16x1xf32>
    %637 = vector.broadcast %636 : vector<16x1xf32> to vector<16x16xf32>
    %638 = arith.divf %634, %637 : vector<16x16xf32>
    %cst_195 = arith.constant dense<0.000000e+00> : vector<16x8xf32>
    %639 = tpu.matmul %638, %624, %cst_195 {dimension_numbers = #tpu.dot_dimension_numbers<[1], [0], [0], [1], [0, 0, 1, 1], [], []>} : vector<16x16xf32>, vector<16x8xf32>, vector<16x8xf32> -> vector<16x8xf32>
    %640 = vector.extract_strided_slice %597 {offsets = [0, 0], sizes = [16, 9], strides = [1, 1]} : vector<16x18xf32> to vector<16x9xf32>
    %cst_196 = arith.constant dense<0xFF800000> : vector<16xf32>
    %641 = vector.multi_reduction <maximumf>, %640, %cst_196 [1] : vector<16x9xf32> to vector<16xf32>
    %642 = vector.shape_cast %641 : vector<16xf32> to vector<16x1xf32>
    %643 = vector.broadcast %642 : vector<16x1xf32> to vector<16x9xf32>
    %644 = arith.subf %640, %643 : vector<16x9xf32>
    %645 = math.exp %644 : vector<16x9xf32>
    %cst_197 = arith.constant dense<0.000000e+00> : vector<16xf32>
    %646 = vector.multi_reduction <add>, %645, %cst_197 [1] : vector<16x9xf32> to vector<16xf32>
    %647 = vector.shape_cast %646 : vector<16xf32> to vector<16x1xf32>
    %648 = vector.broadcast %647 : vector<16x1xf32> to vector<16x9xf32>
    %649 = arith.divf %645, %648 : vector<16x9xf32>
    %cst_198 = arith.constant 0.000000e+00 : f32
    %650 = vector.broadcast %cst_198 : f32 to vector<16x8xf32>
    %651 = vector.extract_strided_slice %600 {offsets = [0, 0], sizes = [16, 8], strides = [1, 1]} : vector<16x16xf32> to vector<16x8xf32>
    %652 = vector.extract_strided_slice %649 {offsets = [0, 0], sizes = [16, 1], strides = [1, 1]} : vector<16x9xf32> to vector<16x1xf32>
    %653 = vector.broadcast %652 : vector<16x1xf32> to vector<16x8xf32>
    %654 = arith.mulf %651, %653 : vector<16x8xf32>
    %655 = arith.addf %650, %654 : vector<16x8xf32>
    %656 = vector.extract_strided_slice %603 {offsets = [0, 0], sizes = [16, 8], strides = [1, 1]} : vector<16x16xf32> to vector<16x8xf32>
    %657 = vector.extract_strided_slice %649 {offsets = [0, 1], sizes = [16, 1], strides = [1, 1]} : vector<16x9xf32> to vector<16x1xf32>
    %658 = vector.broadcast %657 : vector<16x1xf32> to vector<16x8xf32>
    %659 = arith.mulf %656, %658 : vector<16x8xf32>
    %660 = arith.addf %655, %659 : vector<16x8xf32>
    %661 = vector.extract_strided_slice %606 {offsets = [0, 0], sizes = [16, 8], strides = [1, 1]} : vector<16x16xf32> to vector<16x8xf32>
    %662 = vector.extract_strided_slice %649 {offsets = [0, 2], sizes = [16, 1], strides = [1, 1]} : vector<16x9xf32> to vector<16x1xf32>
    %663 = vector.broadcast %662 : vector<16x1xf32> to vector<16x8xf32>
    %664 = arith.mulf %661, %663 : vector<16x8xf32>
    %665 = arith.addf %660, %664 : vector<16x8xf32>
    %666 = vector.extract_strided_slice %609 {offsets = [0, 0], sizes = [16, 8], strides = [1, 1]} : vector<16x16xf32> to vector<16x8xf32>
    %667 = vector.extract_strided_slice %649 {offsets = [0, 3], sizes = [16, 1], strides = [1, 1]} : vector<16x9xf32> to vector<16x1xf32>
    %668 = vector.broadcast %667 : vector<16x1xf32> to vector<16x8xf32>
    %669 = arith.mulf %666, %668 : vector<16x8xf32>
    %670 = arith.addf %665, %669 : vector<16x8xf32>
    %671 = vector.extract_strided_slice %517 {offsets = [0, 0], sizes = [16, 8], strides = [1, 1]} : vector<16x16xf32> to vector<16x8xf32>
    %672 = vector.extract_strided_slice %649 {offsets = [0, 4], sizes = [16, 1], strides = [1, 1]} : vector<16x9xf32> to vector<16x1xf32>
    %673 = vector.broadcast %672 : vector<16x1xf32> to vector<16x8xf32>
    %674 = arith.mulf %671, %673 : vector<16x8xf32>
    %675 = arith.addf %670, %674 : vector<16x8xf32>
    %676 = vector.extract_strided_slice %612 {offsets = [0, 0], sizes = [16, 8], strides = [1, 1]} : vector<16x16xf32> to vector<16x8xf32>
    %677 = vector.extract_strided_slice %649 {offsets = [0, 5], sizes = [16, 1], strides = [1, 1]} : vector<16x9xf32> to vector<16x1xf32>
    %678 = vector.broadcast %677 : vector<16x1xf32> to vector<16x8xf32>
    %679 = arith.mulf %676, %678 : vector<16x8xf32>
    %680 = arith.addf %675, %679 : vector<16x8xf32>
    %681 = vector.extract_strided_slice %615 {offsets = [0, 0], sizes = [16, 8], strides = [1, 1]} : vector<16x16xf32> to vector<16x8xf32>
    %682 = vector.extract_strided_slice %649 {offsets = [0, 6], sizes = [16, 1], strides = [1, 1]} : vector<16x9xf32> to vector<16x1xf32>
    %683 = vector.broadcast %682 : vector<16x1xf32> to vector<16x8xf32>
    %684 = arith.mulf %681, %683 : vector<16x8xf32>
    %685 = arith.addf %680, %684 : vector<16x8xf32>
    %686 = vector.extract_strided_slice %618 {offsets = [0, 0], sizes = [16, 8], strides = [1, 1]} : vector<16x16xf32> to vector<16x8xf32>
    %687 = vector.extract_strided_slice %649 {offsets = [0, 7], sizes = [16, 1], strides = [1, 1]} : vector<16x9xf32> to vector<16x1xf32>
    %688 = vector.broadcast %687 : vector<16x1xf32> to vector<16x8xf32>
    %689 = arith.mulf %686, %688 : vector<16x8xf32>
    %690 = arith.addf %685, %689 : vector<16x8xf32>
    %691 = vector.extract_strided_slice %621 {offsets = [0, 0], sizes = [16, 8], strides = [1, 1]} : vector<16x16xf32> to vector<16x8xf32>
    %692 = vector.extract_strided_slice %649 {offsets = [0, 8], sizes = [16, 1], strides = [1, 1]} : vector<16x9xf32> to vector<16x1xf32>
    %693 = vector.broadcast %692 : vector<16x1xf32> to vector<16x8xf32>
    %694 = arith.mulf %691, %693 : vector<16x8xf32>
    %695 = arith.addf %690, %694 : vector<16x8xf32>
    %696 = vector.extract_strided_slice %514 {offsets = [0, 8], sizes = [16, 8], strides = [1, 1]} : vector<16x16xf32> to vector<16x8xf32>
    %697 = vector.extract_strided_slice %515 {offsets = [0, 8], sizes = [16, 8], strides = [1, 1]} : vector<16x16xf32> to vector<16x8xf32>
    %698 = vector.extract_strided_slice %516 {offsets = [0, 8], sizes = [16, 8], strides = [1, 1]} : vector<16x16xf32> to vector<16x8xf32>
    %cst_199 = arith.constant dense<0.000000e+00> : vector<16x16xf32>
    %699 = tpu.matmul %696, %697, %cst_199 {dimension_numbers = #tpu.dot_dimension_numbers<[1], [1], [0], [0], [0, 0, 1, 0], [], []>} : vector<16x8xf32>, vector<16x8xf32>, vector<16x16xf32> -> vector<16x16xf32>
    %cst_200 = arith.constant 0.353553385 : f32
    %700 = vector.broadcast %cst_200 : f32 to vector<16x16xf32>
    %701 = arith.mulf %699, %700 : vector<16x16xf32>
    %702 = vector.broadcast %32 : vector<1x16xf32> to vector<16x16xf32>
    %703 = arith.addf %701, %702 : vector<16x16xf32>
    %cst_201 = arith.constant dense<0xFF800000> : vector<16xf32>
    %704 = vector.multi_reduction <maximumf>, %703, %cst_201 [1] : vector<16x16xf32> to vector<16xf32>
    %705 = vector.shape_cast %704 : vector<16xf32> to vector<16x1xf32>
    %706 = vector.broadcast %705 : vector<16x1xf32> to vector<16x16xf32>
    %707 = arith.subf %703, %706 : vector<16x16xf32>
    %708 = math.exp %707 : vector<16x16xf32>
    %cst_202 = arith.constant dense<0.000000e+00> : vector<16xf32>
    %709 = vector.multi_reduction <add>, %708, %cst_202 [1] : vector<16x16xf32> to vector<16xf32>
    %710 = vector.shape_cast %709 : vector<16xf32> to vector<16x1xf32>
    %711 = vector.broadcast %710 : vector<16x1xf32> to vector<16x16xf32>
    %712 = arith.divf %708, %711 : vector<16x16xf32>
    %cst_203 = arith.constant dense<0.000000e+00> : vector<16x8xf32>
    %713 = tpu.matmul %712, %698, %cst_203 {dimension_numbers = #tpu.dot_dimension_numbers<[1], [0], [0], [1], [0, 0, 1, 1], [], []>} : vector<16x16xf32>, vector<16x8xf32>, vector<16x8xf32> -> vector<16x8xf32>
    %714 = vector.extract_strided_slice %597 {offsets = [0, 9], sizes = [16, 9], strides = [1, 1]} : vector<16x18xf32> to vector<16x9xf32>
    %cst_204 = arith.constant dense<0xFF800000> : vector<16xf32>
    %715 = vector.multi_reduction <maximumf>, %714, %cst_204 [1] : vector<16x9xf32> to vector<16xf32>
    %716 = vector.shape_cast %715 : vector<16xf32> to vector<16x1xf32>
    %717 = vector.broadcast %716 : vector<16x1xf32> to vector<16x9xf32>
    %718 = arith.subf %714, %717 : vector<16x9xf32>
    %719 = math.exp %718 : vector<16x9xf32>
    %cst_205 = arith.constant dense<0.000000e+00> : vector<16xf32>
    %720 = vector.multi_reduction <add>, %719, %cst_205 [1] : vector<16x9xf32> to vector<16xf32>
    %721 = vector.shape_cast %720 : vector<16xf32> to vector<16x1xf32>
    %722 = vector.broadcast %721 : vector<16x1xf32> to vector<16x9xf32>
    %723 = arith.divf %719, %722 : vector<16x9xf32>
    %cst_206 = arith.constant 0.000000e+00 : f32
    %724 = vector.broadcast %cst_206 : f32 to vector<16x8xf32>
    %725 = vector.extract_strided_slice %600 {offsets = [0, 8], sizes = [16, 8], strides = [1, 1]} : vector<16x16xf32> to vector<16x8xf32>
    %726 = vector.extract_strided_slice %723 {offsets = [0, 0], sizes = [16, 1], strides = [1, 1]} : vector<16x9xf32> to vector<16x1xf32>
    %727 = vector.broadcast %726 : vector<16x1xf32> to vector<16x8xf32>
    %728 = arith.mulf %725, %727 : vector<16x8xf32>
    %729 = arith.addf %724, %728 : vector<16x8xf32>
    %730 = vector.extract_strided_slice %603 {offsets = [0, 8], sizes = [16, 8], strides = [1, 1]} : vector<16x16xf32> to vector<16x8xf32>
    %731 = vector.extract_strided_slice %723 {offsets = [0, 1], sizes = [16, 1], strides = [1, 1]} : vector<16x9xf32> to vector<16x1xf32>
    %732 = vector.broadcast %731 : vector<16x1xf32> to vector<16x8xf32>
    %733 = arith.mulf %730, %732 : vector<16x8xf32>
    %734 = arith.addf %729, %733 : vector<16x8xf32>
    %735 = vector.extract_strided_slice %606 {offsets = [0, 8], sizes = [16, 8], strides = [1, 1]} : vector<16x16xf32> to vector<16x8xf32>
    %736 = vector.extract_strided_slice %723 {offsets = [0, 2], sizes = [16, 1], strides = [1, 1]} : vector<16x9xf32> to vector<16x1xf32>
    %737 = vector.broadcast %736 : vector<16x1xf32> to vector<16x8xf32>
    %738 = arith.mulf %735, %737 : vector<16x8xf32>
    %739 = arith.addf %734, %738 : vector<16x8xf32>
    %740 = vector.extract_strided_slice %609 {offsets = [0, 8], sizes = [16, 8], strides = [1, 1]} : vector<16x16xf32> to vector<16x8xf32>
    %741 = vector.extract_strided_slice %723 {offsets = [0, 3], sizes = [16, 1], strides = [1, 1]} : vector<16x9xf32> to vector<16x1xf32>
    %742 = vector.broadcast %741 : vector<16x1xf32> to vector<16x8xf32>
    %743 = arith.mulf %740, %742 : vector<16x8xf32>
    %744 = arith.addf %739, %743 : vector<16x8xf32>
    %745 = vector.extract_strided_slice %517 {offsets = [0, 8], sizes = [16, 8], strides = [1, 1]} : vector<16x16xf32> to vector<16x8xf32>
    %746 = vector.extract_strided_slice %723 {offsets = [0, 4], sizes = [16, 1], strides = [1, 1]} : vector<16x9xf32> to vector<16x1xf32>
    %747 = vector.broadcast %746 : vector<16x1xf32> to vector<16x8xf32>
    %748 = arith.mulf %745, %747 : vector<16x8xf32>
    %749 = arith.addf %744, %748 : vector<16x8xf32>
    %750 = vector.extract_strided_slice %612 {offsets = [0, 8], sizes = [16, 8], strides = [1, 1]} : vector<16x16xf32> to vector<16x8xf32>
    %751 = vector.extract_strided_slice %723 {offsets = [0, 5], sizes = [16, 1], strides = [1, 1]} : vector<16x9xf32> to vector<16x1xf32>
    %752 = vector.broadcast %751 : vector<16x1xf32> to vector<16x8xf32>
    %753 = arith.mulf %750, %752 : vector<16x8xf32>
    %754 = arith.addf %749, %753 : vector<16x8xf32>
    %755 = vector.extract_strided_slice %615 {offsets = [0, 8], sizes = [16, 8], strides = [1, 1]} : vector<16x16xf32> to vector<16x8xf32>
    %756 = vector.extract_strided_slice %723 {offsets = [0, 6], sizes = [16, 1], strides = [1, 1]} : vector<16x9xf32> to vector<16x1xf32>
    %757 = vector.broadcast %756 : vector<16x1xf32> to vector<16x8xf32>
    %758 = arith.mulf %755, %757 : vector<16x8xf32>
    %759 = arith.addf %754, %758 : vector<16x8xf32>
    %760 = vector.extract_strided_slice %618 {offsets = [0, 8], sizes = [16, 8], strides = [1, 1]} : vector<16x16xf32> to vector<16x8xf32>
    %761 = vector.extract_strided_slice %723 {offsets = [0, 7], sizes = [16, 1], strides = [1, 1]} : vector<16x9xf32> to vector<16x1xf32>
    %762 = vector.broadcast %761 : vector<16x1xf32> to vector<16x8xf32>
    %763 = arith.mulf %760, %762 : vector<16x8xf32>
    %764 = arith.addf %759, %763 : vector<16x8xf32>
    %765 = vector.extract_strided_slice %621 {offsets = [0, 8], sizes = [16, 8], strides = [1, 1]} : vector<16x16xf32> to vector<16x8xf32>
    %766 = vector.extract_strided_slice %723 {offsets = [0, 8], sizes = [16, 1], strides = [1, 1]} : vector<16x9xf32> to vector<16x1xf32>
    %767 = vector.broadcast %766 : vector<16x1xf32> to vector<16x8xf32>
    %768 = arith.mulf %765, %767 : vector<16x8xf32>
    %769 = arith.addf %764, %768 : vector<16x8xf32>
    %770 = tpu.concatenate %639, %713, %695, %769 in 1 : vector<16x8xf32>, vector<16x8xf32>, vector<16x8xf32>, vector<16x8xf32> -> vector<16x32xf32>
    %c1_207 = arith.constant 1 : index
    %c0_208 = arith.constant 0 : index
    %c0_209 = arith.constant 0 : index
    %771 = vector.load %arg14[%c1_207, %c0_208, %c0_209] : memref<2x32x32xbf16, #tpu.memory_space<vmem>>, vector<1x32x32xbf16>
    %772 = vector.shape_cast %771 : vector<1x32x32xbf16> to vector<32x32xbf16>
    %773 = arith.truncf %770 : vector<16x32xf32> to vector<16x32xbf16>
    %cst_210 = arith.constant dense<0.000000e+00> : vector<16x32xf32>
    %774 = tpu.matmul %773, %772, %cst_210 {dimension_numbers = #tpu.dot_dimension_numbers<[1], [0], [0], [1], [0, 0, 1, 1], [], []>} : vector<16x32xbf16>, vector<32x32xbf16>, vector<16x32xf32> -> vector<16x32xf32>
    %c1_211 = arith.constant 1 : index
    %c0_212 = arith.constant 0 : index
    %c0_213 = arith.constant 0 : index
    %775 = vector.load %arg15[%c1_211, %c0_212, %c0_213] : memref<2x1x32xf32, #tpu.memory_space<vmem>>, vector<1x1x32xf32>
    %776 = vector.shape_cast %775 : vector<1x1x32xf32> to vector<1x32xf32>
    %777 = vector.broadcast %776 : vector<1x32xf32> to vector<16x32xf32>
    %778 = arith.addf %774, %777 : vector<16x32xf32>
    %779 = arith.addf %778, %505 : vector<16x32xf32>
    %c1_214 = arith.constant 1 : index
    %c0_215 = arith.constant 0 : index
    %c0_216 = arith.constant 0 : index
    %780 = vector.load %arg16[%c1_214, %c0_215, %c0_216] : memref<2x1x32xf32, #tpu.memory_space<vmem>>, vector<1x1x32xf32>
    %781 = vector.shape_cast %780 : vector<1x1x32xf32> to vector<1x32xf32>
    %c1_217 = arith.constant 1 : index
    %c0_218 = arith.constant 0 : index
    %c0_219 = arith.constant 0 : index
    %782 = vector.load %arg17[%c1_217, %c0_218, %c0_219] : memref<2x1x32xf32, #tpu.memory_space<vmem>>, vector<1x1x32xf32>
    %783 = vector.shape_cast %782 : vector<1x1x32xf32> to vector<1x32xf32>
    %cst_220 = arith.constant dense<0.000000e+00> : vector<16xf32>
    %784 = vector.multi_reduction <add>, %779, %cst_220 [1] : vector<16x32xf32> to vector<16xf32>
    %785 = vector.shape_cast %784 : vector<16xf32> to vector<16x1xf32>
    %cst_221 = arith.constant 3.200000e+01 : f32
    %786 = vector.broadcast %cst_221 : f32 to vector<16x1xf32>
    %787 = arith.divf %785, %786 : vector<16x1xf32>
    %788 = vector.broadcast %787 : vector<16x1xf32> to vector<16x32xf32>
    %789 = arith.subf %779, %788 : vector<16x32xf32>
    %790 = arith.mulf %789, %789 : vector<16x32xf32>
    %cst_222 = arith.constant dense<0.000000e+00> : vector<16xf32>
    %791 = vector.multi_reduction <add>, %790, %cst_222 [1] : vector<16x32xf32> to vector<16xf32>
    %792 = vector.shape_cast %791 : vector<16xf32> to vector<16x1xf32>
    %cst_223 = arith.constant 3.200000e+01 : f32
    %793 = vector.broadcast %cst_223 : f32 to vector<16x1xf32>
    %794 = arith.divf %792, %793 : vector<16x1xf32>
    %795 = vector.broadcast %787 : vector<16x1xf32> to vector<16x32xf32>
    %796 = arith.subf %779, %795 : vector<16x32xf32>
    %cst_224 = arith.constant 9.99999996E-13 : f32
    %797 = vector.broadcast %cst_224 : f32 to vector<16x1xf32>
    %798 = arith.addf %794, %797 : vector<16x1xf32>
    %799 = math.rsqrt %798 : vector<16x1xf32>
    %800 = vector.broadcast %799 : vector<16x1xf32> to vector<16x32xf32>
    %801 = arith.mulf %796, %800 : vector<16x32xf32>
    %802 = vector.broadcast %781 : vector<1x32xf32> to vector<16x32xf32>
    %803 = arith.mulf %801, %802 : vector<16x32xf32>
    %804 = vector.broadcast %783 : vector<1x32xf32> to vector<16x32xf32>
    %805 = arith.addf %803, %804 : vector<16x32xf32>
    %c1_225 = arith.constant 1 : index
    %c0_226 = arith.constant 0 : index
    %c0_227 = arith.constant 0 : index
    %806 = vector.load %arg18[%c1_225, %c0_226, %c0_227] : memref<2x32x64xbf16, #tpu.memory_space<vmem>>, vector<1x32x64xbf16>
    %807 = vector.shape_cast %806 : vector<1x32x64xbf16> to vector<32x64xbf16>
    %808 = arith.truncf %805 : vector<16x32xf32> to vector<16x32xbf16>
    %cst_228 = arith.constant dense<0.000000e+00> : vector<16x64xf32>
    %809 = tpu.matmul %808, %807, %cst_228 {dimension_numbers = #tpu.dot_dimension_numbers<[1], [0], [0], [1], [0, 0, 1, 1], [], []>} : vector<16x32xbf16>, vector<32x64xbf16>, vector<16x64xf32> -> vector<16x64xf32>
    %c1_229 = arith.constant 1 : index
    %c0_230 = arith.constant 0 : index
    %c0_231 = arith.constant 0 : index
    %810 = vector.load %arg19[%c1_229, %c0_230, %c0_231] : memref<2x1x64xf32, #tpu.memory_space<vmem>>, vector<1x1x64xf32>
    %811 = vector.shape_cast %810 : vector<1x1x64xf32> to vector<1x64xf32>
    %812 = vector.broadcast %811 : vector<1x64xf32> to vector<16x64xf32>
    %813 = arith.addf %809, %812 : vector<16x64xf32>
    %cst_232 = arith.constant 0.707106769 : f32
    %814 = vector.broadcast %cst_232 : f32 to vector<16x64xf32>
    %815 = arith.mulf %813, %814 : vector<16x64xf32>
    %cst_233 = arith.constant 0.000000e+00 : f32
    %816 = vector.broadcast %cst_233 : f32 to vector<16x64xf32>
    %817 = arith.cmpf oge, %815, %816 : vector<16x64xf32>
    %cst_234 = arith.constant 1.000000e+00 : f32
    %cst_235 = arith.constant -1.000000e+00 : f32
    %818 = vector.broadcast %cst_234 : f32 to vector<16x64xf32>
    %819 = vector.broadcast %cst_235 : f32 to vector<16x64xf32>
    %820 = arith.select %817, %818, %819 : vector<16x64xi1>, vector<16x64xf32>
    %821 = math.absf %815 : vector<16x64xf32>
    %cst_236 = arith.constant 0.327591091 : f32
    %822 = vector.broadcast %cst_236 : f32 to vector<16x64xf32>
    %823 = arith.mulf %822, %821 : vector<16x64xf32>
    %cst_237 = arith.constant 1.000000e+00 : f32
    %824 = vector.broadcast %cst_237 : f32 to vector<16x64xf32>
    %825 = arith.addf %824, %823 : vector<16x64xf32>
    %cst_238 = arith.constant 1.000000e+00 : f32
    %826 = vector.broadcast %cst_238 : f32 to vector<16x64xf32>
    %827 = arith.divf %826, %825 : vector<16x64xf32>
    %cst_239 = arith.constant 1.06140542 : f32
    %828 = vector.broadcast %cst_239 : f32 to vector<16x64xf32>
    %829 = arith.mulf %828, %827 : vector<16x64xf32>
    %cst_240 = arith.constant -1.45315206 : f32
    %830 = vector.broadcast %cst_240 : f32 to vector<16x64xf32>
    %831 = arith.addf %829, %830 : vector<16x64xf32>
    %832 = arith.mulf %831, %827 : vector<16x64xf32>
    %cst_241 = arith.constant 1.42141378 : f32
    %833 = vector.broadcast %cst_241 : f32 to vector<16x64xf32>
    %834 = arith.addf %832, %833 : vector<16x64xf32>
    %835 = arith.mulf %834, %827 : vector<16x64xf32>
    %cst_242 = arith.constant -0.284496725 : f32
    %836 = vector.broadcast %cst_242 : f32 to vector<16x64xf32>
    %837 = arith.addf %835, %836 : vector<16x64xf32>
    %838 = arith.mulf %837, %827 : vector<16x64xf32>
    %cst_243 = arith.constant 0.254829586 : f32
    %839 = vector.broadcast %cst_243 : f32 to vector<16x64xf32>
    %840 = arith.addf %838, %839 : vector<16x64xf32>
    %841 = arith.mulf %840, %827 : vector<16x64xf32>
    %cst_244 = arith.constant 0.000000e+00 : f32
    %842 = vector.broadcast %cst_244 : f32 to vector<16x64xf32>
    %843 = arith.subf %842, %821 : vector<16x64xf32>
    %844 = arith.mulf %843, %821 : vector<16x64xf32>
    %845 = math.exp %844 : vector<16x64xf32>
    %846 = arith.mulf %841, %845 : vector<16x64xf32>
    %cst_245 = arith.constant 1.000000e+00 : f32
    %847 = vector.broadcast %cst_245 : f32 to vector<16x64xf32>
    %848 = arith.subf %847, %846 : vector<16x64xf32>
    %849 = arith.mulf %820, %848 : vector<16x64xf32>
    %cst_246 = arith.constant 5.000000e-01 : f32
    %850 = vector.broadcast %cst_246 : f32 to vector<16x64xf32>
    %851 = arith.mulf %850, %813 : vector<16x64xf32>
    %cst_247 = arith.constant 1.000000e+00 : f32
    %852 = vector.broadcast %cst_247 : f32 to vector<16x64xf32>
    %853 = arith.addf %852, %849 : vector<16x64xf32>
    %854 = arith.mulf %851, %853 : vector<16x64xf32>
    %c1_248 = arith.constant 1 : index
    %c0_249 = arith.constant 0 : index
    %c0_250 = arith.constant 0 : index
    %855 = vector.load %arg20[%c1_248, %c0_249, %c0_250] : memref<2x64x32xbf16, #tpu.memory_space<vmem>>, vector<1x64x32xbf16>
    %856 = vector.shape_cast %855 : vector<1x64x32xbf16> to vector<64x32xbf16>
    %857 = arith.truncf %854 : vector<16x64xf32> to vector<16x64xbf16>
    %cst_251 = arith.constant dense<0.000000e+00> : vector<16x32xf32>
    %858 = tpu.matmul %857, %856, %cst_251 {dimension_numbers = #tpu.dot_dimension_numbers<[1], [0], [0], [1], [0, 0, 1, 1], [], []>} : vector<16x64xbf16>, vector<64x32xbf16>, vector<16x32xf32> -> vector<16x32xf32>
    %c1_252 = arith.constant 1 : index
    %c0_253 = arith.constant 0 : index
    %c0_254 = arith.constant 0 : index
    %859 = vector.load %arg21[%c1_252, %c0_253, %c0_254] : memref<2x1x32xf32, #tpu.memory_space<vmem>>, vector<1x1x32xf32>
    %860 = vector.shape_cast %859 : vector<1x1x32xf32> to vector<1x32xf32>
    %861 = vector.broadcast %860 : vector<1x32xf32> to vector<16x32xf32>
    %862 = arith.addf %858, %861 : vector<16x32xf32>
    %863 = arith.addf %862, %805 : vector<16x32xf32>
    %c1_255 = arith.constant 1 : index
    %c0_256 = arith.constant 0 : index
    %c0_257 = arith.constant 0 : index
    %864 = vector.load %arg22[%c1_255, %c0_256, %c0_257] : memref<2x1x32xf32, #tpu.memory_space<vmem>>, vector<1x1x32xf32>
    %865 = vector.shape_cast %864 : vector<1x1x32xf32> to vector<1x32xf32>
    %c1_258 = arith.constant 1 : index
    %c0_259 = arith.constant 0 : index
    %c0_260 = arith.constant 0 : index
    %866 = vector.load %arg23[%c1_258, %c0_259, %c0_260] : memref<2x1x32xf32, #tpu.memory_space<vmem>>, vector<1x1x32xf32>
    %867 = vector.shape_cast %866 : vector<1x1x32xf32> to vector<1x32xf32>
    %cst_261 = arith.constant dense<0.000000e+00> : vector<16xf32>
    %868 = vector.multi_reduction <add>, %863, %cst_261 [1] : vector<16x32xf32> to vector<16xf32>
    %869 = vector.shape_cast %868 : vector<16xf32> to vector<16x1xf32>
    %cst_262 = arith.constant 3.200000e+01 : f32
    %870 = vector.broadcast %cst_262 : f32 to vector<16x1xf32>
    %871 = arith.divf %869, %870 : vector<16x1xf32>
    %872 = vector.broadcast %871 : vector<16x1xf32> to vector<16x32xf32>
    %873 = arith.subf %863, %872 : vector<16x32xf32>
    %874 = arith.mulf %873, %873 : vector<16x32xf32>
    %cst_263 = arith.constant dense<0.000000e+00> : vector<16xf32>
    %875 = vector.multi_reduction <add>, %874, %cst_263 [1] : vector<16x32xf32> to vector<16xf32>
    %876 = vector.shape_cast %875 : vector<16xf32> to vector<16x1xf32>
    %cst_264 = arith.constant 3.200000e+01 : f32
    %877 = vector.broadcast %cst_264 : f32 to vector<16x1xf32>
    %878 = arith.divf %876, %877 : vector<16x1xf32>
    %879 = vector.broadcast %871 : vector<16x1xf32> to vector<16x32xf32>
    %880 = arith.subf %863, %879 : vector<16x32xf32>
    %cst_265 = arith.constant 9.99999996E-13 : f32
    %881 = vector.broadcast %cst_265 : f32 to vector<16x1xf32>
    %882 = arith.addf %878, %881 : vector<16x1xf32>
    %883 = math.rsqrt %882 : vector<16x1xf32>
    %884 = vector.broadcast %883 : vector<16x1xf32> to vector<16x32xf32>
    %885 = arith.mulf %880, %884 : vector<16x32xf32>
    %886 = vector.broadcast %865 : vector<1x32xf32> to vector<16x32xf32>
    %887 = arith.mulf %885, %886 : vector<16x32xf32>
    %888 = vector.broadcast %867 : vector<1x32xf32> to vector<16x32xf32>
    %889 = arith.addf %887, %888 : vector<16x32xf32>
    %c0_266 = arith.constant 0 : index
    %c0_267 = arith.constant 0 : index
    %c0_268 = arith.constant 0 : index
    %890 = vector.load %arg24[%c0_266, %c0_267, %c0_268] : memref<1x16x32xf32, #tpu.memory_space<vmem>>, vector<1x16x32xf32>
    %891 = vector.shape_cast %890 : vector<1x16x32xf32> to vector<16x32xf32>
    %892 = vector.shape_cast %889 : vector<16x32xf32> to vector<1x16x32xf32>
    tpu.vector_store %arg24[%c0_266, %c0_267, %c0_268], %892 {strides = array<i32>} : memref<1x16x32xf32, #tpu.memory_space<vmem>>, vector<1x16x32xf32>,
    return
  }
  func.func @transform_0(%arg0: i32) -> (i32, i32, i32) {
    %c0_i32 = arith.constant 0 : i32
    %c0_i32_0 = arith.constant 0 : i32
    %c0_i32_1 = arith.constant 0 : i32
    return %arg0, %c0_i32, %c0_i32_0 : i32, i32, i32
  }
  func.func @transform_1(%arg0: i32) -> (i32, i32) {
    %c0_i32 = arith.constant 0 : i32
    %c0_i32_0 = arith.constant 0 : i32
    %c0_i32_1 = arith.constant 0 : i32
    return %c0_i32, %c0_i32_0 : i32, i32
  }
  func.func @transform_2(%arg0: i32) -> (i32, i32) {
    %c0_i32 = arith.constant 0 : i32
    %c0_i32_0 = arith.constant 0 : i32
    %c0_i32_1 = arith.constant 0 : i32
    return %c0_i32, %c0_i32_0 : i32, i32
  }
  func.func @transform_3(%arg0: i32) -> (i32, i32) {
    %c0_i32 = arith.constant 0 : i32
    %c0_i32_0 = arith.constant 0 : i32
    %c0_i32_1 = arith.constant 0 : i32
    return %c0_i32, %c0_i32_0 : i32, i32
  }
  func.func @transform_4(%arg0: i32) -> (i32, i32) {
    %c0_i32 = arith.constant 0 : i32
    %c0_i32_0 = arith.constant 0 : i32
    %c0_i32_1 = arith.constant 0 : i32
    return %c0_i32, %c0_i32_0 : i32, i32
  }
  func.func @transform_5(%arg0: i32) -> (i32, i32, i32) {
    %c0_i32 = arith.constant 0 : i32
    %c0_i32_0 = arith.constant 0 : i32
    %c0_i32_1 = arith.constant 0 : i32
    return %arg0, %c0_i32, %c0_i32_0 : i32, i32, i32
  }
  func.func @transform_6(%arg0: i32) -> (i32, i32, i32) {
    %c0_i32 = arith.constant 0 : i32
    %c0_i32_0 = arith.constant 0 : i32
    %c0_i32_1 = arith.constant 0 : i32
    %c0_i32_2 = arith.constant 0 : i32
    return %c0_i32, %c0_i32_0, %c0_i32_1 : i32, i32, i32
  }
  func.func @transform_7(%arg0: i32) -> (i32, i32, i32) {
    %c0_i32 = arith.constant 0 : i32
    %c0_i32_0 = arith.constant 0 : i32
    %c0_i32_1 = arith.constant 0 : i32
    %c0_i32_2 = arith.constant 0 : i32
    return %c0_i32, %c0_i32_0, %c0_i32_1 : i32, i32, i32
  }
  func.func @transform_8(%arg0: i32) -> (i32, i32, i32) {
    %c0_i32 = arith.constant 0 : i32
    %c0_i32_0 = arith.constant 0 : i32
    %c0_i32_1 = arith.constant 0 : i32
    %c0_i32_2 = arith.constant 0 : i32
    return %c0_i32, %c0_i32_0, %c0_i32_1 : i32, i32, i32
  }
  func.func @transform_9(%arg0: i32) -> (i32, i32, i32) {
    %c0_i32 = arith.constant 0 : i32
    %c0_i32_0 = arith.constant 0 : i32
    %c0_i32_1 = arith.constant 0 : i32
    %c0_i32_2 = arith.constant 0 : i32
    return %c0_i32, %c0_i32_0, %c0_i32_1 : i32, i32, i32
  }
  func.func @transform_10(%arg0: i32) -> (i32, i32, i32) {
    %c0_i32 = arith.constant 0 : i32
    %c0_i32_0 = arith.constant 0 : i32
    %c0_i32_1 = arith.constant 0 : i32
    %c0_i32_2 = arith.constant 0 : i32
    return %c0_i32, %c0_i32_0, %c0_i32_1 : i32, i32, i32
  }
  func.func @transform_11(%arg0: i32) -> (i32, i32, i32) {
    %c0_i32 = arith.constant 0 : i32
    %c0_i32_0 = arith.constant 0 : i32
    %c0_i32_1 = arith.constant 0 : i32
    %c0_i32_2 = arith.constant 0 : i32
    return %c0_i32, %c0_i32_0, %c0_i32_1 : i32, i32, i32
  }
  func.func @transform_12(%arg0: i32) -> (i32, i32, i32) {
    %c0_i32 = arith.constant 0 : i32
    %c0_i32_0 = arith.constant 0 : i32
    %c0_i32_1 = arith.constant 0 : i32
    %c0_i32_2 = arith.constant 0 : i32
    return %c0_i32, %c0_i32_0, %c0_i32_1 : i32, i32, i32
  }
  func.func @transform_13(%arg0: i32) -> (i32, i32, i32) {
    %c0_i32 = arith.constant 0 : i32
    %c0_i32_0 = arith.constant 0 : i32
    %c0_i32_1 = arith.constant 0 : i32
    %c0_i32_2 = arith.constant 0 : i32
    return %c0_i32, %c0_i32_0, %c0_i32_1 : i32, i32, i32
  }
  func.func @transform_14(%arg0: i32) -> (i32, i32, i32) {
    %c0_i32 = arith.constant 0 : i32
    %c0_i32_0 = arith.constant 0 : i32
    %c0_i32_1 = arith.constant 0 : i32
    %c0_i32_2 = arith.constant 0 : i32
    return %c0_i32, %c0_i32_0, %c0_i32_1 : i32, i32, i32
  }
  func.func @transform_15(%arg0: i32) -> (i32, i32, i32) {
    %c0_i32 = arith.constant 0 : i32
    %c0_i32_0 = arith.constant 0 : i32
    %c0_i32_1 = arith.constant 0 : i32
    %c0_i32_2 = arith.constant 0 : i32
    return %c0_i32, %c0_i32_0, %c0_i32_1 : i32, i32, i32
  }
  func.func @transform_16(%arg0: i32) -> (i32, i32, i32) {
    %c0_i32 = arith.constant 0 : i32
    %c0_i32_0 = arith.constant 0 : i32
    %c0_i32_1 = arith.constant 0 : i32
    %c0_i32_2 = arith.constant 0 : i32
    return %c0_i32, %c0_i32_0, %c0_i32_1 : i32, i32, i32
  }
  func.func @transform_17(%arg0: i32) -> (i32, i32, i32) {
    %c0_i32 = arith.constant 0 : i32
    %c0_i32_0 = arith.constant 0 : i32
    %c0_i32_1 = arith.constant 0 : i32
    %c0_i32_2 = arith.constant 0 : i32
    return %c0_i32, %c0_i32_0, %c0_i32_1 : i32, i32, i32
  }
  func.func @transform_18(%arg0: i32) -> (i32, i32, i32) {
    %c0_i32 = arith.constant 0 : i32
    %c0_i32_0 = arith.constant 0 : i32
    %c0_i32_1 = arith.constant 0 : i32
    %c0_i32_2 = arith.constant 0 : i32
    return %c0_i32, %c0_i32_0, %c0_i32_1 : i32, i32, i32
  }
  func.func @transform_19(%arg0: i32) -> (i32, i32, i32) {
    %c0_i32 = arith.constant 0 : i32
    %c0_i32_0 = arith.constant 0 : i32
    %c0_i32_1 = arith.constant 0 : i32
    %c0_i32_2 = arith.constant 0 : i32
    return %c0_i32, %c0_i32_0, %c0_i32_1 : i32, i32, i32
  }
  func.func @transform_20(%arg0: i32) -> (i32, i32, i32) {
    %c0_i32 = arith.constant 0 : i32
    %c0_i32_0 = arith.constant 0 : i32
    %c0_i32_1 = arith.constant 0 : i32
    %c0_i32_2 = arith.constant 0 : i32
    return %c0_i32, %c0_i32_0, %c0_i32_1 : i32, i32, i32
  }
  func.func @transform_21(%arg0: i32) -> (i32, i32, i32) {
    %c0_i32 = arith.constant 0 : i32
    %c0_i32_0 = arith.constant 0 : i32
    %c0_i32_1 = arith.constant 0 : i32
    %c0_i32_2 = arith.constant 0 : i32
    return %c0_i32, %c0_i32_0, %c0_i32_1 : i32, i32, i32
  }
  func.func @transform_22(%arg0: i32) -> (i32, i32, i32) {
    %c0_i32 = arith.constant 0 : i32
    %c0_i32_0 = arith.constant 0 : i32
    %c0_i32_1 = arith.constant 0 : i32
    %c0_i32_2 = arith.constant 0 : i32
    return %c0_i32, %c0_i32_0, %c0_i32_1 : i32, i32, i32
  }
  func.func @transform_23(%arg0: i32) -> (i32, i32, i32) {
    %c0_i32 = arith.constant 0 : i32
    %c0_i32_0 = arith.constant 0 : i32
    %c0_i32_1 = arith.constant 0 : i32
    return %arg0, %c0_i32, %c0_i32_0 : i32, i32, i32
  }
}

</mosaic_0001>

<bundles_post_ra>
// kernel: convbert_encoder_forward.1
= control target key start
LH: loop header
LB: loop body
LE: loop exit
PB: predicated region body
PF: predicated region fallthrough
CT: control target
= control target key end

     0   :  { %s5935_s0 = inlined_call_operand.vmem [shape: f32[2,16,32], index: 0, kind: input, shape index: {}]   ;;  %s5936_s1 = inlined_call_operand.vmem [shape: f32[16,32], index: 1, kind: input, shape index: {}]   ;;  %s5937_s2 = inlined_call_operand.vmem [shape: f32[1,32], index: 2, kind: input, shape index: {}]   ;;  %s5938_s3 = inlined_call_operand.vmem [shape: f32[1,32], index: 3, kind: input, shape index: {}]   ;;  %s5939_s4 = inlined_call_operand.vmem [shape: f32[1,32], index: 4, kind: input, shape index: {}]   ;;  %s5940_s5 = inlined_call_operand.vmem [shape: f32[2,1,16], index: 5, kind: input, shape index: {}]   ;;  %s5941_s6 = inlined_call_operand.vmem [shape: bf16[2,32,64], index: 6, kind: input, shape index: {}]   ;;  %s5942_s7 = inlined_call_operand.vmem [shape: f32[2,1,64], index: 7, kind: input, shape index: {}]   ;;  %s5943_s8 = inlined_call_operand.vmem [shape: f32[2,9,32], index: 8, kind: input, shape index: {}]   ;;  %s5944_s9 = inlined_call_operand.vmem [shape: bf16[2,32,16], index: 9, kind: input, shape index: {}]   ;;  %s5945_s10 = inlined_call_operand.vmem [shape: f32[2,1,16], index: 10, kind: input, shape index: {}]   ;;  %s5946_s11 = inlined_call_operand.vmem [shape: bf16[2,16,18], index: 11, kind: input, shape index: {}]   ;;  %s5947_s12 = inlined_call_operand.vmem [shape: f32[2,1,18], index: 12, kind: input, shape index: {}]   ;;  %s5948_s13 = inlined_call_operand.vmem [shape: bf16[2,32,32], index: 13, kind: input, shape index: {}]   ;;  %s5949_s14 = inlined_call_operand.vmem [shape: f32[2,1,32], index: 14, kind: input, shape index: {}]   ;;  %s5950_s15 = inlined_call_operand.vmem [shape: f32[2,1,32], index: 15, kind: input, shape index: {}]   ;;  %s5951_s16 = inlined_call_operand.vmem [shape: f32[2,1,32], index: 16, kind: input, shape index: {}]   ;;  %s5952_s17 = inlined_call_operand.vmem [shape: bf16[2,32,64], index: 17, kind: input, shape index: {}]   ;;  %s5953_s18 = inlined_call_operand.vmem [shape: f32[2,1,64], index: 18, kind: input, shape index: {}]   ;;  %s5954_s19 = inlined_call_operand.vmem [shape: bf16[2,64,32], index: 19, kind: input, shape index: {}]   ;;  %s5955_s20 = inlined_call_operand.vmem [shape: f32[2,1,32], index: 20, kind: input, shape index: {}]   ;;  %s5956_s21 = inlined_call_operand.vmem [shape: f32[2,1,32], index: 21, kind: input, shape index: {}]   ;;  %s5957_s22 = inlined_call_operand.vmem [shape: f32[2,1,32], index: 22, kind: input, shape index: {}]   ;;  %s5958_s23 = inlined_call_operand.vmem [shape: f32[2,16,32], index: 23, kind: output, shape index: {}]  }
   0x1   :  { %6021 = sst [smem:[#allocation3_spill]] %s5935_s0 }
   0x2   :  { %6022 = sst [smem:[#allocation4_spill]] %s5936_s1 }
   0x3   :  { %6023 = sst [smem:[#allocation5_spill]] %s5937_s2 }
   0x4   :  { %6024 = sst [smem:[#allocation6_spill]] %s5938_s3 }
   0x5   :  { %6025 = sst [smem:[#allocation7_spill]] %s5939_s4  ;;  %s4776_s4 = smov 0  }
   0x6   :  { %6026 = sst [smem:[#allocation8_spill]] %s5940_s5 }
   0x7   :  { %6027 = sst [smem:[#allocation9_spill]] %s5941_s6 }
   0x8   :  { %6028 = sst [smem:[#allocation10_spill]] %s5942_s7 }
   0x9 LB: > { %s3901_s30 = sadd.s32 4294967295, %s4624_s4   ;;  %p3905_p0 = scmp.ge.s32.totalorder %s4624_s4, 1  ;;  %s4624_s4 = sphi %s4776_s4, %s33_s4  }
   0xa   : > { %p645_p1 = scmp.lt.s32.totalorder %s4624_s4, 3 }
   0xc   : > { %p646_p2 = pnand %p3905_p0, %p645_p1 }
   0xe   : > { %649 = sbr.rel (%p646_p2) target bundleno = 5892 (0x1704), region = 112 }
  0x15   : > { %p712_p3 = scmp.lt.s32.totalorder %s3901_s30, 1  ;;  %s6029_s5 = sld [smem:[#allocation4_spill]]  ;;  %vm743_vm0 = vcmask 261120   ;;  %v6002_v22 = vmov 0.0   ;;  %vm4627_vm1 = vmmov 0   ;;  %v788_v26 = vlaneseq  ;;  %v4830_v41 = vld [vmem:[%s5943_s8] sm:$0xff] }
  0x16   : > { %s6030_s7 = sld [smem:[#allocation3_spill]]  ;;  %s6031_s0 = sld [smem:[#allocation5_spill]]  ;;  %4118 = vmatprep.subr.bf16.mxu1 %v6002_v22  ;;  %4134 = vmatprep.subr.bf16.mxu0 %v6002_v22 }
  0x17   : > { %s6085_s30 = smov (!%p712_p3, %s3901_s30), 1  ;;  %s6032_s26 = sld [smem:[#allocation9_spill]]  ;;  %4122 = vmatprep.mubr.msk.bf16.mxu1 %vm4627_vm1, %v6002_v22  ;;  %4136 = vmatprep.mubr.msk.bf16.mxu0 %vm4627_vm1, %v6002_v22  ;;  %v4819_v30 = vshrl.u32 %v788_v26, 7  ;;  %v4494_v26 = vld [vmem:[%s5944_s9 + $0x8] sm:$0xff]  }
  0x18   : > { %s6006_s1 = sshll.u32 %s6085_s30, 4  ;;  %s6033_s3 = sld [smem:[#allocation6_spill]] }
  0x19   : > { %v790_v32 = vadd.s32 8, %v4819_v30  ;;  %v791_v33 = vadd.s32 4294967292, %v4819_v30  ;;  %v803_v34 = vadd.s32 4294967293, %v4819_v30  ;;  %v815_v35 = vadd.s32 4294967294, %v4819_v30  ;;  %s6034_s25 = sld [smem:[#allocation7_spill]]  ;;  %s6035_s2 = sld [smem:[#allocation10_spill]] }
  0x1a   : > { %v827_v36 = vadd.s32 4294967295, %v4819_v30  ;;  %v6001_v38 = vsub.s32 4, %v4819_v30  ;;  %v6000_v55 = vsub.s32 0, %v4819_v30  ;;  %v5999_v56 = vsub.s32 1, %v4819_v30  ;;  %s4628_s6 = smov 104   ;;  %s6018_s27 = smov 112  }
  0x1b   : > { %v728_v0 = vld [vmem:[%s6029_s5] sm:$0xff]  ;;  %v729_v1 = vld [vmem:[%s6029_s5 + $0x8] sm:$0xff]  ;;  %v840_v37 = vadd.s32 1, %v790_v32  ;;  %v852_v39 = vadd.s32 2, %v790_v32  ;;  %v864_v40 = vadd.s32 3, %v790_v32  ;;  %vm793_vm2 = vcmp.ge.s32.totalorder %v791_v33, 0 }
  0x1c   : > { %s716_s28 = scalar_lea.vmem %s6030_s7, %s6006_s1  ;;  %v3910_v2 = vld [vmem:[%s6031_s0] ss:$0 sm:$0xff]  ;;  %vm805_vm3 = vcmp.ge.s32.totalorder %v803_v34, 0  ;;  %v876_v42 = vadd.s32 4, %v790_v32  ;;  %vm817_vm4 = vcmp.ge.s32.totalorder %v815_v35, 0  ;;  %vm829_vm5 = vcmp.ge.s32.totalorder %v827_v36, 0 }
  0x1d   : > { %v726_v3 = vld [vmem:[%s716_s28] sm:$0xff]  ;;  %v727_v4 = vld [vmem:[%s716_s28 + $0x8] sm:$0xff]  ;;  %vm844_vm6 = vcmp.lt.s32.totalorder %v840_v37, 16  ;;  %v4838_v46 = vrot.slane %v4830_v41, %v6001_v38  ;;  %v4841_v47 = vsel %vm793_vm2, 1.0, %v6002_v22  ;;  %v4844_v48 = vsel %vm805_vm3, 1.0, %v6002_v22  ;;  %s6016_s7 = smov 120  }
  0x1e   : > { %v730_v5 = vadd.f32 %v728_v0, %v726_v3  ;;  %v731_v6 = vadd.f32 %v729_v1, %v727_v4  ;;  %v4491_v21 = vld [vmem:[%s6032_s26] sm:$0xff]   ;;  %v4492_v23 = vld [vmem:[%s6032_s26 + $0x8] sm:$0xff]   ;;  %vm856_vm7 = vcmp.lt.s32.totalorder %v852_v39, 16  ;;  %vm868_vm8 = vcmp.lt.s32.totalorder %v864_v40, 16  ;;  %s6039_s24 = sld [smem:[#allocation8_spill]]  ;;  %s6015_s0 = smov 96  }
  0x1f   : > { %4119 = vmatpush3.bf16.msra.mxu1 %v4491_v21  ;;  %v3911_v44 = vld [vmem:[%s6033_s3] ss:$0 sm:$0xff]  ;;  %v4850_v51 = vsel %vm817_vm4, 1.0, %v6002_v22  ;;  %v4853_v52 = vsel %vm829_vm5, 1.0, %v6002_v22  ;;  %vm880_vm9 = vcmp.lt.s32.totalorder %v876_v42, 16  ;;  %v4856_v54 = vsel %vm844_vm6, 1.0, %v6002_v22 }
  0x20   : > { %v739_v7 = vadd.f32 %v3910_v2, %v730_v5  ;;  %v740_v8 = vadd.f32 %v3910_v2, %v731_v6  ;;  %4120 = vmatprep.subr.bf16.mxu1 %v6002_v22  ;;  %v3912_v49 = vld [vmem:[%s6034_s25] ss:$0 sm:$0xff]  ;;  %v5998_v57 = vsub.s32 2, %v4819_v30  ;;  %v4862_v59 = vsel %vm856_vm7, 1.0, %v6002_v22  ;;  %s6012_s3 = smov 88   ;;  %s6008_s28 = smov 80  }
  0x21   : > { %v4865_v60 = vsel %vm868_vm8, 1.0, %v6002_v22  ;;  %v5997_v61 = vsub.s32 3, %v4819_v30  ;;  %v4871_v63 = vsel %vm880_vm9, 1.0, %v6002_v22  ;;  %vm959_vm10 = vcmp.lt.s32.totalorder %v4819_v30, 4  ;;  %s6007_s29 = smov 8   ;;  %s6010_s1 = smov 16  }
  0x22   : > { %v744_v9 = vsel %vm743_vm0, %v739_v7, 0.0  ;;  %v747_v10 = vsel %vm743_vm0, %v740_v8, 0.0  ;;  %v5996_v0 = vsub.s32 5, %v4819_v30  ;;  %vm974_vm11 = vcmp.lt.s32.totalorder %v4819_v30, 3 }
  0x23   : > { %745 = vadd.xlane.f32.xlu0 %v744_v9  ;;  %4121 = vmatpush3.bf16.msra.mxu1 %v4492_v23  ;;  %vm989_vm12 = vcmp.lt.s32.totalorder %v4819_v30, 2  ;;  %vm1004_vm13 = vcmp.lt.s32.totalorder %v4819_v30, 1  ;;  %v967_v2 = vrot.slane %v4830_v41, %v6000_v55  ;;  %v982_v3 = vrot.slane %v4830_v41, %v5999_v56 }
  0x24   : > { %4126 = vmatprep.subr.bf16.mxu1 %v6002_v22  ;;  %v997_v4 = vrot.slane %v4830_v41, %v5998_v57  ;;  %vm1027_vm14 = vcmp.lt.s32.totalorder %v4819_v30, 7  ;;  %v1012_v6 = vrot.slane %v4830_v41, %v5997_v61  ;;  %vm1042_vm15 = vcmp.lt.s32.totalorder %v4819_v30, 6  ;;  %s5035_s25 = scalar_lea.vmem %s6039_s24, %s6085_s30  ;;  %s6013_s24 = smov 119  }
  0x25   : > { %vm1057_vm2 = vcmp.lt.s32.totalorder %v4819_v30, 5  ;;  %vm1267_vm3 = vcmask 64512   ;;  %vm1166_vm4 = vcmask 130048   ;;  %vm1815_vm6 = vcmask 146504  }
  0x26   : > { %vm5012_vm5 = vmpackc.low %vm1267_vm3, %vm1267_vm3  ;;  %vm6020_vm7 = vcmask 72704   ;;  %vm6019_vm8 = vcmask 195584  }
  0x27   : > { %748 = vadd.xlane.f32.xlu0 %v747_v10 }
  0xb0   : > { %v746_v11 = vpop.xlane.xlu0 %745 }
  0xb1   : > { %v751_v12 = vmul.f32 0.03125, %v746_v11 }
  0xb3   : > { %v753_v13 = vsub.f32 %v739_v7, %v751_v12  ;;  %v5995_v7 = vsub.s32 6, %v4819_v30  ;;  %v1035_v12 = vrot.slane %v4830_v41, %v5996_v0 }
  0xb4   : > { %v749_v14 = vpop.xlane.xlu0 %748 }
  0xb5   : > { %v752_v15 = vmul.f32 0.03125, %v749_v14  ;;  %v755_v16 = vmul.f32 %v753_v13, %v753_v13 }
  0xb7   : > { %v754_v17 = vsub.f32 %v740_v8, %v752_v15  ;;  %v757_v18 = vsel %vm743_vm0, %v755_v16, 0.0  ;;  %v4493_v8 = vld [vmem:[%s5944_s9] sm:$0xff]  }
  0xb8   : > { %758 = vadd.xlane.f32.xlu1 %v757_v18 }
  0xb9   : > { %v756_v19 = vmul.f32 %v754_v17, %v754_v17 }
  0xbb   : > { %v760_v20 = vsel %vm743_vm0, %v756_v19, 0.0 }
  0xbc   : > { %761 = vadd.xlane.f32.xlu1 %v760_v20 }
 0x145   : > { %v759_v24 = vpop.xlane.xlu1 %758 }
 0x146   : > { %v763_v25 = vmul.f32 0.03125, %v759_v24 }
 0x148   : > { %v765_v27 = vadd.f32 1e-12, %v763_v25 }
 0x149   : > { %v762_v28 = vpop.xlane.xlu1 %761 }
 0x14a   : > { %4517 = vrsqrt.f32 %v765_v27  ;;  %v764_v29 = vmul.f32 0.03125, %v762_v28 }
 0x14c   : > { %v766_v31 = vadd.f32 1e-12, %v764_v29 }
 0x14e   : > { %4519 = vrsqrt.f32 %v766_v31 }
 0x154   : > { %v4518_v43 = vpop.eup %4517 }
 0x155   : > { %v769_v45 = vmul.f32 %v4518_v43, %v753_v13 }
 0x157   : > { %v777_v50 = vmul.f32 %v3911_v44, %v769_v45 }
 0x158   : > { %v4520_v53 = vpop.eup %4519 }
 0x159   : > { %v770_v58 = vmul.f32 %v4520_v53, %v754_v17  ;;  %v4868_v62 = vadd.f32 %v3912_v49, %v777_v50 }
 0x15b   : > { %v778_v1 = vmul.f32 %v3911_v44, %v770_v58  ;;  %v957_v9 = vrot.slane %v4868_v62, 4  ;;  %v972_v10 = vrot.slane %v4868_v62, 5  ;;  %v987_v11 = vrot.slane %v4868_v62, 6 }
 0x15c   : > { %v1002_v17 = vrot.slane %v4868_v62, 7  ;;  %v1025_v19 = vrot.slane %v4868_v62, 1  ;;  %v1040_v20 = vrot.slane %v4868_v62, 2 }
 0x15d   : > { %v4888_v5 = vadd.f32 %v3912_v49, %v778_v1 }
 0x15f   : > { %v891_v13 = vpack.c.bf16 %v4888_v5, %v4868_v62  ;;  %v958_v14 = vrot.slane %v4888_v5, 4  ;;  %v973_v15 = vrot.slane %v4888_v5, 5  ;;  %v988_v16 = vrot.slane %v4888_v5, 6 }
 0x160   : > { %v1003_v18 = vrot.slane %v4888_v5, 7  ;;  %v1026_v31 = vrot.slane %v4888_v5, 1  ;;  %v1041_v35 = vrot.slane %v4888_v5, 2  ;;  %v1056_v45 = vrot.slane %v4888_v5, 3 }
 0x161   : > { %4123 = vmatmul.mubr.msk.bf16.vlgmr.msra.gmra.mrb[0].mxu1 %vm743_vm0, %v891_v13  ;;  %v4917_v21 = vsel %vm959_vm10, %v957_v9, %v958_v14  ;;  %v961_v23 = vsel %vm959_vm10, %v958_v14, %v957_v9  ;;  %v975_v24 = vsel %vm974_vm11, %v972_v10, %v973_v15  ;;  %v976_v25 = vsel %vm974_vm11, %v973_v15, %v972_v10 }
 0x162   : > { %4127 = vmatpush3.bf16.msra.mxu1 %v4493_v8  ;;  %4130 = vmatprep.mubr.msk.bf16.mxu1 %vm4627_vm1, %v6002_v22  ;;  %v962_v27 = vmul.f32 %v4841_v47, %v961_v23  ;;  %v969_v28 = vmul.f32 %v967_v2, %v4917_v21  ;;  %v977_v29 = vmul.f32 %v4844_v48, %v976_v25  ;;  %v5994_v8 = vsub.s32 7, %v4819_v30 }
 0x163   : > { %4128 = vmatprep.subr.bf16.mxu1 %v6002_v22  ;;  %v984_v32 = vmul.f32 %v982_v3, %v975_v24  ;;  %v990_v33 = vsel %vm989_vm12, %v987_v11, %v988_v16  ;;  %v991_v34 = vsel %vm989_vm12, %v988_v16, %v987_v11  ;;  %v1005_v40 = vsel %vm1004_vm13, %v1002_v17, %v1003_v18 }
 0x164   : > { %v968_v36 = vmul.f32 %v967_v2, %v962_v27  ;;  %v983_v37 = vmul.f32 %v982_v3, %v977_v29  ;;  %v992_v39 = vmul.f32 %v4850_v51, %v991_v34  ;;  %v999_v43 = vmul.f32 %v997_v4, %v990_v33 }
 0x165   : > { %v986_v42 = vadd.f32 %v984_v32, %v969_v28  ;;  %v1006_v44 = vsel %vm1004_vm13, %v1003_v18, %v1002_v17  ;;  %v1029_v58 = vsel %vm1027_vm14, %v1026_v31, %v1025_v19  ;;  %v1014_v2 = vmul.f32 %v1012_v6, %v1005_v40 }
 0x166   : > { %4129 = vmatpush3.bf16.msra.mxu1 %v4494_v26  ;;  %v985_v49 = vadd.f32 %v983_v37, %v968_v36  ;;  %v998_v50 = vmul.f32 %v997_v4, %v992_v39  ;;  %v1007_v53 = vmul.f32 %v4853_v52, %v1006_v44  ;;  %v1031_v3 = vmul.f32 %v4856_v54, %v1029_v58 }
 0x167   : > { %v1001_v1 = vadd.f32 %v999_v43, %v986_v42  ;;  %v1044_v11 = vsel %vm1042_vm15, %v1041_v35, %v1040_v20  ;;  %v1055_v13 = vrot.slane %v4868_v62, 3  ;;  %v1022_v4 = vmul.f32 %v4838_v46, %v4888_v5 }
 0x168   : > { %v1000_v9 = vadd.f32 %v998_v50, %v985_v49  ;;  %v1013_v10 = vmul.f32 %v1012_v6, %v1007_v53  ;;  %v1028_v15 = vsel %vm1027_vm14, %v1025_v19, %v1026_v31  ;;  %v1046_v16 = vmul.f32 %v4862_v59, %v1044_v11  ;;  %v3921_v53 = vld [vmem:[%s6035_s2] ss:$0 sm:$0xff] }
 0x169   : > { %v1016_v14 = vadd.f32 %v1014_v2, %v1001_v1  ;;  %v1021_v18 = vmul.f32 %v4838_v46, %v4868_v62  ;;  %v1050_v6 = vrot.slane %v4830_v41, %v5995_v7  ;;  %v1059_v24 = vsel %vm1057_vm2, %v1056_v45, %v1055_v13  ;;  %v3926_v11 = vld [vmem:[%s5945_s10] ss:$0 sm:$0xff] }
 0x16a   : > { %v1015_v17 = vadd.f32 %v1013_v10, %v1000_v9  ;;  %v1037_v26 = vmul.f32 %v1035_v12, %v1031_v3  ;;  %v1043_v27 = vsel %vm1042_vm15, %v1040_v20, %v1041_v35  ;;  %v1061_v19 = vmul.f32 %v4865_v60, %v1059_v24  ;;  %v3925_v20 = vld [vmem:[%s5943_s8 + $0x8] ss:$0 sm:$0xff] }
 0x16b   : > { %v1024_v25 = vadd.f32 %v1022_v4, %v1016_v14  ;;  %v1036_v29 = vmul.f32 %v1035_v12, %v1028_v15  ;;  %v1065_v46 = vrot.slane %v4830_v41, %v5994_v8  ;;  %v1052_v32 = vmul.f32 %v1050_v6, %v1046_v16 }
 0x16c   : > { %v1023_v28 = vadd.f32 %v1021_v18, %v1015_v17  ;;  %v1058_v33 = vsel %vm1057_vm2, %v1055_v13, %v1056_v45  ;;  %v1051_v36 = vmul.f32 %v1050_v6, %v1043_v27  ;;  %v1071_v37 = vmul.f32 %v4871_v63, %v961_v23  ;;  %v4495_v23 = vld [vmem:[%s5946_s11] sm:$0xff]  }
 0x16d   : > { %v1039_v31 = vadd.f32 %v1037_v26, %v1024_v25  ;;  %v1067_v39 = vmul.f32 %v1065_v46, %v1061_v19  ;;  %v1066_v40 = vmul.f32 %v1065_v46, %v1058_v33  ;;  %v1076_v41 = vmul.f32 %v3925_v20, %v4917_v21  ;;  %4135 = vmatpush3.bf16.msra.mxu0 %v4495_v23 }
 0x16e   : > { %v1038_v34 = vadd.f32 %v1036_v29, %v1023_v28  ;;  %v1077_v44 = vmul.f32 %v3925_v20, %v1071_v37  ;;  %v6036_v46 = vmov 0 }
 0x16f   : > { %v1054_v35 = vadd.f32 %v1052_v32, %v1039_v31  ;;  %v6037_v46 = vsel %vm5012_vm5, 4294967295, %v6036_v46 }
 0x170   : > { %v1053_v12 = vadd.f32 %v1051_v36, %v1038_v34  ;;  %6038 = vst [vmem:[#allocation2_spill] sm:$0xff] %v6037_v46 }
 0x171   : > { %v1069_v42 = vadd.f32 %v1067_v39, %v1054_v35  ;;  %v3937_v39 = vld [vmem:[%s5035_s25] ss:$0 sm:$0xff] }
 0x172   : > { %v1068_v43 = vadd.f32 %v1066_v40, %v1053_v12 }
 0x173   : > { %v1079_v50 = vadd.f32 %v1077_v44, %v1069_v42 }
 0x174   : > { %v1078_v49 = vadd.f32 %v1076_v41, %v1068_v43 }
 0x176   : > { %v1084_v45 = vpack.c.bf16 %v1079_v50, %v1078_v49 }
 0x178   : > { %4131 = vmatmul.mubr.msk.bf16.vlgmr.msra.gmra.mrb[4].mxu1 %vm743_vm0, %v1084_v45  ;;  %v3930_v45 = vld [vmem:[%s5947_s12] ss:$0 sm:$0xff] }
 0x234   : > { %v948_v58 = vpop.f32.mrb[0].mxu1 }
 0x235   : > { %v4986_v1 = vadd.f32 %v3921_v53, %v948_v58  ;;  %v4124_v21 = vpop.f32.mrb[1].mxu1 }
 0x236   : > { %v951_v2 = vpop.f32.mrb[2].mxu1 }
 0x237   : > { %v4988_v3 = vadd.f32 %v3921_v53, %v951_v2  ;;  %v4125_v9 = vpop.f32.mrb[3].mxu1  ;;  %4144 = vmatprep.mubr.msk.f32.mxu1 %vm1267_vm3, %v4986_v1 }
 0x239   : > { %v4994_v10 = vpack.i.bf16 %v4988_v3, %v4986_v1 }
 0x23b   : > { %4358 = vrot.lane.b32.xlu1 %v4994_v10, %s4628_s6  ;;  %4353 = vrot.lane.b32.xlu0 %v4994_v10, %s6018_s27  ;;  %s6083_s27 = sshll.u32 %s6085_s30, 4 }
 0x23f   : > { %1611 = vrot.lane.b32.xlu1 %v4986_v1, %s6016_s7 }
 0x243   : > { %1613 = vrot.lane.b32.xlu1 %v4988_v3, %s6016_s7  ;;  %s6080_s7 = smov 16  }
 0x24b   : > { %v1141_v13 = vpop.f32.mrb[4].mxu1 }
 0x24c   : > { %v1142_v14 = vadd.f32 %v3926_v11, %v1141_v13  ;;  %v4132_v4 = vpop.f32.mrb[5].mxu1 }
 0x24d   : > { %v1144_v15 = vpop.f32.mrb[6].mxu1 }
 0x24e   : > { %v1145_v16 = vadd.f32 %v3926_v11, %v1144_v15  ;;  %v4133_v17 = vpop.f32.mrb[7].mxu1  ;;  %v1148_v18 = vmul.f32 %v1142_v14, %v4986_v1 }
 0x250   : > { %v1149_v6 = vmul.f32 %v1145_v16, %v4988_v3 }
 0x252   : > { %v1152_v24 = vpack.c.bf16 %v1149_v6, %v1148_v18 }
 0x254   : > { %4137 = vmatmul.mubr.msk.bf16.vlgmr.msra.gmra.mrb[0].mxu0 %vm1166_vm4, %v1152_v24 }
 0x2ad   : > { %v4359_v25 = vpop.permute.xlu1 %4358  ;;  %v4354_v26 = vpop.permute.xlu0 %4353 }
 0x2ae   : > { %v4361_v27 = vunpack.i.h.bf16 %v4359_v25  ;;  %v4360_v19 = vunpack.i.l.bf16 %v4359_v25  ;;  %v4356_v28 = vunpack.i.h.bf16 %v4354_v26  ;;  %v4355_v29 = vunpack.i.l.bf16 %v4354_v26 }
 0x2b0   : > { %v4284_v31 = vpack.c.bf16 %v4361_v27, %v4360_v19  ;;  %v4274_v32 = vpack.c.bf16 %v4356_v28, %v4355_v29 }
 0x2b1   : > { %v1612_v33 = vpop.permute.xlu1 %1611 }
 0x2b2   : > { %4276 = vmatprep.subr.msk.bf16.mxu1 %vm5012_vm5, %v4274_v32  ;;  %4286 = vmatprep.subr.msk.bf16.mxu0 %vm5012_vm5, %v4284_v31 }
 0x2b3   : > { %4158 = vmatprep.mubr.msk.f32.mxu0 %vm1267_vm3, %v1612_v33  ;;  %4279 = vmatpush3.bf16.xpose.msk.msra.mxu1 %vm5012_vm5, %v4274_v32 }
 0x2b4   : > { %4289 = vmatpush3.bf16.xpose.msk.msra.mxu0 %vm5012_vm5, %v4284_v31 }
 0x2b5   : > { %4168 = vmatprep.subr.bf16.mxu0 %v6002_v22  ;;  %v1614_v34 = vpop.permute.xlu1 %1613 }
 0x2ba   : > { %4145 = vmatmul.mubr.msk.f32.vlgmr.msra.gmra.mrb[8].mxu1 %vm1267_vm3, %v4988_v3 }
 0x2bb   : > { %4159 = vmatmul.mubr.msk.f32.vlgmr.msra.gmra.mrb[4].mxu0 %vm1267_vm3, %v1614_v34 }
 0x2bc   : > { %4172 = vmatprep.mubr.msk.bf16.mxu0 %vm4627_vm1, %v6002_v22 }
 0x327   : > { %v1204_v36 = vpop.f32.mrb[0].mxu0 }
 0x328   : > { %v4138_v37 = vpop.f32.mrb[1].mxu0  ;;  %v1205_v15 = vadd.f32 %v3930_v45, %v1204_v36 }
 0x329   : > { %v1207_v20 = vpop.f32.mrb[2].mxu0 }
 0x32a   : > { %v4139_v35 = vpop.f32.mrb[3].mxu0  ;;  %v5041_v53 = vadd.f32 %v3930_v45, %v1207_v20  ;;  %v1816_v17 = vsel %vm1815_vm6, %v1205_v15, -inf  ;;  %v1471_v18 = vsel %vm6020_vm7, %v1205_v15, -inf }
 0x32c   : > { %v1819_v11 = vsel %vm1815_vm6, %v5041_v53, -inf  ;;  %v1474_v4 = vsel %vm6020_vm7, %v5041_v53, -inf }
 0x38d   : > { %v4146_v12 = vpop.f32.mrb[8].mxu1 }
 0x38e   : > { %v1352_v40 = vmul.f32 0.35355338, %v4146_v12  ;;  %v4160_v42 = vpop.f32.mrb[4].mxu0  ;;  %v1342_v43 = vpop.f32.mrb[9].mxu1 }
 0x38f   : > { %v1351_v41 = vmul.f32 0.35355338, %v1342_v43  ;;  %v1693_v44 = vpop.f32.mrb[5].mxu0  ;;  %v1703_v21 = vmul.f32 0.35355338, %v4160_v42 }
 0x390   : > { %v1702_v49 = vmul.f32 0.35355338, %v1693_v44  ;;  %v1360_v50 = vadd.f32 %v3937_v39, %v1352_v40 }
 0x391   : > { %v1359_v23 = vadd.f32 %v3937_v39, %v1351_v41  ;;  %v1705_v14 = vadd.f32 %v3937_v39, %v1703_v21 }
 0x392   : > { %v1364_v58 = vsel %vm1166_vm4, %v1360_v50, -inf  ;;  %v1704_v9 = vadd.f32 %v3937_v39, %v1702_v49 }
 0x393   : > { %1365 = vmax.xlane.f32.xlu1 %v1364_v58  ;;  %v1361_v2 = vsel %vm1166_vm4, %v1359_v23, -inf  ;;  %v1709_v16 = vsel %vm1166_vm4, %v1705_v14, -inf }
 0x394   : > { %1362 = vmax.xlane.f32.xlu0 %v1361_v2  ;;  %v1706_v13 = vsel %vm1166_vm4, %v1704_v9, -inf }
 0x397   : > { %1820 = vmax.xlane.f32.xlu1 %v1819_v11 }
 0x398   : > { %1707 = vmax.xlane.f32.xlu0 %v1706_v13 }
 0x39b   : > { %1475 = vmax.xlane.f32.xlu1 %v1474_v4 }
 0x39c   : > { %1710 = vmax.xlane.f32.xlu0 %v1709_v16 }
 0x3a0   : > { %1817 = vmax.xlane.f32.xlu0 %v1816_v17 }
 0x3a4   : > { %1472 = vmax.xlane.f32.xlu0 %v1471_v18 }
 0x420   : > { %v1366_v6 = vpop.xlane.xlu1 %1365 }
 0x421   : > { %v1368_v24 = vsub.f32 %v1360_v50, %v1366_v6  ;;  %v1363_v25 = vpop.xlane.xlu0 %1362 }
 0x422   : > { %v1367_v26 = vsub.f32 %v1359_v23, %v1363_v25 }
 0x423   : > { %v1371_v27 = vmul.f32 1.442695, %v1368_v24 }
 0x424   : > { %v1369_v19 = vmul.f32 1.442695, %v1367_v26  ;;  %v1821_v44 = vpop.xlane.xlu1 %1820 }
 0x425   : > { %4521 = vpow2.f32 %v1371_v27  ;;  %v1708_v28 = vpop.xlane.xlu0 %1707  ;;  %v1823_v49 = vsub.f32 %v5041_v53, %v1821_v44 }
 0x426   : > { %4523 = vpow2.f32 %v1369_v19  ;;  %v1712_v29 = vsub.f32 %v1704_v9, %v1708_v28 }
 0x427   : > { %v1826_v45 = vmul.f32 1.442695, %v1823_v49 }
 0x428   : > { %v1714_v31 = vmul.f32 1.442695, %v1712_v29  ;;  %v1476_v11 = vpop.xlane.xlu1 %1475 }
 0x429   : > { %v1711_v32 = vpop.xlane.xlu0 %1710  ;;  %v1478_v13 = vsub.f32 %v5041_v53, %v1476_v11  ;;  %v5992_v53 = vmov 0  }
 0x42a   : > { %4525 = vpow2.f32 %v1714_v31  ;;  %v1713_v33 = vsub.f32 %v1705_v14, %v1711_v32  ;;  %4373 = vset.pattern.permute.xlu1 %v5992_v53 }
 0x42b   : > { %v1481_v14 = vmul.f32 1.442695, %v1478_v13  ;;  %v5968_v13 = vmov 12  }
 0x42c   : > { %v1716_v34 = vmul.f32 1.442695, %v1713_v33 }
 0x42d   : > { %v1818_v42 = vpop.xlane.xlu0 %1817 }
 0x42e   : > { %4527 = vpow2.f32 %v1716_v34  ;;  %v1822_v41 = vsub.f32 %v1205_v15, %v1818_v42 }
 0x42f   : > { %v5053_v36 = vpop.eup %4521 }
 0x430   : > { %v5055_v37 = vpop.eup %4523  ;;  %v1376_v20 = vsel %vm1166_vm4, %v5053_v36, 0.0  ;;  %v1824_v50 = vmul.f32 1.442695, %v1822_v41 }
 0x431   : > { %1377 = vadd.xlane.f32.xlu1 %v1376_v20  ;;  %v1373_v35 = vsel %vm1166_vm4, %v5055_v37, 0.0  ;;  %v1473_v21 = vpop.xlane.xlu0 %1472 }
 0x432   : > { %1374 = vadd.xlane.f32.xlu0 %v1373_v35  ;;  %4529 = vpow2.f32 %v1824_v50  ;;  %v1477_v2 = vsub.f32 %v1205_v15, %v1473_v21  ;;  %v5991_v15 = vmov 4  }
 0x433   : > { %4531 = vpow2.f32 %v1826_v45  ;;  %4372 = vset.pattern.permute.xlu0 %v5991_v15 }
 0x434   : > { %v5061_v39 = vpop.eup %4525  ;;  %v1479_v9 = vmul.f32 1.442695, %v1477_v2 }
 0x435   : > { %v1718_v12 = vsel %vm1166_vm4, %v5061_v39, 0.0 }
 0x436   : > { %1719 = vadd.xlane.f32.xlu0 %v1718_v12  ;;  %4533 = vpow2.f32 %v1479_v9  ;;  %v5987_v9 = vmov 2  }
 0x437   : > { %4535 = vpow2.f32 %v1481_v14 }
 0x438   : > { %v5065_v40 = vpop.eup %4527 }
 0x439   : > { %v1721_v43 = vsel %vm1166_vm4, %v5065_v40, 0.0 }
 0x43a   : > { %1722 = vadd.xlane.f32.xlu1 %v1721_v43 }
 0x43c   : > { %v5074_v23 = vpop.eup %4529 }
 0x43d   : > { %v5078_v58 = vpop.eup %4531 }
 0x44b   : > { %4368 = vrot.lane.b32.xlu1 %v4994_v10, %s6012_s3  ;;  %s6056_s3 = smov 88  }
 0x44c   : > { %4363 = vrot.lane.b32.xlu0 %v4994_v10, %s6015_s0  ;;  %v4534_v10 = vpop.eup %4533  ;;  %s724_s0 = scalar_lea.vmem %s5958_s23, %s6083_s27 }
 0x44d   : > { %v1483_v4 = vsel %vm6020_vm7, %v4534_v10, 0.0  ;;  %v5084_v16 = vpop.eup %4535 }
 0x44e   : > { %v1486_v17 = vsel %vm6020_vm7, %v5084_v16, 0.0 }
 0x44f   : > { %1830 = vrot.lane.b32.xlu1 %v5074_v23, %s6013_s24 }
 0x453   : > { %1832 = vrot.lane.b32.xlu1 %v5078_v58, %s6013_s24  ;;  %s6055_s24 = smov 119  }
 0x46b   : > { %1484 = vadd.xlane.f32.xlu0 %v1483_v4 }
 0x477   : > { %1487 = vadd.xlane.f32.xlu1 %v1486_v17 }
 0x488   : > { %1215 = vrot.lane.b32.xlu1 %v4988_v3, %s6008_s28 }
 0x4be   : > { %v1378_v18 = vpop.xlane.xlu1 %1377 }
 0x4bf   : > { %v1375_v6 = vpop.xlane.xlu0 %1374 }
 0x4c0   : > { %4537 = vrcp.f32 %v1375_v6  ;;  %v5965_v6 = vmov 5  }
 0x4c1   : > { %4539 = vrcp.f32 %v1378_v18 }
 0x4c3   : > { %v1720_v24 = vpop.xlane.xlu0 %1719 }
 0x4c4   : > { %4541 = vrcp.f32 %v1720_v24  ;;  %v5978_v24 = vmov 9  }
 0x4c7   : > { %v1723_v25 = vpop.xlane.xlu1 %1722  ;;  %v4364_v26 = vpop.permute.xlu0 %4363 }
 0x4c8   : > { %4543 = vrcp.f32 %v1723_v25  ;;  %v4366_v27 = vunpack.i.h.bf16 %v4364_v26  ;;  %v4365_v19 = vunpack.i.l.bf16 %v4364_v26  ;;  %v5976_v25 = vmov 6  }
 0x4c9   : > { %v5984_v26 = vmov 10  }
 0x4ca   : > { %v4538_v28 = vpop.eup %4537  ;;  %v4280_v29 = vpack.c.bf16 %v4366_v27, %v4365_v19  ;;  %v5974_v27 = vmov 11  }
 0x4cb   : > { %v4540_v31 = vpop.eup %4539  ;;  %v4369_v32 = vpop.permute.xlu1 %4368  ;;  %v1380_v33 = vmul.f32 %v4538_v28, %v5055_v37 }
 0x4cc   : > { %v4371_v34 = vunpack.i.h.bf16 %v4369_v32  ;;  %v4370_v20 = vunpack.i.l.bf16 %v4369_v32  ;;  %4281 = vmatprep.subr.bf16.mxu1 %v4280_v29  ;;  %v1382_v12 = vmul.f32 %v4540_v31, %v5053_v36  ;;  %v5970_v31 = vmov 17  }
 0x4cd   : > { %4283 = vmatpush3.bf16.msra.mxu1 %v4280_v29  ;;  %4151 = vmatprep.mubr.msk.f32.mxu1 %vm1166_vm4, %v1380_v33  ;;  %v5962_v29 = vmov 8   ;;  %v5986_v32 = vmov 3   ;;  %v5963_v33 = vmov 15  }
 0x4ce   : > { %v4542_v35 = vpop.eup %4541  ;;  %v4290_v42 = vpack.c.bf16 %v4371_v34, %v4370_v20  ;;  %v5972_v34 = vmov 7  }
 0x4cf   : > { %v1831_v43 = vpop.permute.xlu1 %1830  ;;  %v1725_v41 = vmul.f32 %v4542_v35, %v5061_v39 }
 0x4d0   : > { %4152 = vmatmul.mubr.msk.f32.vlgmr.msra.gmra.mrb[10].mxu1 %vm1166_vm4, %v1382_v12  ;;  %4291 = vmatprep.subr.bf16.mxu1 %v4290_v42  ;;  %v1836_v44 = vsel %vm6020_vm7, %v1831_v43, 0.0 }
 0x4d1   : > { %1837 = vadd.xlane.f32.xlu0 %v1836_v44  ;;  %4293 = vmatpush3.bf16.msra.mxu1 %v4290_v42 }
 0x4d2   : > { %v4544_v37 = vpop.eup %4543  ;;  %4165 = vmatprep.mubr.msk.f32.mxu1 %vm1166_vm4, %v1725_v41  ;;  %4176 = vmatprep.subr.bf16.mxu1 %v6002_v22 }
 0x4d3   : > { %v1833_v49 = vpop.permute.xlu1 %1832  ;;  %v1727_v50 = vmul.f32 %v4544_v37, %v5065_v40  ;;  %v5989_v40 = vmov 1  }
 0x4d4   : > { %v1839_v36 = vsel %vm6020_vm7, %v1833_v49, 0.0  ;;  %vm2271_vm7 = vcmask 523264  }
 0x4d5   : > { %1840 = vadd.xlane.f32.xlu0 %v1839_v36  ;;  %4166 = vmatmul.mubr.msk.f32.vlgmr.msra.gmra.mrb[12].mxu1 %vm1166_vm4, %v1727_v50 }
 0x4d6   : > { %4180 = vmatprep.mubr.msk.bf16.mxu1 %vm4627_vm1, %v6002_v22 }
 0x4eb   : > { %1213 = vrot.lane.b32.xlu0 %v4986_v1, %s6008_s28 }
 0x4f8   : > { %v1485_v39 = vpop.xlane.xlu0 %1484 }
 0x4f9   : > { %4545 = vrcp.f32 %v1485_v39 }
 0x503   : > { %v4546_v45 = vpop.eup %4545 }
 0x504   : > { %v5107_v21 = vmul.f32 %v4546_v45, %v4534_v10  ;;  %v1488_v2 = vpop.xlane.xlu1 %1487  ;;  %v5982_v10 = vmov 13  }
 0x505   : > { %4547 = vrcp.f32 %v1488_v2 }
 0x506   : > { %1495 = vperm.xlu1 %4373, %v5107_v21   ;;  %1544 = vperm.xlu0 %4372, %v5107_v21  }
 0x508   : > { %v5166_v41 = vpop.permute.xlu1 %1215 }
 0x50a   : > { %4374 = vset.pattern.permute.xlu1 %v5989_v40  ;;  %4375 = vset.pattern.permute.xlu0 %v5987_v9 }
 0x50b   : > { %1508 = vperm.xlu1 %4374, %v5107_v21   ;;  %1520 = vperm.xlu0 %4375, %v5107_v21  }
 0x50f   : > { %v4548_v11 = vpop.eup %4547  ;;  %4376 = vset.pattern.permute.xlu1 %v5991_v15  ;;  %4386 = vset.pattern.permute.xlu0 %v5968_v13 }
 0x510   : > { %v5118_v14 = vmul.f32 %v4548_v11, %v5084_v16 }
 0x512   : > { %1548 = vperm.xlu1 %4376, %v5118_v14  }
 0x516   : > { %4377 = vset.pattern.permute.xlu1 %v5992_v53 }
 0x517   : > { %1500 = vperm.xlu1 %4377, %v5118_v14  }
 0x51b   : > { %4378 = vset.pattern.permute.xlu1 %v5989_v40 }
 0x51c   : > { %1512 = vperm.xlu1 %4378, %v5118_v14  }
 0x520   : > { %4379 = vset.pattern.permute.xlu1 %v5987_v9 }
 0x521   : > { %1524 = vperm.xlu1 %4379, %v5118_v14  }
 0x525   : > { %4380 = vset.pattern.permute.xlu1 %v5982_v10 }
 0x55e   : > { %v1838_v4 = vpop.xlane.xlu0 %1837 }
 0x55f   : > { %4549 = vrcp.f32 %v1838_v4 }
 0x562   : > { %v1841_v18 = vpop.xlane.xlu0 %1840 }
 0x563   : > { %4551 = vrcp.f32 %v1841_v18 }
 0x566   : > { %v5170_v37 = vpop.permute.xlu0 %1213 }
 0x569   : > { %v4550_v16 = vpop.eup %4549 }
 0x56a   : > { %v1843_v17 = vmul.f32 %v4550_v16, %v5074_v23  ;;  %v5966_v23 = vmov 16  }
 0x56c   : > { %1885 = vperm.xlu0 %4386, %v1843_v17   ;;  %1897 = vperm.xlu1 %4380, %v1843_v17  }
 0x56d   : > { %v4552_v19 = vpop.eup %4551 }
 0x56e   : > { %v1845_v28 = vmul.f32 %v4552_v19, %v5078_v58  ;;  %v5980_v58 = vmov 14  }
 0x570   : > { %4388 = vset.pattern.permute.xlu0 %v5965_v6  ;;  %4381 = vset.pattern.permute.xlu1 %v5978_v24 }
 0x571   : > { %1568 = vperm.xlu0 %4388, %v5118_v14   ;;  %1848 = vperm.xlu1 %4381, %v1843_v17  }
 0x575   : > { %4390 = vset.pattern.permute.xlu0 %v5976_v25  ;;  %4382 = vset.pattern.permute.xlu1 %v5984_v26 }
 0x576   : > { %1576 = vperm.xlu0 %4390, %v5107_v21   ;;  %1861 = vperm.xlu1 %4382, %v1843_v17  }
 0x57a   : > { %4394 = vset.pattern.permute.xlu0 %v5966_v23  ;;  %4383 = vset.pattern.permute.xlu1 %v5974_v27 }
 0x57b   : > { %1941 = vperm.xlu0 %4394, %v1843_v17   ;;  %1873 = vperm.xlu1 %4383, %v1843_v17  }
 0x57f   : > { %4396 = vset.pattern.permute.xlu0 %v5962_v29  ;;  %4384 = vset.pattern.permute.xlu1 %v5982_v10  ;;  %v1238_v10 = vrot.slane %v5166_v41, 7 }
 0x580   : > { %1604 = vperm.xlu0 %4396, %v5118_v14   ;;  %1901 = vperm.xlu1 %4384, %v1845_v28  }
 0x584   : > { %4397 = vset.pattern.permute.xlu0 %v5970_v31  ;;  %4385 = vset.pattern.permute.xlu1 %v5986_v32 }
 0x585   : > { %1953 = vperm.xlu0 %4397, %v1843_v17   ;;  %1532 = vperm.xlu1 %4385, %v5107_v21   ;;  %v1496_v44 = vpop.permute.xlu1 %1495  ;;  %v1545_v49 = vpop.permute.xlu0 %1544 }
 0x586   : > { %v1551_v36 = vmul.f32 %v1545_v49, %v4986_v1 }
 0x589   : > { %4398 = vset.pattern.permute.xlu0 %v5978_v24  ;;  %1536 = vperm.xlu1 %4385, %v5118_v14  }
 0x58a   : > { %1853 = vperm.xlu0 %4398, %v1845_v28   ;;  %v1509_v50 = vpop.permute.xlu1 %1508 }
 0x58d   : > { %4387 = vset.pattern.permute.xlu1 %v5965_v6  ;;  %v1220_v6 = vrot.slane %v5166_v41, 4 }
 0x58e   : > { %4400 = vset.pattern.permute.xlu0 %v5974_v27  ;;  %1564 = vperm.xlu1 %4387, %v5107_v21   ;;  %v1237_v27 = vrot.slane %v5170_v37, 7 }
 0x58f   : > { %1877 = vperm.xlu0 %4400, %v1845_v28  }
 0x590   : > { %v1240_v40 = vsel %vm1004_vm13, %v1238_v10, %v1237_v27 }
 0x591   : > { %v1549_v39 = vpop.permute.xlu1 %1548  ;;  %v5242_v0 = vmul.f32 %v4853_v52, %v1240_v40 }
 0x592   : > { %4389 = vset.pattern.permute.xlu1 %v5980_v58  ;;  %v1552_v45 = vmul.f32 %v1549_v39, %v4988_v3 }
 0x593   : > { %4403 = vset.pattern.permute.xlu0 %v5963_v33  ;;  %1917 = vperm.xlu1 %4389, %v1843_v17  }
 0x594   : > { %1933 = vperm.xlu0 %4403, %v1845_v28  }
 0x597   : > { %4391 = vset.pattern.permute.xlu1 %v5976_v25 }
 0x598   : > { %1580 = vperm.xlu1 %4391, %v5118_v14   ;;  %4445 = vset.pattern.permute.xlu0 %v5986_v32 }
 0x59c   : > { %4392 = vset.pattern.permute.xlu1 %v5963_v33  ;;  %v1226_v33 = vrot.slane %v5166_v41, 5 }
 0x59d   : > { %1929 = vperm.xlu1 %4392, %v1843_v17  }
 0x5a1   : > { %4393 = vset.pattern.permute.xlu1 %v5972_v34  ;;  %v1231_v34 = vrot.slane %v5170_v37, 6 }
 0x5a2   : > { %1588 = vperm.xlu1 %4393, %v5107_v21  }
 0x5a3   : > { %v5157_v20 = vpop.f32.mrb[10].mxu1 }
 0x5a4   : > { %v5159_v35 = vpop.f32.mrb[11].mxu1 }
 0x5a6   : > { %1592 = vperm.xlu1 %4393, %v5118_v14  }
 0x5a8   : > { %v4167_v12 = vpop.f32.mrb[12].mxu1 }
 0x5a9   : > { %v1806_v42 = vpop.f32.mrb[13].mxu1 }
 0x5aa   : > { %v4411_v43 = vpack.i.bf16 %v4167_v12, %v1806_v42  ;;  %4395 = vset.pattern.permute.xlu1 %v5962_v29  ;;  %v1219_v29 = vrot.slane %v5170_v37, 4 }
 0x5ab   : > { %1600 = vperm.xlu1 %4395, %v5107_v21   ;;  %v1501_v21 = vpop.permute.xlu1 %1500 }
 0x5af   : > { %4399 = vset.pattern.permute.xlu1 %v5984_v26  ;;  %v1513_v2 = vpop.permute.xlu1 %1512 }
 0x5b0   : > { %1865 = vperm.xlu1 %4399, %v1845_v28  }
 0x5b3   : > { %v1525_v11 = vpop.permute.xlu1 %1524 }
 0x5b4   : > { %4401 = vset.pattern.permute.xlu1 %v5968_v13 }
 0x5b5   : > { %1889 = vperm.xlu1 %4401, %v1845_v28  }
 0x5b9   : > { %4402 = vset.pattern.permute.xlu1 %v5980_v58  ;;  %v1232_v58 = vrot.slane %v5166_v41, 6 }
 0x5ba   : > { %1921 = vperm.xlu1 %4402, %v1845_v28  }
 0x5bb   : > { %v1234_v9 = vsel %vm989_vm12, %v1232_v58, %v1231_v34  ;;  %v5258_v40 = vsel %vm989_vm12, %v1231_v34, %v1232_v58 }
 0x5bc   : > { %v5239_v7 = vmul.f32 %v4850_v51, %v1234_v9  ;;  %v1243_v9 = vrot.slane %v5170_v37, 1 }
 0x5be   : > { %4404 = vset.pattern.permute.xlu1 %v5966_v23 }
 0x5bf   : > { %1945 = vperm.xlu1 %4404, %v1845_v28  }
 0x5c3   : > { %4405 = vset.pattern.permute.xlu1 %v5970_v31  ;;  %v5215_v31 = vsel %vm959_vm10, %v1220_v6, %v1219_v29 }
 0x5c4   : > { %1957 = vperm.xlu1 %4405, %v1845_v28   ;;  %v5228_v26 = vmul.f32 %v4841_v47, %v5215_v31 }
 0x5c8   : > { %1555 = vrot.lane.b32.xlu1 %v1551_v36, %s6008_s28 }
 0x5c9   : > { %4441 = vset.pattern.permute.xlu1 %v5991_v15 }
 0x5cc   : > { %1557 = vrot.lane.b32.xlu1 %v1552_v45, %s6008_s28 }
 0x5eb   : > { %v1898_v14 = vpop.permute.xlu1 %1897 }
 0x5ec   : > { %v1904_v4 = vmul.f32 %v1898_v14, %v4986_v1 }
 0x5ee   : > { %1908 = vrot.lane.b32.xlu1 %v1904_v4, %s6008_s28 }
 0x5f0   : > { %v5180_v16 = vpop.permute.xlu1 %1848 }
 0x5f2   : > { %4412 = vrot.lane.b32.xlu1 %v4411_v43, %s6007_s29  ;;  %s6050_s29 = smov 120  }
 0x5f5   : > { %v5183_v17 = vpop.permute.xlu1 %1861 }
 0x5fa   : > { %v5185_v18 = vpop.permute.xlu1 %1873 }
 0x5ff   : > { %v1902_v19 = vpop.permute.xlu1 %1901 }
 0x600   : > { %v1905_v28 = vmul.f32 %v1902_v19, %v4988_v3  ;;  %v1225_v3 = vrot.slane %v5170_v37, 5  ;;  %v1521_v19 = vpop.permute.xlu0 %1520 }
 0x601   : > { %v1527_v61 = vmul.f32 %v1521_v19, %v5239_v7  ;;  %v1249_v19 = vrot.slane %v5170_v37, 2 }
 0x602   : > { %1910 = vrot.lane.b32.xlu0 %v1905_v28, %s6008_s28  ;;  %v1228_v23 = vsel %vm974_vm11, %v1226_v33, %v1225_v3  ;;  %s6049_s28 = smov 112  }
 0x603   : > { %v5222_v24 = vmul.f32 %v4844_v48, %v1228_v23  ;;  %v1503_v23 = vmul.f32 %v1496_v44, %v5228_v26  ;;  %v5253_v44 = vsel %vm959_vm10, %v1219_v29, %v1220_v6  ;;  %v5268_v6 = vsel %vm1004_vm13, %v1237_v27, %v1238_v10 }
 0x604   : > { %v1533_v12 = vpop.permute.xlu1 %1532  ;;  %v5211_v13 = vpop.permute.xlu0 %1885  ;;  %v1256_v10 = vrot.slane %v5166_v41, 3 }
 0x605   : > { %v1515_v32 = vmul.f32 %v1509_v50, %v5222_v24  ;;  %v5246_v50 = vsel %vm974_vm11, %v1225_v3, %v1226_v33  ;;  %v1539_v56 = vmul.f32 %v1533_v12, %v5242_v0  ;;  %v1504_v3 = vmul.f32 %v1501_v21, %v5253_v44 }
 0x606   : > { %v1516_v57 = vmul.f32 %v1513_v2, %v5246_v50  ;;  %v1528_v2 = vmul.f32 %v1525_v11, %v5258_v40  ;;  %v1244_v12 = vrot.slane %v5166_v41, 1 }
 0x607   : > { %v1517_v8 = vadd.f32 %v1515_v32, %v1503_v23 }
 0x608   : > { %v1537_v42 = vpop.permute.xlu1 %1536  ;;  %v1569_v15 = vpop.permute.xlu0 %1568  ;;  %v1518_v29 = vadd.f32 %v1516_v57, %v1504_v3  ;;  %v1246_v34 = vsel %vm1027_vm14, %v1244_v12, %v1243_v9  ;;  %v1245_v21 = vsel %vm1027_vm14, %v1243_v9, %v1244_v12 }
 0x609   : > { %v1529_v33 = vadd.f32 %v1527_v61, %v1517_v8  ;;  %v1540_v55 = vmul.f32 %v1537_v42, %v5268_v6  ;;  %v1250_v61 = vrot.slane %v5166_v41, 2  ;;  %v1255_v8 = vrot.slane %v5170_v37, 3 }
 0x60a   : > { %v1530_v22 = vadd.f32 %v1528_v2, %v1518_v29  ;;  %v1248_v42 = vmul.f32 %v4856_v54, %v1246_v34 }
 0x60b   : > { %v1541_v58 = vadd.f32 %v1539_v56, %v1529_v33  ;;  %v1251_v57 = vsel %vm1042_vm15, %v1249_v19, %v1250_v61  ;;  %v1252_v27 = vsel %vm1042_vm15, %v1250_v61, %v1249_v19  ;;  %v1258_v9 = vsel %vm1057_vm2, %v1256_v10, %v1255_v8  ;;  %v4496_v19 = vld [vmem:[%s5948_s13] sm:$0xff]  }
 0x60c   : > { %v1577_v32 = vpop.permute.xlu0 %1576  ;;  %v1542_v3 = vadd.f32 %v1540_v55, %v1530_v22  ;;  %v1572_v2 = vmul.f32 %v1569_v15, %v1248_v42  ;;  %v1254_v12 = vmul.f32 %v4862_v59, %v1252_v27  ;;  %v1257_v41 = vsel %vm1057_vm2, %v1255_v8, %v1256_v10  ;;  %4169 = vmatpush3.bf16.msra.mxu0 %v4496_v19 }
 0x60d   : > { %v1565_v49 = vpop.permute.xlu1 %1564  ;;  %v1583_v33 = vmul.f32 %v1577_v32, %v1251_v57  ;;  %v1262_v15 = vmul.f32 %v4871_v63, %v5215_v31  ;;  %v1868_v31 = vmul.f32 %v5183_v17, %v5222_v24 }
 0x60e   : > { %v1571_v38 = vmul.f32 %v1565_v49, %v1245_v21 }
 0x610   : > { %v1942_v56 = vpop.permute.xlu0 %1941 }
 0x612   : > { %v5189_v1 = vpop.permute.xlu1 %1917 }
 0x617   : > { %v5191_v36 = vpop.permute.xlu1 %1580 }
 0x618   : > { %v1584_v32 = vmul.f32 %v5191_v36, %v1254_v12 }
 0x61c   : > { %v5193_v39 = vpop.permute.xlu1 %1929 }
 0x621   : > { %v5195_v45 = vpop.permute.xlu1 %1588 }
 0x622   : > { %v1595_v22 = vmul.f32 %v5195_v45, %v1257_v41 }
 0x625   : > { %v5197_v43 = vpop.permute.xlu1 %1592 }
 0x62a   : > { %v5199_v14 = vpop.permute.xlu1 %1600 }
 0x62b   : > { %v1607_v36 = vmul.f32 %v5199_v14, %v5253_v44 }
 0x62f   : > { %v5201_v4 = vpop.permute.xlu1 %1865 }
 0x634   : > { %v5204_v28 = vpop.permute.xlu1 %1889 }
 0x639   : > { %v5219_v25 = vpop.permute.xlu1 %1921 }
 0x63e   : > { %v5236_v53 = vpop.permute.xlu1 %1945 }
 0x643   : > { %v5260_v23 = vpop.permute.xlu1 %1957 }
 0x647   : > { %v1556_v11 = vpop.permute.xlu1 %1555 }
 0x648   : > { %v1561_v46 = vadd.f32 %v1556_v11, %v1541_v58  ;;  %v6040_v11 = vmov 0.0  }
 0x649   : > { %4170 = vmatprep.subr.bf16.mxu0 %v6040_v11 }
 0x64a   : > { %v1573_v37 = vadd.f32 %v1571_v38, %v1561_v46  ;;  %v1260_v38 = vmul.f32 %v4865_v60, %v1258_v9  ;;  %v1605_v46 = vpop.permute.xlu0 %1604  ;;  %v1880_v9 = vmul.f32 %v5185_v18, %v5239_v7  ;;  %v1924_v7 = vmul.f32 %v5189_v1, %v1245_v21  ;;  %v4497_v1 = vld [vmem:[%s5948_s13 + $0x8] sm:$0xff]  }
 0x64b   : > { %v1558_v49 = vpop.permute.xlu1 %1557  ;;  %v1608_v10 = vmul.f32 %v1605_v46, %v1262_v15  ;;  %v1893_v18 = vmul.f32 %v5204_v28, %v5268_v6  ;;  %4171 = vmatpush3.bf16.msra.mxu0 %v4497_v1 }
 0x64c   : > { %v1585_v29 = vadd.f32 %v1583_v33, %v1573_v37  ;;  %v1562_v58 = vadd.f32 %v1558_v49, %v1542_v3  ;;  %v1596_v34 = vmul.f32 %v5197_v43, %v1260_v38  ;;  %v1856_v43 = vmul.f32 %v5180_v16, %v5228_v26  ;;  %4184 = vmatprep.subr.bf16.mxu0 %v6040_v11 }
 0x64d   : > { %v1949_v28 = vmul.f32 %v5236_v53, %v1260_v38 }
 0x64e   : > { %v1574_v55 = vadd.f32 %v1572_v2, %v1562_v58  ;;  %v1597_v61 = vadd.f32 %v1595_v22, %v1585_v29  ;;  %v1954_v3 = vpop.permute.xlu0 %1953  ;;  %v1870_v2 = vadd.f32 %v1868_v31, %v1856_v43  ;;  %v1869_v29 = vmul.f32 %v5201_v4, %v5246_v50 }
 0x64f   : > { %v1892_v58 = vmul.f32 %v5211_v13, %v5242_v0  ;;  %v1936_v50 = vmul.f32 %v5193_v39, %v1251_v57  ;;  %v1960_v39 = vmul.f32 %v1954_v3, %v5253_v44 }
 0x650   : > { %v1586_v8 = vadd.f32 %v1584_v32, %v1574_v55  ;;  %v1609_v45 = vadd.f32 %v1607_v36, %v1597_v61  ;;  %v1882_v14 = vadd.f32 %v1880_v9, %v1870_v2 }
 0x652   : > { %v1598_v27 = vadd.f32 %v1596_v34, %v1586_v8  ;;  %v1854_v49 = vpop.permute.xlu0 %1853  ;;  %v1894_v17 = vadd.f32 %v1892_v58, %v1882_v14  ;;  %v1925_v34 = vmul.f32 %v5219_v25, %v1248_v42  ;;  %v1961_v25 = vmul.f32 %v5260_v23, %v1262_v15 }
 0x653   : > { %v1857_v19 = vmul.f32 %v1854_v49, %v5253_v44 }
 0x654   : > { %v1610_v33 = vadd.f32 %v1608_v10, %v1598_v27  ;;  %v1948_v10 = vmul.f32 %v1942_v56, %v1257_v41 }
 0x655   : > { %v1871_v24 = vadd.f32 %v1869_v29, %v1857_v19 }
 0x656   : > { %v4406_v37 = vpack.i.bf16 %v1610_v33, %v1609_v45  ;;  %v1878_v32 = vpop.permute.xlu0 %1877 }
 0x657   : > { %v1881_v26 = vmul.f32 %v1878_v32, %v5258_v40 }
 0x658   : > { %4407 = vrot.lane.b32.xlu0 %v4406_v37, %s6010_s1 }
 0x659   : > { %v1883_v55 = vadd.f32 %v1881_v26, %v1871_v24 }
 0x65a   : > { %v1934_v46 = vpop.permute.xlu0 %1933 }
 0x65b   : > { %v1895_v0 = vadd.f32 %v1893_v18, %v1883_v55  ;;  %v1937_v36 = vmul.f32 %v1934_v46, %v1254_v12 }
 0x660   : > { %v1909_v22 = vpop.permute.xlu1 %1908 }
 0x661   : > { %v1914_v16 = vadd.f32 %v1909_v22, %v1894_v17 }
 0x663   : > { %v1926_v4 = vadd.f32 %v1924_v7, %v1914_v16 }
 0x664   : > { %v4413_v41 = vpop.permute.xlu1 %4412 }
 0x665   : > { %v1938_v61 = vadd.f32 %v1936_v50, %v1926_v4  ;;  %v4415_v45 = vunpack.i.h.bf16 %v4413_v41  ;;  %v4414_v33 = vunpack.i.l.bf16 %v4413_v41 }
 0x667   : > { %v1950_v6 = vadd.f32 %v1948_v10, %v1938_v61  ;;  %v1989_v31 = vsel %vm1267_vm3, %v5157_v20, %v4415_v45  ;;  %v1988_v44 = vsel %vm1267_vm3, %v5159_v35, %v4414_v33  ;;  %v3946_v20 = vld [vmem:[%s5949_s14] ss:$0 sm:$0xff]  ;;  %v4501_v33 = vld [vmem:[%s5954_s19 + $0x8] sm:$0xff]  }
 0x668   : > { %v4500_v45 = vld [vmem:[%s5954_s19] sm:$0xff]  }
 0x669   : > { %v1962_v42 = vadd.f32 %v1960_v39, %v1950_v6 }
 0x674   : > { %v1911_v13 = vpop.permute.xlu0 %1910 }
 0x675   : > { %v1915_v8 = vadd.f32 %v1911_v13, %v1895_v0 }
 0x677   : > { %v1927_v40 = vadd.f32 %v1925_v34, %v1915_v8  ;;  %v4499_v34 = vld [vmem:[%s5952_s17 + $0x8] sm:$0xff]  }
 0x679   : > { %v1939_v21 = vadd.f32 %v1937_v36, %v1927_v40 }
 0x67b   : > { %v1951_v57 = vadd.f32 %v1949_v28, %v1939_v21  ;;  %v3950_v21 = vld [vmem:[%s5950_s15] ss:$0 sm:$0xff] }
 0x67d   : > { %v1963_v56 = vadd.f32 %v1961_v25, %v1951_v57 }
 0x67f   : > { %v4416_v12 = vpack.i.bf16 %v1963_v56, %v1962_v42  ;;  %v3951_v42 = vld [vmem:[%s5951_s16] ss:$0 sm:$0xff] }
 0x681   : > { %4417 = vrot.lane.b32.xlu1 %v4416_v12, %s6010_s1  ;;  %s6059_s1 = smov 80  }
 0x6ca   : > { %v4408_v27 = vpop.permute.xlu0 %4407 }
 0x6cb   : > { %v4410_v53 = vunpack.i.h.bf16 %v4408_v27  ;;  %v4409_v38 = vunpack.i.l.bf16 %v4408_v27 }
 0x6cd   : > { %v1990_v3 = vsel %vm1166_vm4, %v1988_v44, %v4409_v38  ;;  %v1991_v43 = vsel %vm1166_vm4, %v1989_v31, %v4410_v53  ;;  %v4502_v53 = vld [vmem:[%s5954_s19 + $0x10] sm:$0xff]   ;;  %v4503_v38 = vld [vmem:[%s5954_s19 + $0x18] sm:$0xff]  }
 0x6f3   : > { %v4418_v37 = vpop.permute.xlu1 %4417 }
 0x6f4   : > { %v4420_v23 = vunpack.i.h.bf16 %v4418_v37  ;;  %v4419_v15 = vunpack.i.l.bf16 %v4418_v37  ;;  %v3952_v37 = vld [vmem:[%s5953_s18] ss:$0 sm:$0xff] }
 0x6f6   : > { %v1993_v9 = vsel %vm6019_vm8, %v1990_v3, %v4419_v15  ;;  %v1994_v49 = vsel %vm6019_vm8, %v1991_v43, %v4420_v23 }
 0x6f7   : > { %v1999_v2 = vpack.c.bf16 %v1994_v49, %v1993_v9 }
 0x6f9   : > { %4173 = vmatmul.mubr.msk.bf16.vlgmr.msra.gmra.mrb[8].mxu0 %vm743_vm0, %v1999_v2 }
 0x6fa   : > { %4192 = vmatprep.mubr.msk.bf16.mxu0 %vm4627_vm1, %v6040_v11  ;;  %4185 = vmatpush3.bf16.msra.mxu0 %v4500_v45 }
 0x6fb   : > { %4186 = vmatprep.subr.bf16.mxu0 %v6040_v11 }
 0x6fe   : > { %4187 = vmatpush3.bf16.msra.mxu0 %v4501_v33 }
 0x6ff   : > { %4188 = vmatprep.subr.bf16.mxu0 %v6040_v11 }
 0x702   : > { %4189 = vmatpush3.bf16.msra.mxu0 %v4502_v53 }
 0x703   : > { %4190 = vmatprep.subr.bf16.mxu0 %v6040_v11 }
 0x706   : > { %4191 = vmatpush3.bf16.msra.mxu0 %v4503_v38 }
 0x707   : > { %4212 = vmatprep.subr.bf16.mxu0 %v6040_v11 }
 0x7cc   : > { %v2056_v35 = vpop.f32.mrb[8].mxu0 }
 0x7cd   : > { %v2057_v14 = vadd.f32 %v3946_v20, %v2056_v35  ;;  %v4174_v29 = vpop.f32.mrb[9].mxu0 }
 0x7ce   : > { %v2059_v58 = vpop.f32.mrb[10].mxu0 }
 0x7cf   : > { %v2060_v19 = vadd.f32 %v3946_v20, %v2059_v58  ;;  %v4175_v32 = vpop.f32.mrb[11].mxu0  ;;  %v2063_v22 = vadd.f32 %v2057_v14, %v4868_v62 }
 0x7d1   : > { %v2067_v24 = vsel %vm743_vm0, %v2063_v22, 0.0  ;;  %v2064_v17 = vadd.f32 %v2060_v19, %v4888_v5  ;;  %v4498_v5 = vld [vmem:[%s5952_s17] sm:$0xff]  }
 0x7d2   : > { %2068 = vadd.xlane.f32.xlu0 %v2067_v24  ;;  %4177 = vmatpush3.bf16.msra.mxu1 %v4498_v5 }
 0x7d3   : > { %v2070_v26 = vsel %vm743_vm0, %v2064_v17, 0.0  ;;  %4178 = vmatprep.subr.bf16.mxu1 %v6040_v11 }
 0x7d4   : > { %2071 = vadd.xlane.f32.xlu1 %v2070_v26 }
 0x7d6   : > { %4179 = vmatpush3.bf16.msra.mxu1 %v4499_v34 }
 0x7d7   : > { %4196 = vmatprep.subr.bf16.mxu1 %v6040_v11 }
 0x85f   : > { %v2069_v16 = vpop.xlane.xlu0 %2068 }
 0x860   : > { %v2073_v7 = vmul.f32 0.03125, %v2069_v16 }
 0x861   : > { %v2072_v18 = vpop.xlane.xlu1 %2071 }
 0x862   : > { %v2075_v55 = vsub.f32 %v2063_v22, %v2073_v7  ;;  %v2074_v46 = vmul.f32 0.03125, %v2072_v18 }
 0x864   : > { %v2076_v4 = vsub.f32 %v2064_v17, %v2074_v46  ;;  %v2077_v50 = vmul.f32 %v2075_v55, %v2075_v55 }
 0x866   : > { %v2079_v0 = vsel %vm743_vm0, %v2077_v50, 0.0  ;;  %v2078_v13 = vmul.f32 %v2076_v4, %v2076_v4 }
 0x867   : > { %2080 = vadd.xlane.f32.xlu0 %v2079_v0 }
 0x868   : > { %v2082_v62 = vsel %vm743_vm0, %v2078_v13, 0.0 }
 0x86b   : > { %2083 = vadd.xlane.f32.xlu0 %v2082_v62 }
 0x8f4   : > { %v2081_v61 = vpop.xlane.xlu0 %2080 }
 0x8f5   : > { %v2085_v8 = vmul.f32 0.03125, %v2081_v61 }
 0x8f7   : > { %v2087_v10 = vadd.f32 1e-12, %v2085_v8 }
 0x8f8   : > { %v2084_v36 = vpop.xlane.xlu0 %2083 }
 0x8f9   : > { %4553 = vrsqrt.f32 %v2087_v10  ;;  %v2086_v40 = vmul.f32 0.03125, %v2084_v36 }
 0x8fb   : > { %v2088_v1 = vadd.f32 1e-12, %v2086_v40 }
 0x8fd   : > { %4555 = vrsqrt.f32 %v2088_v1 }
 0x903   : > { %v4554_v28 = vpop.eup %4553 }
 0x904   : > { %v2091_v6 = vmul.f32 %v4554_v28, %v2075_v55 }
 0x906   : > { %v2099_v25 = vmul.f32 %v3950_v21, %v2091_v6 }
 0x907   : > { %v4556_v39 = vpop.eup %4555 }
 0x908   : > { %v2092_v57 = vmul.f32 %v4556_v39, %v2076_v4  ;;  %v5360_v12 = vadd.f32 %v3951_v42, %v2099_v25 }
 0x90a   : > { %v2100_v56 = vmul.f32 %v3950_v21, %v2092_v57 }
 0x90c   : > { %v5362_v41 = vadd.f32 %v3951_v42, %v2100_v56  ;;  %v4655_v42 = vmov -1.0  }
 0x90e   : > { %v2113_v27 = vpack.c.bf16 %v5362_v41, %v5360_v12 }
 0x910   : > { %4181 = vmatmul.mubr.msk.bf16.vlgmr.msra.gmra.mrb[16].mxu1 %vm743_vm0, %v2113_v27 }
 0x911   : > { %4200 = vmatprep.mubr.msk.bf16.mxu1 %vm4627_vm1, %v6040_v11 }
 0x9e3   : > { %v2170_v31 = vpop.f32.mrb[16].mxu1 }
 0x9e4   : > { %v2171_v44 = vadd.f32 %v3952_v37, %v2170_v31  ;;  %v4182_v23 = vpop.f32.mrb[17].mxu1 }
 0x9e5   : > { %v2173_v15 = vpop.f32.mrb[18].mxu1 }
 0x9e6   : > { %v2177_v3 = vmul.f32 0.70710677, %v2171_v44  ;;  %v2174_v43 = vadd.f32 %v3952_v37, %v2173_v15  ;;  %v4183_v9 = vpop.f32.mrb[19].mxu1  ;;  %v2225_v31 = vmul.f32 0.5, %v2171_v44 }
 0x9e8   : > { %v2183_v49 = vand.u32 2147483647, %v2177_v3  ;;  %v2178_v2 = vmul.f32 0.70710677, %v2174_v43  ;;  %vm2179_vm9 = vcmp.ge.f32.partialorder %v2177_v3, 0.0  ;;  %v2226_v23 = vmul.f32 0.5, %v2174_v43 }
 0x9e9   : > { %v2181_v56 = vsel %vm2179_vm9, 1.0, %v4655_v42 }
 0x9ea   : > { %v2185_v20 = vmul.f32 0.3275911, %v2183_v49  ;;  %v2184_v35 = vand.u32 2147483647, %v2178_v2  ;;  %v2211_v19 = vsub.f32 0.0, %v2183_v49  ;;  %vm2180_vm8 = vcmp.ge.f32.partialorder %v2178_v2, 0.0 }
 0x9eb   : > { %v2182_v53 = vsel %vm2180_vm8, 1.0, %v4655_v42  ;;  %v3956_v2 = vld [vmem:[%s5955_s20] ss:$0 sm:$0xff] }
 0x9ec   : > { %v2187_v14 = vadd.f32 1.0, %v2185_v20  ;;  %v2186_v29 = vmul.f32 0.3275911, %v2184_v35  ;;  %v2212_v32 = vsub.f32 0.0, %v2184_v35  ;;  %v2213_v24 = vmul.f32 %v2211_v19, %v2183_v49 }
 0x9ee   : > { %4557 = vrcp.f32 %v2187_v14  ;;  %v2188_v58 = vadd.f32 1.0, %v2186_v29  ;;  %v2214_v7 = vmul.f32 %v2212_v32, %v2184_v35  ;;  %v2215_v18 = vmul.f32 1.442695, %v2213_v24 }
 0x9f0   : > { %4559 = vrcp.f32 %v2188_v58  ;;  %v2217_v0 = vmul.f32 1.442695, %v2214_v7 }
 0x9f1   : > { %4561 = vpow2.f32 %v2215_v18 }
 0x9f2   : > { %4563 = vpow2.f32 %v2217_v0 }
 0x9f8   : > { %v4558_v22 = vpop.eup %4557 }
 0x9f9   : > { %v2193_v17 = vmul.f32 1.0614054, %v4558_v22 }
 0x9fa   : > { %v4560_v26 = vpop.eup %4559 }
 0x9fb   : > { %v2195_v16 = vadd.f32 -1.4531521, %v2193_v17  ;;  %v2194_v55 = vmul.f32 1.0614054, %v4560_v26  ;;  %v4562_v28 = vpop.eup %4561 }
 0x9fc   : > { %v4564_v25 = vpop.eup %4563 }
 0x9fd   : > { %v2197_v46 = vmul.f32 %v4558_v22, %v2195_v16  ;;  %v2196_v4 = vadd.f32 -1.4531521, %v2194_v55 }
 0x9ff   : > { %v2199_v50 = vadd.f32 1.4214138, %v2197_v46  ;;  %v2198_v13 = vmul.f32 %v4560_v26, %v2196_v4 }
 0xa01   : > { %v2201_v62 = vmul.f32 %v4558_v22, %v2199_v50  ;;  %v2200_v5 = vadd.f32 1.4214138, %v2198_v13  ;;  %v4505_v50 = vld [vmem:[%s6032_s26 + $0x18] sm:$0xff]  }
 0xa03   : > { %v2203_v34 = vadd.f32 -0.28449672, %v2201_v62  ;;  %v2202_v61 = vmul.f32 %v4560_v26, %v2200_v5 }
 0xa05   : > { %v2205_v8 = vmul.f32 %v4558_v22, %v2203_v34  ;;  %v2204_v10 = vadd.f32 -0.28449672, %v2202_v61 }
 0xa07   : > { %v2207_v36 = vadd.f32 0.2548296, %v2205_v8  ;;  %v2206_v40 = vmul.f32 %v4560_v26, %v2204_v10  ;;  %v3962_v10 = vld [vmem:[%s5956_s21] ss:$0 sm:$0xff] }
 0xa09   : > { %v2209_v1 = vmul.f32 %v4558_v22, %v2207_v36  ;;  %v2208_v6 = vadd.f32 0.2548296, %v2206_v40 }
 0xa0b   : > { %v2219_v21 = vmul.f32 %v4562_v28, %v2209_v1  ;;  %v2210_v39 = vmul.f32 %v4560_v26, %v2208_v6  ;;  %v3963_v1 = vld [vmem:[%s5957_s22] ss:$0 sm:$0xff] }
 0xa0d   : > { %v2221_v57 = vsub.f32 1.0, %v2219_v21  ;;  %v2220_v27 = vmul.f32 %v4564_v25, %v2210_v39  ;;  %v5419_v21 = vld [vmem:[%s5943_s8 + $0x10] sm:$0xff] }
 0xa0f   : > { %v2223_v45 = vmul.f32 %v2221_v57, %v2181_v56  ;;  %v2222_v33 = vsub.f32 1.0, %v2220_v27  ;;  %v6041_v57 = vsub.s32 4, %v4819_v30 }
 0xa11   : > { %v2227_v38 = vadd.f32 1.0, %v2223_v45  ;;  %v2224_v37 = vmul.f32 %v2222_v33, %v2182_v53  ;;  %v2494_v56 = vrot.slane %v5419_v21, %v6041_v57  ;;  %v6042_v45 = vsub.s32 0, %v4819_v30 }
 0xa12   : > { %v6043_v53 = vsub.s32 1, %v4819_v30 }
 0xa13   : > { %v2228_v15 = vadd.f32 1.0, %v2224_v37  ;;  %v2229_v9 = vmul.f32 %v2227_v38, %v2225_v31  ;;  %v2444_v33 = vrot.slane %v5419_v21, %v6042_v45  ;;  %v6044_v37 = vsub.s32 2, %v4819_v30 }
 0xa14   : > { %v2458_v38 = vrot.slane %v5419_v21, %v6043_v53 }
 0xa15   : > { %v2230_v3 = vmul.f32 %v2228_v15, %v2226_v23  ;;  %v2472_v31 = vrot.slane %v5419_v21, %v6044_v37  ;;  %v4506_v23 = vld [vmem:[%s5944_s9 + $0x10] sm:$0xff]  }
 0xa17   : > { %v2239_v49 = vpack.c.bf16 %v2230_v3, %v2229_v9  ;;  %v6045_v3 = vsub.s32 3, %v4819_v30 }
 0xa19   : > { %4193 = vmatmul.mubr.msk.bf16.vlgmr.msra.gmra.mrb[12].mxu0 %vm2271_vm7, %v2239_v49  ;;  %v2486_v49 = vrot.slane %v5419_v21, %v6045_v3 }
 0xa1a   : > { %4214 = vmatprep.mubr.msk.bf16.mxu0 %vm4627_vm1, %v6040_v11 }
 0xaec   : > { %v2309_v20 = vpop.f32.mrb[12].mxu0 }
 0xaed   : > { %v2310_v35 = vadd.f32 %v3956_v2, %v2309_v20  ;;  %v4194_v14 = vpop.f32.mrb[13].mxu0 }
 0xaee   : > { %v2312_v29 = vpop.f32.mrb[14].mxu0 }
 0xaef   : > { %v2313_v44 = vadd.f32 %v3956_v2, %v2312_v29  ;;  %v4195_v43 = vpop.f32.mrb[15].mxu0  ;;  %v2316_v58 = vadd.f32 %v2310_v35, %v5360_v12  ;;  %v6046_v2 = vsub.s32 5, %v4819_v30 }
 0xaf1   : > { %v2320_v19 = vsel %vm743_vm0, %v2316_v58, 0.0  ;;  %v2317_v32 = vadd.f32 %v2313_v44, %v5362_v41  ;;  %v4504_v41 = vld [vmem:[%s6032_s26 + $0x10] sm:$0xff]   ;;  %v2508_v20 = vrot.slane %v5419_v21, %v6046_v2 }
 0xaf2   : > { %2321 = vadd.xlane.f32.xlu1 %v2320_v19  ;;  %4197 = vmatpush3.bf16.msra.mxu1 %v4504_v41 }
 0xaf3   : > { %v2323_v22 = vsel %vm743_vm0, %v2317_v32, 0.0  ;;  %4198 = vmatprep.subr.bf16.mxu1 %v6040_v11 }
 0xaf4   : > { %2324 = vadd.xlane.f32.xlu0 %v2323_v22 }
 0xaf6   : > { %4199 = vmatpush3.bf16.msra.mxu1 %v4505_v50 }
 0xaf7   : > { %4204 = vmatprep.subr.bf16.mxu1 %v6040_v11 }
 0xb7f   : > { %v2322_v24 = vpop.xlane.xlu1 %2321 }
 0xb80   : > { %v2326_v17 = vmul.f32 0.03125, %v2322_v24 }
 0xb81   : > { %v2325_v26 = vpop.xlane.xlu0 %2324 }
 0xb82   : > { %v2328_v16 = vsub.f32 %v2316_v58, %v2326_v17  ;;  %v2327_v7 = vmul.f32 0.03125, %v2325_v26 }
 0xb84   : > { %v2329_v18 = vsub.f32 %v2317_v32, %v2327_v7  ;;  %v2330_v55 = vmul.f32 %v2328_v16, %v2328_v16 }
 0xb86   : > { %v2332_v46 = vsel %vm743_vm0, %v2330_v55, 0.0  ;;  %v2331_v4 = vmul.f32 %v2329_v18, %v2329_v18 }
 0xb87   : > { %2333 = vadd.xlane.f32.xlu1 %v2332_v46 }
 0xb88   : > { %v2335_v12 = vsel %vm743_vm0, %v2331_v4, 0.0 }
 0xb89   : > { %2336 = vadd.xlane.f32.xlu0 %v2335_v12 }
 0xc14   : > { %v2334_v0 = vpop.xlane.xlu1 %2333 }
 0xc15   : > { %v2338_v13 = vmul.f32 0.03125, %v2334_v0 }
 0xc16   : > { %v2337_v62 = vpop.xlane.xlu0 %2336 }
 0xc17   : > { %v2340_v5 = vadd.f32 1e-12, %v2338_v13  ;;  %v2339_v34 = vmul.f32 0.03125, %v2337_v62 }
 0xc19   : > { %4565 = vrsqrt.f32 %v2340_v5  ;;  %v2341_v61 = vadd.f32 1e-12, %v2339_v34 }
 0xc1b   : > { %4567 = vrsqrt.f32 %v2341_v61 }
 0xc23   : > { %v4566_v8 = vpop.eup %4565 }
 0xc24   : > { %v2344_v36 = vmul.f32 %v4566_v8, %v2328_v16  ;;  %v4507_v16 = vld [vmem:[%s5944_s9 + $0x18] sm:$0xff]  }
 0xc25   : > { %v4568_v40 = vpop.eup %4567 }
 0xc26   : > { %v2352_v28 = vmul.f32 %v3962_v10, %v2344_v36  ;;  %v2345_v6 = vmul.f32 %v4568_v40, %v2329_v18 }
 0xc28   : > { %v5421_v39 = vadd.f32 %v3963_v1, %v2352_v28  ;;  %v2353_v25 = vmul.f32 %v3962_v10, %v2345_v6 }
 0xc2a   : > { %v5426_v27 = vadd.f32 %v3963_v1, %v2353_v25  ;;  %v2435_v15 = vrot.slane %v5421_v39, 4  ;;  %v2449_v9 = vrot.slane %v5421_v39, 5  ;;  %v2463_v43 = vrot.slane %v5421_v39, 6 }
 0xc2b   : > { %v2477_v58 = vrot.slane %v5421_v39, 7  ;;  %v2499_v32 = vrot.slane %v5421_v39, 1  ;;  %v2513_v10 = vrot.slane %v5421_v39, 2  ;;  %v2527_v37 = vrot.slane %v5421_v39, 3 }
 0xc2c   : > { %v2367_v35 = vpack.c.bf16 %v5426_v27, %v5421_v39  ;;  %v2436_v14 = vrot.slane %v5426_v27, 4  ;;  %v2450_v29 = vrot.slane %v5426_v27, 5  ;;  %v2464_v44 = vrot.slane %v5426_v27, 6 }
 0xc2d   : > { %v2478_v19 = vrot.slane %v5426_v27, 7  ;;  %v2500_v46 = vrot.slane %v5426_v27, 1  ;;  %v2514_v50 = vrot.slane %v5426_v27, 2  ;;  %v2496_v57 = vmul.f32 %v2494_v56, %v5426_v27 }
 0xc2e   : > { %4201 = vmatmul.mubr.msk.bf16.vlgmr.msra.gmra.mrb[20].mxu1 %vm743_vm0, %v2367_v35  ;;  %v5460_v22 = vsel %vm959_vm10, %v2435_v15, %v2436_v14  ;;  %v2438_v24 = vsel %vm959_vm10, %v2436_v14, %v2435_v15  ;;  %v2451_v17 = vsel %vm974_vm11, %v2449_v9, %v2450_v29  ;;  %v2452_v26 = vsel %vm974_vm11, %v2450_v29, %v2449_v9 }
 0xc2f   : > { %4205 = vmatpush3.bf16.msra.mxu1 %v4506_v23  ;;  %4208 = vmatprep.mubr.msk.bf16.mxu1 %vm4627_vm1, %v6040_v11  ;;  %v2439_v7 = vmul.f32 %v4841_v47, %v2438_v24  ;;  %v2446_v18 = vmul.f32 %v2444_v33, %v5460_v22  ;;  %v2453_v55 = vmul.f32 %v4844_v48, %v2452_v26  ;;  %v2528_v9 = vrot.slane %v5426_v27, 3 }
 0xc30   : > { %4206 = vmatprep.subr.bf16.mxu1 %v6040_v11  ;;  %v2460_v4 = vmul.f32 %v2458_v38, %v2451_v17  ;;  %v2465_v12 = vsel %vm989_vm12, %v2463_v43, %v2464_v44  ;;  %v2466_v41 = vsel %vm989_vm12, %v2464_v44, %v2463_v43  ;;  %v2479_v5 = vsel %vm1004_vm13, %v2477_v58, %v2478_v19 }
 0xc31   : > { %v2445_v0 = vmul.f32 %v2444_v33, %v2439_v7  ;;  %v2459_v13 = vmul.f32 %v2458_v38, %v2453_v55  ;;  %v2467_v62 = vmul.f32 %v4850_v51, %v2466_v41  ;;  %v2474_v61 = vmul.f32 %v2472_v31, %v2465_v12 }
 0xc32   : > { %v2462_v34 = vadd.f32 %v2460_v4, %v2446_v18  ;;  %v2480_v8 = vsel %vm1004_vm13, %v2478_v19, %v2477_v58  ;;  %v2502_v28 = vsel %vm1027_vm14, %v2500_v46, %v2499_v32  ;;  %v2488_v25 = vmul.f32 %v2486_v49, %v2479_v5  ;;  %v3975_v4 = vld [vmem:[%s5943_s8 + $0x18] ss:$0 sm:$0xff] }
 0xc33   : > { %4207 = vmatpush3.bf16.msra.mxu1 %v4507_v16  ;;  %v2461_v36 = vadd.f32 %v2459_v13, %v2445_v0  ;;  %v2473_v40 = vmul.f32 %v2472_v31, %v2467_v62  ;;  %v2481_v1 = vmul.f32 %v4853_v52, %v2480_v8  ;;  %v2504_v45 = vmul.f32 %v4856_v54, %v2502_v28  ;;  %v3969_v8 = vld [vmem:[%s6035_s2 + $0x1] ss:$0 sm:$0xff] }
 0xc34   : > { %v2476_v6 = vadd.f32 %v2474_v61, %v2462_v34  ;;  %v2516_v38 = vsel %vm1042_vm15, %v2514_v50, %v2513_v10  ;;  %v2501_v31 = vsel %vm1027_vm14, %v2499_v32, %v2500_v46  ;;  %v2495_v2 = vmul.f32 %v2494_v56, %v5421_v39 }
 0xc35   : > { %v2475_v33 = vadd.f32 %v2473_v40, %v2461_v36  ;;  %v2487_v53 = vmul.f32 %v2486_v49, %v2481_v1  ;;  %v2518_v15 = vmul.f32 %v4862_v59, %v2516_v38  ;;  %v6047_v35 = vsub.s32 6, %v4819_v30 }
 0xc36   : > { %v2490_v23 = vadd.f32 %v2488_v25, %v2476_v6  ;;  %v2510_v29 = vmul.f32 %v2508_v20, %v2504_v45  ;;  %v2515_v44 = vsel %vm1042_vm15, %v2513_v10, %v2514_v50  ;;  %v2530_v43 = vsel %vm1057_vm2, %v2528_v9, %v2527_v37  ;;  %v3981_v25 = vld [vmem:[%s5945_s10 + $0x1] ss:$0 sm:$0xff] }
 0xc37   : > { %v2489_v3 = vadd.f32 %v2487_v53, %v2475_v33  ;;  %v2522_v49 = vrot.slane %v5419_v21, %v6047_v35  ;;  %v2509_v19 = vmul.f32 %v2508_v20, %v2501_v31  ;;  %v2532_v32 = vmul.f32 %v4865_v60, %v2530_v43 }
 0xc38   : > { %v2498_v14 = vadd.f32 %v2496_v57, %v2490_v23  ;;  %v6048_v17 = vsub.s32 7, %v4819_v30  ;;  %v2529_v7 = vsel %vm1057_vm2, %v2527_v37, %v2528_v9  ;;  %v2542_v46 = vmul.f32 %v4871_v63, %v2438_v24  ;;  %v4508_v24 = vld [vmem:[%s5946_s11 + $0x8] sm:$0xff]  }
 0xc39   : > { %v2497_v58 = vadd.f32 %v2495_v2, %v2489_v3  ;;  %v2524_v16 = vmul.f32 %v2522_v49, %v2518_v15  ;;  %v2523_v55 = vmul.f32 %v2522_v49, %v2515_v44  ;;  %4213 = vmatpush3.bf16.msra.mxu0 %v4508_v24 }
 0xc3a   : > { %v2536_v56 = vrot.slane %v5419_v21, %v6048_v17  ;;  %v2512_v26 = vadd.f32 %v2510_v29, %v2498_v14  ;;  %v2547_v21 = vmul.f32 %v3975_v4, %v5460_v22  ;;  %v2548_v62 = vmul.f32 %v3975_v4, %v2542_v46  ;;  %v3988_v46 = vld [vmem:[%s5947_s12 + $0x1] ss:$0 sm:$0xff] }
 0xc3b   : > { %v2511_v18 = vadd.f32 %v2509_v19, %v2497_v58 }
 0xc3c   : > { %v2526_v20 = vadd.f32 %v2524_v16, %v2512_v26  ;;  %v2538_v12 = vmul.f32 %v2536_v56, %v2532_v32  ;;  %v2537_v50 = vmul.f32 %v2536_v56, %v2529_v7 }
 0xc3d   : > { %v2525_v41 = vadd.f32 %v2523_v55, %v2511_v18 }
 0xc3e   : > { %v2540_v0 = vadd.f32 %v2538_v12, %v2526_v20  ;;  %v4617_v12 = vld [vmem:[%s5035_s25] ss:$0 sm:$0xff]  ;;  %s6054_s25 = smov 96  }
 0xc3f   : > { %v2539_v13 = vadd.f32 %v2537_v50, %v2525_v41 }
 0xc40   : > { %v2550_v34 = vadd.f32 %v2548_v62, %v2540_v0 }
 0xc41   : > { %v2549_v5 = vadd.f32 %v2547_v21, %v2539_v13 }
 0xc43   : > { %v2556_v61 = vpack.c.bf16 %v2550_v34, %v2549_v5 }
 0xc45   : > { %4209 = vmatmul.mubr.msk.bf16.vlgmr.msra.gmra.mrb[24].mxu1 %vm743_vm0, %v2556_v61 }
 0xd01   : > { %v2425_v10 = vpop.f32.mrb[20].mxu1 }
 0xd02   : > { %v5527_v36 = vadd.f32 %v3969_v8, %v2425_v10  ;;  %v4202_v40 = vpop.f32.mrb[21].mxu1 }
 0xd03   : > { %v2428_v22 = vpop.f32.mrb[22].mxu1 }
 0xd04   : > { %v5529_v1 = vadd.f32 %v3969_v8, %v2428_v22  ;;  %v4203_v28 = vpop.f32.mrb[23].mxu1  ;;  %4222 = vmatprep.mubr.msk.f32.mxu1 %vm1267_vm3, %v5527_v36 }
 0xd06   : > { %v5535_v6 = vpack.i.bf16 %v5529_v1, %v5527_v36 }
 0xd08   : > { %4427 = vrot.lane.b32.xlu0 %v5535_v6, %s4628_s6  ;;  %4422 = vrot.lane.b32.xlu1 %v5535_v6, %s6049_s28  ;;  %s6079_s28 = smov 8  }
 0xd0c   : > { %3077 = vrot.lane.b32.xlu1 %v5527_v36, %s6050_s29 }
 0xd10   : > { %3079 = vrot.lane.b32.xlu1 %v5529_v1, %s6050_s29 }
 0xd18   : > { %v2614_v57 = vpop.f32.mrb[24].mxu1 }
 0xd19   : > { %v2615_v45 = vadd.f32 %v3981_v25, %v2614_v57  ;;  %v4210_v33 = vpop.f32.mrb[25].mxu1 }
 0xd1a   : > { %v2617_v53 = vpop.f32.mrb[26].mxu1 }
 0xd1b   : > { %v2618_v38 = vadd.f32 %v3981_v25, %v2617_v53  ;;  %v4211_v37 = vpop.f32.mrb[27].mxu1  ;;  %v2621_v23 = vmul.f32 %v2615_v45, %v5527_v36 }
 0xd1d   : > { %v2622_v31 = vmul.f32 %v2618_v38, %v5529_v1 }
 0xd1f   : > { %v2626_v15 = vpack.c.bf16 %v2622_v31, %v2621_v23 }
 0xd21   : > { %4215 = vmatmul.mubr.msk.bf16.vlgmr.msra.gmra.mrb[16].mxu0 %vm1166_vm4, %v2626_v15 }
 0xd7a   : > { %v4428_v9 = vpop.permute.xlu0 %4427  ;;  %v4423_v3 = vpop.permute.xlu1 %4422 }
 0xd7b   : > { %v4430_v2 = vunpack.i.h.bf16 %v4428_v9  ;;  %v4429_v35 = vunpack.i.l.bf16 %v4428_v9  ;;  %v4425_v49 = vunpack.i.h.bf16 %v4423_v3  ;;  %v4424_v14 = vunpack.i.l.bf16 %v4423_v3 }
 0xd7d   : > { %v4304_v29 = vpack.c.bf16 %v4430_v2, %v4429_v35  ;;  %v4294_v44 = vpack.c.bf16 %v4425_v49, %v4424_v14 }
 0xd7e   : > { %v3078_v43 = vpop.permute.xlu1 %3077 }
 0xd7f   : > { %4296 = vmatprep.subr.msk.bf16.mxu1 %vm5012_vm5, %v4294_v44  ;;  %4306 = vmatprep.subr.msk.bf16.mxu0 %vm5012_vm5, %v4304_v29 }
 0xd80   : > { %4236 = vmatprep.mubr.msk.f32.mxu0 %vm1267_vm3, %v3078_v43  ;;  %4299 = vmatpush3.bf16.xpose.msk.msra.mxu1 %vm5012_vm5, %v4294_v44 }
 0xd81   : > { %4309 = vmatpush3.bf16.xpose.msk.msra.mxu0 %vm5012_vm5, %v4304_v29  ;;  %vm6052_vm5 = vcmask 72704  }
 0xd82   : > { %4246 = vmatprep.subr.bf16.mxu0 %v6040_v11  ;;  %v3080_v19 = vpop.permute.xlu1 %3079  ;;  %vm6053_vm8 = vmmov %vm6052_vm5 }
 0xd83   : > { %vm6058_vm9 = vmmov %vm6052_vm5 }
 0xd87   : > { %4223 = vmatmul.mubr.msk.f32.vlgmr.msra.gmra.mrb[14].mxu1 %vm1267_vm3, %v5529_v1 }
 0xd88   : > { %4237 = vmatmul.mubr.msk.f32.vlgmr.msra.gmra.mrb[6].mxu0 %vm1267_vm3, %v3080_v19 }
 0xd89   : > { %4250 = vmatprep.mubr.msk.bf16.mxu0 %vm4627_vm1, %v6040_v11 }
 0xdf4   : > { %v2678_v32 = vpop.f32.mrb[16].mxu0 }
 0xdf5   : > { %v4216_v17 = vpop.f32.mrb[17].mxu0  ;;  %v5570_v13 = vadd.f32 %v3988_v46, %v2678_v32 }
 0xdf6   : > { %v2681_v56 = vpop.f32.mrb[18].mxu0 }
 0xdf7   : > { %v4217_v26 = vpop.f32.mrb[19].mxu0  ;;  %v3281_v61 = vsel %vm1815_vm6, %v5570_v13, -inf  ;;  %v2937_v10 = vsel %vm6052_vm5, %v5570_v13, -inf  ;;  %v5579_v40 = vadd.f32 %v3988_v46, %v2681_v56 }
 0xdf9   : > { %v3284_v28 = vsel %vm1815_vm6, %v5579_v40, -inf  ;;  %v2940_v25 = vsel %vm6053_vm8, %v5579_v40, -inf  ;;  %vm6057_vm6 = vmmov %vm6052_vm5 }
 0xdfa   : > { %vm6060_vm8 = vmmov %vm6052_vm5 }
 0xe5a   : > { %v4224_v16 = vpop.f32.mrb[14].mxu1 }
 0xe5b   : > { %v2825_v7 = vmul.f32 0.35355338, %v4224_v16  ;;  %v4238_v18 = vpop.f32.mrb[6].mxu0  ;;  %v2815_v55 = vpop.f32.mrb[15].mxu1 }
 0xe5c   : > { %v2824_v4 = vmul.f32 0.35355338, %v2815_v55  ;;  %v3159_v20 = vpop.f32.mrb[7].mxu0  ;;  %v3169_v62 = vmul.f32 0.35355338, %v4238_v18 }
 0xe5d   : > { %v2827_v41 = vadd.f32 %v4617_v12, %v2825_v7  ;;  %v3168_v50 = vmul.f32 0.35355338, %v3159_v20 }
 0xe5e   : > { %v2826_v0 = vadd.f32 %v4617_v12, %v2824_v4  ;;  %v3171_v8 = vadd.f32 %v4617_v12, %v3169_v62 }
 0xe5f   : > { %v2831_v21 = vsel %vm1166_vm4, %v2827_v41, -inf  ;;  %v3170_v34 = vadd.f32 %v4617_v12, %v3168_v50 }
 0xe60   : > { %2832 = vmax.xlane.f32.xlu1 %v2831_v21  ;;  %v2828_v5 = vsel %vm1166_vm4, %v2826_v0, -inf  ;;  %v3175_v22 = vsel %vm1166_vm4, %v3171_v8, -inf }
 0xe61   : > { %2829 = vmax.xlane.f32.xlu0 %v2828_v5  ;;  %v3172_v24 = vsel %vm1166_vm4, %v3170_v34, -inf }
 0xe64   : > { %3282 = vmax.xlane.f32.xlu1 %v3281_v61 }
 0xe65   : > { %3173 = vmax.xlane.f32.xlu0 %v3172_v24 }
 0xe68   : > { %2938 = vmax.xlane.f32.xlu1 %v2937_v10 }
 0xe69   : > { %3176 = vmax.xlane.f32.xlu0 %v3175_v22 }
 0xe6d   : > { %3285 = vmax.xlane.f32.xlu0 %v3284_v28 }
 0xe71   : > { %2941 = vmax.xlane.f32.xlu0 %v2940_v25 }
 0xe79   : > { %4432 = vrot.lane.b32.xlu1 %v5535_v6, %s6054_s25 }
 0xeed   : > { %v2833_v57 = vpop.xlane.xlu1 %2832 }
 0xeee   : > { %v2835_v45 = vsub.f32 %v2827_v41, %v2833_v57  ;;  %v2830_v33 = vpop.xlane.xlu0 %2829 }
 0xeef   : > { %v2834_v17 = vsub.f32 %v2826_v0, %v2830_v33 }
 0xef0   : > { %v2838_v53 = vmul.f32 1.442695, %v2835_v45 }
 0xef1   : > { %v3283_v38 = vpop.xlane.xlu1 %3282  ;;  %v2836_v56 = vmul.f32 1.442695, %v2834_v17 }
 0xef2   : > { %4569 = vpow2.f32 %v2838_v53  ;;  %v3287_v37 = vsub.f32 %v5570_v13, %v3283_v38  ;;  %v3174_v23 = vpop.xlane.xlu0 %3173 }
 0xef3   : > { %v3178_v26 = vsub.f32 %v3170_v34, %v3174_v23 }
 0xef4   : > { %v3289_v31 = vmul.f32 1.442695, %v3287_v37 }
 0xef5   : > { %v2939_v15 = vpop.xlane.xlu1 %2938  ;;  %v3180_v16 = vmul.f32 1.442695, %v3178_v26 }
 0xef6   : > { %4571 = vpow2.f32 %v3289_v31  ;;  %v3177_v9 = vpop.xlane.xlu0 %3176  ;;  %v2943_v4 = vsub.f32 %v5570_v13, %v2939_v15 }
 0xef7   : > { %v3179_v3 = vsub.f32 %v3171_v8, %v3177_v9 }
 0xef8   : > { %v2945_v41 = vmul.f32 1.442695, %v2943_v4 }
 0xef9   : > { %v3182_v2 = vmul.f32 1.442695, %v3179_v3  ;;  %v4433_v35 = vpop.permute.xlu1 %4432 }
 0xefa   : > { %v4435_v49 = vunpack.i.h.bf16 %v4433_v35  ;;  %v4434_v14 = vunpack.i.l.bf16 %v4433_v35  ;;  %v3286_v18 = vpop.xlane.xlu0 %3285 }
 0xefb   : > { %4573 = vpow2.f32 %v3182_v2  ;;  %v3288_v20 = vsub.f32 %v5579_v40, %v3286_v18  ;;  %v6066_v18 = vmov 10  }
 0xefc   : > { %v5589_v29 = vpop.eup %4569  ;;  %v4300_v44 = vpack.c.bf16 %v4435_v49, %v4434_v14  ;;  %4575 = vpow2.f32 %v2836_v56 }
 0xefd   : > { %v2843_v43 = vsel %vm1166_vm4, %v5589_v29, 0.0  ;;  %4577 = vpow2.f32 %v3180_v16  ;;  %v3291_v50 = vmul.f32 1.442695, %v3288_v20  ;;  %v6065_v16 = vmov 3  }
 0xefe   : > { %4301 = vmatprep.subr.bf16.mxu1 %v4300_v44  ;;  %2844 = vadd.xlane.f32.xlu0 %v2843_v43  ;;  %4579 = vpow2.f32 %v2945_v41  ;;  %v2942_v62 = vpop.xlane.xlu0 %2941  ;;  %v6062_v43 = vmov 4   ;;  %v6068_v20 = vmov 14   ;;  %v6070_v41 = vmov 6  }
 0xeff   : > { %4303 = vmatpush3.bf16.msra.mxu1 %v4300_v44  ;;  %4581 = vpow2.f32 %v3291_v50  ;;  %v2944_v13 = vsub.f32 %v5579_v40, %v2942_v62  ;;  %v6061_v44 = vmov 0   ;;  %v6071_v50 = vmov 11  }
 0xf00   : > { %v5593_v58 = vpop.eup %4571 }
 0xf01   : > { %3295 = vrot.lane.b32.xlu1 %v5593_v58, %s6055_s24  ;;  %v2947_v5 = vmul.f32 1.442695, %v2944_v13 }
 0xf03   : > { %4583 = vpow2.f32 %v2947_v5 }
 0xf05   : > { %v5597_v19 = vpop.eup %4573 }
 0xf06   : > { %v3187_v32 = vsel %vm1166_vm4, %v5597_v19, 0.0  ;;  %v4576_v7 = vpop.eup %4575 }
 0xf07   : > { %3188 = vadd.xlane.f32.xlu0 %v3187_v32  ;;  %v2840_v55 = vsel %vm1166_vm4, %v4576_v7, 0.0  ;;  %v4578_v46 = vpop.eup %4577  ;;  %v6064_v32 = vmov 2  }
 0xf08   : > { %v3184_v12 = vsel %vm1166_vm4, %v4578_v46, 0.0  ;;  %v4580_v0 = vpop.eup %4579 }
 0xf09   : > { %v5607_v21 = vpop.eup %4581 }
 0xf0d   : > { %v4584_v34 = vpop.eup %4583 }
 0xf0e   : > { %v2952_v61 = vsel %vm6058_vm9, %v4584_v34, 0.0 }
 0xf1d   : > { %4437 = vrot.lane.b32.xlu0 %v5535_v6, %s6056_s3  ;;  %v2949_v6 = vsel %vm6057_vm6, %v4580_v0, 0.0 }
 0xf25   : > { %2841 = vadd.xlane.f32.xlu1 %v2840_v55  ;;  %v6067_v55 = vmov 13  }
 0xf29   : > { %3185 = vadd.xlane.f32.xlu1 %v3184_v12  ;;  %v6069_v12 = vmov 9  }
 0xf3a   : > { %3297 = vrot.lane.b32.xlu1 %v5607_v21, %s6055_s24 }
 0xf3c   : > { %2950 = vadd.xlane.f32.xlu0 %v2949_v6  ;;  %v6074_v6 = vmov 12  }
 0xf5e   : > { %2953 = vadd.xlane.f32.xlu1 %v2952_v61 }
 0xf6f   : > { %2687 = vrot.lane.b32.xlu1 %v5527_v36, %s6059_s1 }
 0xf73   : > { %v3296_v24 = vpop.permute.xlu1 %3295 }
 0xf74   : > { %v3301_v8 = vsel %vm6052_vm5, %v3296_v24, 0.0 }
 0xf75   : > { %3302 = vadd.xlane.f32.xlu0 %v3301_v8 }
 0xf8b   : > { %v2845_v10 = vpop.xlane.xlu0 %2844 }
 0xf8c   : > { %4585 = vrcp.f32 %v2845_v10 }
 0xf94   : > { %v3189_v22 = vpop.xlane.xlu0 %3188 }
 0xf96   : > { %v4586_v37 = vpop.eup %4585 }
 0xf97   : > { %v2849_v15 = vmul.f32 %v4586_v37, %v5589_v29  ;;  %v6075_v37 = vmov 16  }
 0xf98   : > { %v4438_v28 = vpop.permute.xlu0 %4437 }
 0xf99   : > { %v4440_v25 = vunpack.i.h.bf16 %v4438_v28  ;;  %v4439_v57 = vunpack.i.l.bf16 %v4438_v28 }
 0xf9b   : > { %v4310_v45 = vpack.c.bf16 %v4440_v25, %v4439_v57 }
 0xf9d   : > { %4311 = vmatprep.subr.bf16.mxu1 %v4310_v45 }
 0xfb2   : > { %v2842_v40 = vpop.xlane.xlu1 %2841 }
 0xfb3   : > { %4587 = vrcp.f32 %v2842_v40 }
 0xfb4   : > { %4589 = vrcp.f32 %v3189_v22 }
 0xfb6   : > { %v3186_v33 = vpop.xlane.xlu1 %3185 }
 0xfb7   : > { %4591 = vrcp.f32 %v3186_v33 }
 0xfba   : > { %v3298_v53 = vpop.permute.xlu1 %3297 }
 0xfbb   : > { %v3304_v38 = vsel %vm6060_vm8, %v3298_v53, 0.0 }
 0xfbc   : > { %3305 = vadd.xlane.f32.xlu0 %v3304_v38 }
 0xfbd   : > { %v4588_v23 = vpop.eup %4587 }
 0xfbe   : > { %v2847_v31 = vmul.f32 %v4588_v23, %v4576_v7  ;;  %v4590_v9 = vpop.eup %4589 }
 0xfbf   : > { %v3193_v35 = vmul.f32 %v4590_v9, %v5597_v19  ;;  %v6063_v19 = vmov 1  }
 0xfc0   : > { %4229 = vmatprep.mubr.msk.f32.mxu1 %vm1166_vm4, %v2847_v31 }
 0xfc1   : > { %v4592_v3 = vpop.eup %4591  ;;  %4230 = vmatmul.mubr.msk.f32.vlgmr.msra.gmra.mrb[28].mxu1 %vm1166_vm4, %v2849_v15 }
 0xfc2   : > { %4313 = vmatpush3.bf16.msra.mxu1 %v4310_v45  ;;  %v3191_v2 = vmul.f32 %v4592_v3, %v4578_v46 }
 0xfc3   : > { %4254 = vmatprep.subr.bf16.mxu1 %v6040_v11 }
 0xfc4   : > { %4243 = vmatprep.mubr.msk.f32.mxu1 %vm1166_vm4, %v3191_v2 }
 0xfc5   : > { %4244 = vmatmul.mubr.msk.f32.vlgmr.msra.gmra.mrb[30].mxu1 %vm1166_vm4, %v3193_v35  ;;  %v6076_v35 = vmov 5  }
 0xfc6   : > { %4258 = vmatprep.mubr.msk.bf16.mxu1 %vm4627_vm1, %v6040_v11 }
 0xfc9   : > { %v2951_v49 = vpop.xlane.xlu0 %2950 }
 0xfca   : > { %4593 = vrcp.f32 %v2951_v49 }
 0xfd2   : > { %2689 = vrot.lane.b32.xlu0 %v5529_v1, %s6059_s1 }
 0xfd4   : > { %v4594_v14 = vpop.eup %4593 }
 0xfd5   : > { %v5629_v29 = vmul.f32 %v4594_v14, %v4580_v0  ;;  %v6073_v0 = vmov 17  }
 0xfd7   : > { %2998 = vperm.xlu0 %4445, %v5629_v29   ;;  %3010 = vperm.xlu1 %4441, %v5629_v29  }
 0xfdb   : > { %4442 = vset.pattern.permute.xlu1 %v6061_v44  ;;  %4446 = vset.pattern.permute.xlu0 %v6062_v43 }
 0xfdc   : > { %2961 = vperm.xlu1 %4442, %v5629_v29  }
 0xfe0   : > { %4443 = vset.pattern.permute.xlu1 %v6063_v19 }
 0xfe1   : > { %2974 = vperm.xlu1 %4443, %v5629_v29  }
 0xfe5   : > { %4444 = vset.pattern.permute.xlu1 %v6064_v32 }
 0xfe6   : > { %2986 = vperm.xlu1 %4444, %v5629_v29  }
 0xfea   : > { %4447 = vset.pattern.permute.xlu1 %v6061_v44 }
 0xfeb   : > { %v2954_v17 = vpop.xlane.xlu1 %2953 }
 0xfec   : > { %4595 = vrcp.f32 %v2954_v17 }
 0xfef   : > { %v5672_v13 = vpop.permute.xlu1 %2687 }
 0xff0   : > { %v2711_v61 = vrot.slane %v5672_v13, 7  ;;  %v2693_v25 = vrot.slane %v5672_v13, 4  ;;  %v2699_v53 = vrot.slane %v5672_v13, 5  ;;  %v2705_v3 = vrot.slane %v5672_v13, 6 }
 0xff6   : > { %v4596_v56 = vpop.eup %4595 }
 0xff7   : > { %v5641_v26 = vmul.f32 %v4596_v56, %v4584_v34  ;;  %v6077_v56 = vmov 15  }
 0xff9   : > { %3014 = vperm.xlu0 %4446, %v5641_v26   ;;  %2966 = vperm.xlu1 %4447, %v5641_v26  }
 0xffd   : > { %4449 = vset.pattern.permute.xlu0 %v6064_v32  ;;  %4448 = vset.pattern.permute.xlu1 %v6063_v19 }
 0xffe   : > { %2990 = vperm.xlu0 %4449, %v5641_v26   ;;  %2978 = vperm.xlu1 %4448, %v5641_v26  }
0x1002   : > { %4450 = vset.pattern.permute.xlu1 %v6065_v16  ;;  %v3303_v7 = vpop.xlane.xlu0 %3302  ;;  %4453 = vset.pattern.permute.xlu0 %v6066_v18 }
0x1003   : > { %4597 = vrcp.f32 %v3303_v7  ;;  %3002 = vperm.xlu1 %4450, %v5641_v26  }
0x1007   : > { %4451 = vset.pattern.permute.xlu1 %v6067_v55 }
0x100d   : > { %v4598_v46 = vpop.eup %4597 }
0x100e   : > { %v5654_v4 = vmul.f32 %v4598_v46, %v5593_v58  ;;  %v6072_v58 = vmov 7  }
0x1010   : > { %3326 = vperm.xlu0 %4453, %v5654_v4   ;;  %3362 = vperm.xlu1 %4451, %v5654_v4  }
0x1014   : > { %4458 = vset.pattern.permute.xlu0 %v6068_v20  ;;  %4452 = vset.pattern.permute.xlu1 %v6069_v12 }
0x1015   : > { %3382 = vperm.xlu0 %4458, %v5654_v4   ;;  %3313 = vperm.xlu1 %4452, %v5654_v4  }
0x1019   : > { %4460 = vset.pattern.permute.xlu0 %v6070_v41  ;;  %4454 = vset.pattern.permute.xlu1 %v6071_v50 }
0x101a   : > { %3046 = vperm.xlu0 %4460, %v5641_v26   ;;  %3338 = vperm.xlu1 %4454, %v5654_v4  }
0x101e   : > { %4462 = vset.pattern.permute.xlu0 %v6072_v58  ;;  %4455 = vset.pattern.permute.xlu1 %v6067_v55 }
0x101f   : > { %3054 = vperm.xlu0 %4462, %v5629_v29  }
0x1023   : > { %4466 = vset.pattern.permute.xlu0 %v6073_v0 }
0x1024   : > { %3418 = vperm.xlu0 %4466, %v5654_v4  }
0x1028   : > { %4470 = vset.pattern.permute.xlu0 %v6074_v6 }
0x1049   : > { %v3306_v62 = vpop.xlane.xlu0 %3305 }
0x104a   : > { %4599 = vrcp.f32 %v3306_v62 }
0x104d   : > { %v5674_v5 = vpop.permute.xlu0 %2689 }
0x104e   : > { %v2712_v34 = vrot.slane %v5674_v5, 7  ;;  %v2694_v8 = vrot.slane %v5674_v5, 4  ;;  %v2706_v15 = vrot.slane %v5674_v5, 6 }
0x1050   : > { %v2714_v24 = vsel %vm1004_vm13, %v2712_v34, %v2711_v61  ;;  %v5697_v33 = vsel %vm959_vm10, %v2694_v8, %v2693_v25  ;;  %v2708_v14 = vsel %vm989_vm12, %v2706_v15, %v2705_v3  ;;  %v5734_v16 = vsel %vm959_vm10, %v2693_v25, %v2694_v8 }
0x1051   : > { %v5689_v28 = vmul.f32 %v4853_v52, %v2714_v24  ;;  %v5702_v52 = vmul.f32 %v4841_v47, %v5697_v33  ;;  %v2709_v43 = vmul.f32 %v4850_v51, %v2708_v14  ;;  %v5748_v24 = vsel %vm989_vm12, %v2705_v3, %v2706_v15 }
0x1052   : > { %v2736_v30 = vmul.f32 %v4871_v63, %v5697_v33  ;;  %vm6081_vm10 = vcmask 195584  }
0x1054   : > { %v4600_v10 = vpop.eup %4599 }
0x1055   : > { %v5686_v22 = vmul.f32 %v4600_v10, %v5607_v21  ;;  %v2700_v21 = vrot.slane %v5674_v5, 5 }
0x1056   : > { %v3011_v57 = vpop.permute.xlu1 %3010  ;;  %v2999_v45 = vpop.permute.xlu0 %2998 }
0x1057   : > { %v3005_v40 = vmul.f32 %v2999_v45, %v5689_v28  ;;  %3354 = vperm.xlu0 %4470, %v5686_v22   ;;  %3366 = vperm.xlu1 %4455, %v5686_v22   ;;  %v2702_v31 = vsel %vm974_vm11, %v2700_v21, %v2699_v53  ;;  %v3017_v47 = vmul.f32 %v3011_v57, %v5527_v36 }
0x1058   : > { %v2703_v9 = vmul.f32 %v4844_v48, %v2702_v31  ;;  %v5757_v57 = vsel %vm1004_vm13, %v2711_v61, %v2712_v34  ;;  %v2717_v34 = vrot.slane %v5672_v13, 1 }
0x105b   : > { %v2962_v38 = vpop.permute.xlu1 %2961  ;;  %4473 = vset.pattern.permute.xlu0 %v6075_v37  ;;  %4456 = vset.pattern.permute.xlu1 %v6074_v6 }
0x105c   : > { %v2969_v23 = vmul.f32 %v2962_v38, %v5702_v52  ;;  %3410 = vperm.xlu0 %4473, %v5686_v22   ;;  %3350 = vperm.xlu1 %4456, %v5654_v4  }
0x1060   : > { %v2975_v2 = vpop.permute.xlu1 %2974  ;;  %3021 = vrot.lane.b32.xlu0 %v3017_v47, %s6059_s1  ;;  %4457 = vset.pattern.permute.xlu1 %v6076_v35 }
0x1061   : > { %v2981_v49 = vmul.f32 %v2975_v2, %v2703_v9  ;;  %3030 = vperm.xlu1 %4457, %v5629_v29   ;;  %4490 = vset.pattern.permute.xlu0 %v6073_v0 }
0x1063   : > { %v2983_v44 = vadd.f32 %v2981_v49, %v2969_v23 }
0x1065   : > { %v2987_v19 = vpop.permute.xlu1 %2986  ;;  %3034 = vperm.xlu1 %4457, %v5641_v26  }
0x1066   : > { %v2993_v48 = vmul.f32 %v2987_v19, %v2709_v43 }
0x1068   : > { %v2995_v32 = vadd.f32 %v2993_v48, %v2983_v44 }
0x1069   : > { %4459 = vset.pattern.permute.xlu1 %v6070_v41  ;;  %v5741_v41 = vsel %vm974_vm11, %v2699_v53, %v2700_v21  ;;  %vm6082_vm11 = vmmov %vm6081_vm10 }
0x106a   : > { %3042 = vperm.xlu1 %4459, %v5629_v29   ;;  %v5726_v17 = vadd.f32 %v3005_v40, %v2995_v32 }
0x106e   : > { %4461 = vset.pattern.permute.xlu1 %v6077_v56 }
0x106f   : > { %3394 = vperm.xlu1 %4461, %v5654_v4  }
0x1073   : > { %4463 = vset.pattern.permute.xlu1 %v6072_v58  ;;  %v6078_v58 = vmov 8  }
0x1074   : > { %3058 = vperm.xlu1 %4463, %v5641_v26  }
0x1078   : > { %v2967_v51 = vpop.permute.xlu1 %2966  ;;  %4464 = vset.pattern.permute.xlu1 %v6075_v37  ;;  %v3015_v7 = vpop.permute.xlu0 %3014 }
0x1079   : > { %v2970_v55 = vmul.f32 %v2967_v51, %v5734_v16  ;;  %3406 = vperm.xlu1 %4464, %v5654_v4  }
0x107d   : > { %v2979_v46 = vpop.permute.xlu1 %2978  ;;  %4465 = vset.pattern.permute.xlu1 %v6078_v58  ;;  %v2991_v6 = vpop.permute.xlu0 %2990 }
0x107e   : > { %v2982_v62 = vmul.f32 %v2979_v46, %v5741_v41  ;;  %3066 = vperm.xlu1 %4465, %v5629_v29   ;;  %v2994_v10 = vmul.f32 %v2991_v6, %v5748_v24  ;;  %v2724_v6 = vrot.slane %v5674_v5, 2 }
0x1080   : > { %v2984_v8 = vadd.f32 %v2982_v62, %v2970_v55  ;;  %v2723_v62 = vrot.slane %v5672_v13, 2 }
0x1082   : > { %v2996_v4 = vadd.f32 %v2994_v10, %v2984_v8  ;;  %v3003_v25 = vpop.permute.xlu1 %3002  ;;  %3070 = vperm.xlu1 %4465, %v5641_v26   ;;  %v2718_v26 = vrot.slane %v5674_v5, 1  ;;  %v2729_v8 = vrot.slane %v5672_v13, 3 }
0x1083   : > { %v3006_v29 = vmul.f32 %v3003_v25, %v5757_v57 }
0x1085   : > { %v5761_v45 = vadd.f32 %v3006_v29, %v2996_v4 }
0x1086   : > { %4467 = vset.pattern.permute.xlu1 %v6069_v12 }
0x1087   : > { %3318 = vperm.xlu1 %4467, %v5686_v22  }
0x108b   : > { %4468 = vset.pattern.permute.xlu1 %v6066_v18  ;;  %v2719_v18 = vsel %vm1027_vm14, %v2717_v34, %v2718_v26 }
0x108c   : > { %3330 = vperm.xlu1 %4468, %v5686_v22  }
0x108f   : > { %v3363_v40 = vpop.permute.xlu1 %3362  ;;  %v3327_v21 = vpop.permute.xlu0 %3326 }
0x1090   : > { %4469 = vset.pattern.permute.xlu1 %v6071_v50  ;;  %v3333_v12 = vmul.f32 %v3327_v21, %v2703_v9  ;;  %v3369_v35 = vmul.f32 %v3363_v40, %v5527_v36 }
0x1091   : > { %3342 = vperm.xlu1 %4469, %v5686_v22  }
0x1094   : > { %v5771_v61 = vpop.f32.mrb[28].mxu1  ;;  %v3314_v53 = vpop.permute.xlu1 %3313 }
0x1095   : > { %v3321_v38 = vmul.f32 %v3314_v53, %v5702_v52  ;;  %v3383_v50 = vpop.permute.xlu0 %3382  ;;  %v5780_v37 = vpop.f32.mrb[29].mxu1  ;;  %4471 = vset.pattern.permute.xlu1 %v6068_v20  ;;  %v3018_v20 = vmul.f32 %v3015_v7, %v5529_v1 }
0x1096   : > { %v5783_v23 = vmul.f32 %v3383_v50, %v2719_v18  ;;  %3386 = vperm.xlu1 %4471, %v5686_v22  }
0x1097   : > { %v3335_v31 = vadd.f32 %v3333_v12, %v3321_v38 }
0x1098   : > { %v4245_v15 = vpop.f32.mrb[30].mxu1 }
0x1099   : > { %v3339_v47 = vpop.permute.xlu1 %3338  ;;  %v3272_v9 = vpop.f32.mrb[31].mxu1 }
0x109a   : > { %v3345_v52 = vmul.f32 %v3339_v47, %v2709_v43  ;;  %4472 = vset.pattern.permute.xlu1 %v6077_v56  ;;  %v4480_v3 = vpack.i.bf16 %v4245_v15, %v3272_v9  ;;  %v3047_v49 = vpop.permute.xlu0 %3046 }
0x109b   : > { %3398 = vperm.xlu1 %4472, %v5686_v22  }
0x109c   : > { %v3347_v2 = vadd.f32 %v3345_v52, %v3335_v31 }
0x109e   : > { %v3055_v14 = vpop.permute.xlu0 %3054 }
0x109f   : > { %4474 = vset.pattern.permute.xlu1 %v6073_v0 }
0x10a0   : > { %3422 = vperm.xlu1 %4474, %v5686_v22  }
0x10a3   : > { %v5795_v44 = vpop.permute.xlu0 %3418 }
0x10a4   : > { %3023 = vrot.lane.b32.xlu1 %v3018_v20, %s6059_s1 }
0x10a8   : > { %3373 = vrot.lane.b32.xlu1 %v3369_v35, %s6059_s1  ;;  %v2720_v35 = vsel %vm1027_vm14, %v2718_v26, %v2717_v34 }
0x10ac   : > { %4481 = vrot.lane.b32.xlu1 %v4480_v3, %s6079_s28 }
0x10d6   : > { %v3367_v43 = vpop.permute.xlu1 %3366  ;;  %v5797_v19 = vpop.permute.xlu0 %3354 }
0x10d7   : > { %v3370_v0 = vmul.f32 %v3367_v43, %v5529_v1  ;;  %v2730_v1 = vrot.slane %v5674_v5, 3  ;;  %v2726_v43 = vsel %vm1042_vm15, %v2724_v6, %v2723_v62  ;;  %v4509_v5 = vld [vmem:[%s5948_s13 + $0x10] sm:$0xff]  }
0x10d8   : > { %4247 = vmatpush3.bf16.msra.mxu0 %v4509_v5 }
0x10d9   : > { %3375 = vrot.lane.b32.xlu0 %v3370_v0, %s6059_s1  ;;  %v2722_v0 = vmul.f32 %v4856_v54, %v2720_v35  ;;  %4248 = vmatprep.subr.bf16.mxu0 %v6040_v11 }
0x10db   : > { %v3351_v22 = vpop.permute.xlu1 %3350  ;;  %v5801_v48 = vpop.permute.xlu0 %3410 }
0x10dc   : > { %v3357_v36 = vmul.f32 %v3351_v22, %v5689_v28  ;;  %v2725_v28 = vsel %vm1042_vm15, %v2723_v62, %v2724_v6  ;;  %v2732_v22 = vsel %vm1057_vm2, %v2730_v1, %v2729_v8 }
0x10dd   : > { %v2734_v34 = vmul.f32 %v4865_v60, %v2732_v22  ;;  %v3425_v60 = vmul.f32 %v5795_v44, %v5734_v16 }
0x10de   : > { %v3359_v32 = vadd.f32 %v3357_v36, %v3347_v2 }
0x10df   : > { %v3022_v56 = vpop.permute.xlu0 %3021 }
0x10e0   : > { %v3027_v51 = vadd.f32 %v3022_v56, %v5726_v17  ;;  %v3031_v7 = vpop.permute.xlu1 %3030  ;;  %v2731_v17 = vsel %vm1057_vm2, %v2729_v8, %v2730_v1  ;;  %v2728_v56 = vmul.f32 %v4862_v59, %v2726_v43 }
0x10e1   : > { %v3037_v55 = vmul.f32 %v3031_v7, %v2719_v18  ;;  %v3061_v25 = vmul.f32 %v3055_v14, %v2731_v17 }
0x10e2   : > { %v3050_v26 = vmul.f32 %v3047_v49, %v2728_v56 }
0x10e3   : > { %v3039_v46 = vadd.f32 %v3037_v55, %v3027_v51 }
0x10e4   : > { %v3035_v58 = vpop.permute.xlu1 %3034 }
0x10e5   : > { %v3038_v51 = vmul.f32 %v3035_v58, %v2722_v0 }
0x10e9   : > { %v3043_v10 = vpop.permute.xlu1 %3042 }
0x10ea   : > { %v3049_v4 = vmul.f32 %v3043_v10, %v2725_v28 }
0x10ec   : > { %v3051_v29 = vadd.f32 %v3049_v4, %v3039_v46 }
0x10ee   : > { %v3395_v40 = vpop.permute.xlu1 %3394  ;;  %v3063_v21 = vadd.f32 %v3061_v25, %v3051_v29 }
0x10ef   : > { %v3401_v53 = vmul.f32 %v3395_v40, %v2725_v28 }
0x10f3   : > { %v3059_v12 = vpop.permute.xlu1 %3058 }
0x10f4   : > { %v3062_v54 = vmul.f32 %v3059_v12, %v2734_v34 }
0x10f8   : > { %v3407_v38 = vpop.permute.xlu1 %3406 }
0x10f9   : > { %v3413_v18 = vmul.f32 %v3407_v38, %v2731_v17 }
0x10fd   : > { %v3067_v50 = vpop.permute.xlu1 %3066 }
0x10fe   : > { %v3073_v31 = vmul.f32 %v3067_v50, %v5734_v16 }
0x1100   : > { %v3075_v15 = vadd.f32 %v3073_v31, %v3063_v21 }
0x1101   : > { %v3071_v47 = vpop.permute.xlu1 %3070 }
0x1102   : > { %v3074_v59 = vmul.f32 %v3071_v47, %v2736_v30 }
0x1106   : > { %v3319_v52 = vpop.permute.xlu1 %3318 }
0x1107   : > { %v3322_v33 = vmul.f32 %v3319_v52, %v5734_v16 }
0x110b   : > { %v3331_v9 = vpop.permute.xlu1 %3330 }
0x110c   : > { %v3334_v63 = vmul.f32 %v3331_v9, %v5741_v41  ;;  %v3414_v41 = vmul.f32 %v5801_v48, %v2734_v34 }
0x110e   : > { %v3336_v28 = vadd.f32 %v3334_v63, %v3322_v33 }
0x1110   : > { %v3343_v3 = vpop.permute.xlu1 %3342 }
0x1115   : > { %v3387_v2 = vpop.permute.xlu1 %3386 }
0x1116   : > { %v3390_v29 = vmul.f32 %v3387_v2, %v2722_v0 }
0x111a   : > { %v3399_v20 = vpop.permute.xlu1 %3398 }
0x111b   : > { %v3402_v40 = vmul.f32 %v3399_v20, %v2728_v56 }
0x111f   : > { %v3423_v14 = vpop.permute.xlu1 %3422 }
0x1123   : > { %v3024_v36 = vpop.permute.xlu1 %3023 }
0x1124   : > { %v3028_v13 = vadd.f32 %v3024_v36, %v5761_v45 }
0x1126   : > { %v3040_v7 = vadd.f32 %v3038_v51, %v3028_v13 }
0x1127   : > { %v3374_v55 = vpop.permute.xlu1 %3373 }
0x1128   : > { %v3052_v46 = vadd.f32 %v3050_v26, %v3040_v7  ;;  %v3379_v6 = vadd.f32 %v3374_v55, %v3359_v32  ;;  %v3346_v32 = vmul.f32 %v3343_v3, %v5748_v24  ;;  %v3426_v24 = vmul.f32 %v3423_v14, %v2736_v30 }
0x112a   : > { %v3064_v45 = vadd.f32 %v3062_v54, %v3052_v46  ;;  %v3391_v58 = vadd.f32 %v5783_v23, %v3379_v6  ;;  %v3348_v4 = vadd.f32 %v3346_v32, %v3336_v28  ;;  %v3358_v23 = vmul.f32 %v5797_v19, %v5757_v57 }
0x112b   : > { %v4482_v19 = vpop.permute.xlu1 %4481 }
0x112c   : > { %v3076_v62 = vadd.f32 %v3074_v59, %v3064_v45  ;;  %v3403_v1 = vadd.f32 %v3401_v53, %v3391_v58  ;;  %v3360_v17 = vadd.f32 %v3358_v23, %v3348_v4  ;;  %v4510_v53 = vld [vmem:[%s5948_s13 + $0x18] sm:$0xff]   ;;  %v4484_v50 = vunpack.i.h.bf16 %v4482_v19  ;;  %v4014_v4 = vld [vmem:[%s5950_s15 + $0x1] ss:$0 sm:$0xff] }
0x112d   : > { %4249 = vmatpush3.bf16.msra.mxu0 %v4510_v53  ;;  %v4483_v31 = vunpack.i.l.bf16 %v4482_v19 }
0x112e   : > { %v3415_v49 = vadd.f32 %v3413_v18, %v3403_v1  ;;  %v4475_v8 = vpack.i.bf16 %v3076_v62, %v3075_v15  ;;  %4262 = vmatprep.subr.bf16.mxu0 %v6040_v11  ;;  %v3454_v48 = vsel %vm1267_vm3, %v5771_v61, %v4484_v50  ;;  %v4008_v61 = vld [vmem:[%s5949_s14 + $0x1] ss:$0 sm:$0xff]  ;;  %v4512_v1 = vld [vmem:[%s5952_s17 + $0x18] sm:$0xff]  }
0x112f   : > { %v3453_v9 = vsel %vm1267_vm3, %v5780_v37, %v4483_v31 }
0x1130   : > { %v3427_v10 = vadd.f32 %v3425_v60, %v3415_v49  ;;  %4476 = vrot.lane.b32.xlu0 %v4475_v8, %s6080_s7 }
0x114b   : > { %v3376_v25 = vpop.permute.xlu0 %3375 }
0x114c   : > { %v3380_v44 = vadd.f32 %v3376_v25, %v3360_v17 }
0x114e   : > { %v3392_v21 = vadd.f32 %v3390_v29, %v3380_v44  ;;  %v4015_v29 = vld [vmem:[%s5951_s16 + $0x1] ss:$0 sm:$0xff] }
0x1150   : > { %v3404_v16 = vadd.f32 %v3402_v40, %v3392_v21 }
0x1152   : > { %v3416_v12 = vadd.f32 %v3414_v41, %v3404_v16  ;;  %v4513_v41 = vld [vmem:[%s5954_s19 + $0x20] sm:$0xff]   ;;  %v4514_v16 = vld [vmem:[%s5954_s19 + $0x28] sm:$0xff]  }
0x1154   : > { %v3428_v38 = vadd.f32 %v3426_v24, %v3416_v12  ;;  %v4515_v24 = vld [vmem:[%s5954_s19 + $0x30] sm:$0xff]   ;;  %v4516_v12 = vld [vmem:[%s5954_s19 + $0x38] sm:$0xff]  }
0x1156   : > { %v4485_v57 = vpack.i.bf16 %v3428_v38, %v3427_v10  ;;  %v4021_v38 = vld [vmem:[%s5953_s18 + $0x1] ss:$0 sm:$0xff] }
0x1158   : > { %4486 = vrot.lane.b32.xlu1 %v4485_v57, %s6080_s7 }
0x11a2   : > { %v4477_v18 = vpop.permute.xlu0 %4476 }
0x11a3   : > { %v4479_v15 = vunpack.i.h.bf16 %v4477_v18  ;;  %v4478_v47 = vunpack.i.l.bf16 %v4477_v18 }
0x11a5   : > { %v3455_v20 = vsel %vm1166_vm4, %v3453_v9, %v4478_v47  ;;  %v3456_v35 = vsel %vm1166_vm4, %v3454_v48, %v4479_v15 }
0x11ca   : > { %v4487_v52 = vpop.permute.xlu1 %4486 }
0x11cb   : > { %v4489_v3 = vunpack.i.h.bf16 %v4487_v52  ;;  %v4488_v2 = vunpack.i.l.bf16 %v4487_v52 }
0x11cd   : > { %v3457_v14 = vsel %vm6081_vm10, %v3455_v20, %v4488_v2  ;;  %v3458_v43 = vsel %vm6082_vm11, %v3456_v35, %v4489_v3 }
0x11ce   : > { %v3464_v0 = vpack.c.bf16 %v3458_v43, %v3457_v14 }
0x11d0   : > { %4251 = vmatmul.mubr.msk.bf16.vlgmr.msra.gmra.mrb[20].mxu0 %vm743_vm0, %v3464_v0 }
0x11d1   : > { %4270 = vmatprep.mubr.msk.bf16.mxu0 %vm4627_vm1, %v6040_v11  ;;  %4263 = vmatpush3.bf16.msra.mxu0 %v4513_v41 }
0x11d2   : > { %4264 = vmatprep.subr.bf16.mxu0 %v6040_v11 }
0x11d5   : > { %4265 = vmatpush3.bf16.msra.mxu0 %v4514_v16  ;;  %v4034_v16 = vld [vmem:[%s5955_s20 + $0x1] ss:$0 sm:$0xff] }
0x11d6   : > { %4266 = vmatprep.subr.bf16.mxu0 %v6040_v11 }
0x11d9   : > { %4267 = vmatpush3.bf16.msra.mxu0 %v4515_v24 }
0x11da   : > { %4268 = vmatprep.subr.bf16.mxu0 %v6040_v11 }
0x11dd   : > { %4269 = vmatpush3.bf16.msra.mxu0 %v4516_v12 }
0x12a3   : > { %v3522_v37 = vpop.f32.mrb[20].mxu0 }
0x12a4   : > { %v3523_v22 = vadd.f32 %v4008_v61, %v3522_v37  ;;  %v4252_v36 = vpop.f32.mrb[21].mxu0 }
0x12a5   : > { %v3525_v56 = vpop.f32.mrb[22].mxu0 }
0x12a6   : > { %v3529_v51 = vadd.f32 %v3523_v22, %v5421_v39  ;;  %v3526_v13 = vadd.f32 %v4008_v61, %v3525_v56  ;;  %v4253_v5 = vpop.f32.mrb[23].mxu0 }
0x12a8   : > { %v3530_v26 = vadd.f32 %v3526_v13, %v5426_v27  ;;  %v3535_v34 = vsel %vm743_vm0, %v3529_v51, 0.0  ;;  %v4511_v27 = vld [vmem:[%s5952_s17 + $0x10] sm:$0xff]  }
0x12a9   : > { %3536 = vadd.xlane.f32.xlu0 %v3535_v34  ;;  %4255 = vmatpush3.bf16.msra.mxu1 %v4511_v27 }
0x12aa   : > { %v3538_v7 = vsel %vm743_vm0, %v3530_v26, 0.0  ;;  %4256 = vmatprep.subr.bf16.mxu1 %v6040_v11 }
0x12ab   : > { %3539 = vadd.xlane.f32.xlu1 %v3538_v7 }
0x12ad   : > { %4257 = vmatpush3.bf16.msra.mxu1 %v4512_v1 }
0x1336   : > { %v3537_v55 = vpop.xlane.xlu0 %3536 }
0x1337   : > { %v3541_v54 = vmul.f32 0.03125, %v3537_v55 }
0x1338   : > { %v3540_v30 = vpop.xlane.xlu1 %3539 }
0x1339   : > { %v3543_v46 = vsub.f32 %v3529_v51, %v3541_v54  ;;  %v3542_v6 = vmul.f32 0.03125, %v3540_v30 }
0x133b   : > { %v3544_v59 = vsub.f32 %v3530_v26, %v3542_v6  ;;  %v3545_v45 = vmul.f32 %v3543_v46, %v3543_v46 }
0x133d   : > { %v3547_v58 = vsel %vm743_vm0, %v3545_v45, 0.0  ;;  %v3546_v39 = vmul.f32 %v3544_v59, %v3544_v59 }
0x133e   : > { %3548 = vadd.xlane.f32.xlu0 %v3547_v58 }
0x133f   : > { %v3550_v62 = vsel %vm743_vm0, %v3546_v39, 0.0 }
0x1342   : > { %3551 = vadd.xlane.f32.xlu0 %v3550_v62 }
0x13cb   : > { %v3549_v60 = vpop.xlane.xlu0 %3548 }
0x13cc   : > { %v3553_v49 = vmul.f32 0.03125, %v3549_v60 }
0x13ce   : > { %v3555_v8 = vadd.f32 1e-12, %v3553_v49 }
0x13cf   : > { %v3552_v10 = vpop.xlane.xlu0 %3551 }
0x13d0   : > { %4601 = vrsqrt.f32 %v3555_v8  ;;  %v3554_v63 = vmul.f32 0.03125, %v3552_v10 }
0x13d2   : > { %v3556_v33 = vadd.f32 1e-12, %v3554_v63 }
0x13d4   : > { %4603 = vrsqrt.f32 %v3556_v33 }
0x13da   : > { %v4602_v32 = vpop.eup %4601 }
0x13db   : > { %v3559_v28 = vmul.f32 %v4602_v32, %v3543_v46 }
0x13dd   : > { %v3567_v17 = vmul.f32 %v4014_v4, %v3559_v28 }
0x13de   : > { %v4604_v23 = vpop.eup %4603 }
0x13df   : > { %v3560_v25 = vmul.f32 %v4604_v23, %v3544_v59  ;;  %v5882_v40 = vadd.f32 %v4015_v29, %v3567_v17 }
0x13e1   : > { %v3568_v44 = vmul.f32 %v4014_v4, %v3560_v25 }
0x13e3   : > { %v5884_v21 = vadd.f32 %v4015_v29, %v3568_v44 }
0x13e5   : > { %v3582_v53 = vpack.c.bf16 %v5884_v21, %v5882_v40 }
0x13e7   : > { %4259 = vmatmul.mubr.msk.bf16.vlgmr.msra.gmra.mrb[32].mxu1 %vm743_vm0, %v3582_v53 }
0x14ba   : > { %v3640_v57 = vpop.f32.mrb[32].mxu1 }
0x14bb   : > { %v3641_v19 = vadd.f32 %v4021_v38, %v3640_v57  ;;  %v4260_v18 = vpop.f32.mrb[33].mxu1 }
0x14bc   : > { %v3643_v50 = vpop.f32.mrb[34].mxu1 }
0x14bd   : > { %v3647_v31 = vmul.f32 0.70710677, %v3641_v19  ;;  %v3644_v15 = vadd.f32 %v4021_v38, %v3643_v50  ;;  %v4261_v47 = vpop.f32.mrb[35].mxu1  ;;  %v3695_v17 = vmul.f32 0.5, %v3641_v19 }
0x14bf   : > { %v3653_v52 = vand.u32 2147483647, %v3647_v31  ;;  %v3648_v48 = vmul.f32 0.70710677, %v3644_v15  ;;  %vm3649_vm1 = vcmp.ge.f32.partialorder %v3647_v31, 0.0  ;;  %v3696_v25 = vmul.f32 0.5, %v3644_v15 }
0x14c0   : > { %v3651_v10 = vsel %vm3649_vm1, 1.0, %v4655_v42 }
0x14c1   : > { %v3655_v9 = vmul.f32 0.3275911, %v3653_v52  ;;  %v3654_v3 = vand.u32 2147483647, %v3648_v48  ;;  %v3681_v35 = vsub.f32 0.0, %v3653_v52  ;;  %vm3650_vm12 = vcmp.ge.f32.partialorder %v3648_v48, 0.0 }
0x14c2   : > { %v3652_v28 = vsel %vm3650_vm12, 1.0, %v4655_v42 }
0x14c3   : > { %v3657_v2 = vadd.f32 1.0, %v3655_v9  ;;  %v3656_v20 = vmul.f32 0.3275911, %v3654_v3  ;;  %v3682_v14 = vsub.f32 0.0, %v3654_v3  ;;  %v3683_v0 = vmul.f32 %v3681_v35, %v3653_v52 }
0x14c5   : > { %4605 = vrcp.f32 %v3657_v2  ;;  %v3658_v11 = vadd.f32 1.0, %v3656_v20  ;;  %v3684_v36 = vmul.f32 %v3682_v14, %v3654_v3  ;;  %v3685_v56 = vmul.f32 1.442695, %v3683_v0 }
0x14c7   : > { %4607 = vrcp.f32 %v3658_v11  ;;  %v3687_v34 = vmul.f32 1.442695, %v3684_v36  ;;  %v4042_v36 = vld [vmem:[%s5956_s21 + $0x1] ss:$0 sm:$0xff] }
0x14c8   : > { %4609 = vpow2.f32 %v3685_v56 }
0x14c9   : > { %4611 = vpow2.f32 %v3687_v34 }
0x14cf   : > { %v4606_v43 = vpop.eup %4605 }
0x14d0   : > { %v3663_v61 = vmul.f32 1.0614054, %v4606_v43 }
0x14d1   : > { %v4608_v37 = vpop.eup %4607 }
0x14d2   : > { %v3665_v22 = vadd.f32 -1.4531521, %v3663_v61  ;;  %v3664_v51 = vmul.f32 1.0614054, %v4608_v37  ;;  %v4610_v62 = vpop.eup %4609 }
0x14d3   : > { %v4612_v49 = vpop.eup %4611 }
0x14d4   : > { %v3667_v13 = vmul.f32 %v4606_v43, %v3665_v22  ;;  %v3666_v5 = vadd.f32 -1.4531521, %v3664_v51 }
0x14d6   : > { %v3669_v26 = vadd.f32 1.4214138, %v3667_v13  ;;  %v3668_v7 = vmul.f32 %v4608_v37, %v3666_v5  ;;  %v4043_v13 = vld [vmem:[%s5957_s22 + $0x1] ss:$0 sm:$0xff] }
0x14d8   : > { %v3671_v55 = vmul.f32 %v4606_v43, %v3669_v26  ;;  %v3670_v54 = vadd.f32 1.4214138, %v3668_v7 }
0x14da   : > { %v3673_v30 = vadd.f32 -0.28449672, %v3671_v55  ;;  %v3672_v46 = vmul.f32 %v4608_v37, %v3670_v54 }
0x14dc   : > { %v3675_v6 = vmul.f32 %v4606_v43, %v3673_v30  ;;  %v3674_v59 = vadd.f32 -0.28449672, %v3672_v46 }
0x14de   : > { %v3677_v45 = vadd.f32 0.2548296, %v3675_v6  ;;  %v3676_v58 = vmul.f32 %v4608_v37, %v3674_v59 }
0x14e0   : > { %v3679_v39 = vmul.f32 %v4606_v43, %v3677_v45  ;;  %v3678_v27 = vadd.f32 0.2548296, %v3676_v58 }
0x14e2   : > { %v3689_v1 = vmul.f32 %v4610_v62, %v3679_v39  ;;  %v3680_v60 = vmul.f32 %v4608_v37, %v3678_v27 }
0x14e4   : > { %v3691_v8 = vsub.f32 1.0, %v3689_v1  ;;  %v3690_v63 = vmul.f32 %v4612_v49, %v3680_v60 }
0x14e6   : > { %v3693_v33 = vmul.f32 %v3691_v8, %v3651_v10  ;;  %v3692_v32 = vsub.f32 1.0, %v3690_v63 }
0x14e8   : > { %v3697_v4 = vadd.f32 1.0, %v3693_v33  ;;  %v3694_v23 = vmul.f32 %v3692_v32, %v3652_v28 }
0x14ea   : > { %v3698_v29 = vadd.f32 1.0, %v3694_v23  ;;  %v3699_v44 = vmul.f32 %v3697_v4, %v3695_v17 }
0x14ec   : > { %v3700_v53 = vmul.f32 %v3698_v29, %v3696_v25 }
0x14ee   : > { %v3710_v41 = vpack.c.bf16 %v3700_v53, %v3699_v44 }
0x14f0   : > { %4271 = vmatmul.mubr.msk.bf16.vlgmr.msra.gmra.mrb[24].mxu0 %vm2271_vm7, %v3710_v41 }
0x15c3   : > { %v3780_v24 = vpop.f32.mrb[24].mxu0 }
0x15c4   : > { %v3781_v12 = vadd.f32 %v4034_v16, %v3780_v24  ;;  %v4272_v38 = vpop.f32.mrb[25].mxu0 }
0x15c5   : > { %v3783_v57 = vpop.f32.mrb[26].mxu0 }
0x15c6   : > { %v3787_v42 = vadd.f32 %v3781_v12, %v5882_v40  ;;  %v3784_v18 = vadd.f32 %v4034_v16, %v3783_v57  ;;  %v4273_v50 = vpop.f32.mrb[27].mxu0 }
0x15c8   : > { %v3788_v19 = vadd.f32 %v3784_v18, %v5884_v21  ;;  %v3793_v31 = vsel %vm743_vm0, %v3787_v42, 0.0 }
0x15c9   : > { %3794 = vadd.xlane.f32.xlu0 %v3793_v31 }
0x15ca   : > { %v3796_v15 = vsel %vm743_vm0, %v3788_v19, 0.0 }
0x15cb   : > { %3797 = vadd.xlane.f32.xlu1 %v3796_v15 }
0x1656   : > { %v3795_v47 = vpop.xlane.xlu0 %3794 }
0x1657   : > { %v3799_v52 = vmul.f32 0.03125, %v3795_v47 }
0x1658   : > { %v3798_v48 = vpop.xlane.xlu1 %3797 }
0x1659   : > { %v3801_v9 = vsub.f32 %v3787_v42, %v3799_v52  ;;  %v3800_v3 = vmul.f32 0.03125, %v3798_v48 }
0x165b   : > { %v3802_v2 = vsub.f32 %v3788_v19, %v3800_v3  ;;  %v3803_v20 = vmul.f32 %v3801_v9, %v3801_v9 }
0x165d   : > { %v3805_v11 = vsel %vm743_vm0, %v3803_v20, 0.0  ;;  %v3804_v40 = vmul.f32 %v3802_v2, %v3802_v2 }
0x165e   : > { %3806 = vadd.xlane.f32.xlu0 %v3805_v11 }
0x165f   : > { %v3808_v35 = vsel %vm743_vm0, %v3804_v40, 0.0 }
0x1660   : > { %3809 = vadd.xlane.f32.xlu1 %v3808_v35 }
0x16eb   : > { %v3807_v21 = vpop.xlane.xlu0 %3806 }
0x16ec   : > { %v3811_v14 = vmul.f32 0.03125, %v3807_v21 }
0x16ed   : > { %v3810_v43 = vpop.xlane.xlu1 %3809 }
0x16ee   : > { %v3813_v0 = vadd.f32 1e-12, %v3811_v14  ;;  %v3812_v61 = vmul.f32 0.03125, %v3810_v43 }
0x16f0   : > { %4613 = vrsqrt.f32 %v3813_v0  ;;  %v3814_v37 = vadd.f32 1e-12, %v3812_v61 }
0x16f2   : > { %4615 = vrsqrt.f32 %v3814_v37 }
0x16fa   : > { %v4614_v22 = vpop.eup %4613 }
0x16fb   : > { %v3817_v56 = vmul.f32 %v4614_v22, %v3801_v9 }
0x16fc   : > { %v4616_v51 = vpop.eup %4615 }
0x16fd   : > { %v3825_v5 = vmul.f32 %v4042_v36, %v3817_v56  ;;  %v3818_v26 = vmul.f32 %v4616_v51, %v3802_v2 }
0x16ff   : > { %v3833_v34 = vadd.f32 %v4043_v13, %v3825_v5  ;;  %v3826_v7 = vmul.f32 %v4042_v36, %v3818_v26 }
0x1701   : > { %3835 = vst.msk [vmem:[%s724_s0] sm:$0xff] %vm743_vm0, %v3833_v34  ;;  %v3834_v55 = vadd.f32 %v4043_v13, %v3826_v7 }
0x1703   : > { %3836 = vst.msk [vmem:[%s724_s0 + $0x8] sm:$0xff] %vm743_vm0, %v3834_v55 }
0x1704 PF: > { %s33_s4 = sadd.s32 1, %s4624_s4  }
0x1705   : > { %p30_p4 = scmp.ge.s32.totalorder %s33_s4, 4  }
0x1707   :  { %32 = sbr.rel (!%p30_p4) target bundleno = 9 (0x9), region = 162 }

</bundles_post_ra>
